<compile_context>
chip_gen: v7x
topology: tpu7x:2x2x1
jax: 0.10.0
libtpu: 0.0.40
codegen_flags: <defaults>
</compile_context>

<pallas_src>
import jax
import jax.numpy as jnp
from jax import lax
from jax.experimental import pallas as pl
from jax.experimental.pallas import tpu as pltpu

IMG_FEATURES = 48 * 48 * 3  # 6912
BN_EPS = 1e-5


# ---------------------------------------------------------------------------
# Fused Pallas kernel: one grid step = one fc4 output-column slab.
# ---------------------------------------------------------------------------
def _generator_kernel(z_ref, w1_ref, b1_ref, gamma_ref, beta_ref,
                      w2_ref, b2_ref, w3_ref, b3_ref,
                      w4_ref, b4_ref, o_ref):
    # ---- fc1 + ReLU  (B, 256) --------------------------------------------
    x = jnp.dot(z_ref[...], w1_ref[...], preferred_element_type=jnp.float32)
    x = jnp.maximum(x + b1_ref[...], 0.0)

    # ---- BatchNorm1d, training mode: batch mean / biased variance ---------
    # TODO(synk): running_mean/running_var buffer updates (training side
    # effect) are not materialized; forward matches torch train mode exactly.
    mean = jnp.mean(x, axis=0, keepdims=True)
    var = jnp.mean((x - mean) ** 2, axis=0, keepdims=True)
    x = gamma_ref[...] * (x - mean) * lax.rsqrt(var + BN_EPS) + beta_ref[...]

    # ---- fc2 + ReLU  (B, 512) ---------------------------------------------
    x = jnp.dot(x, w2_ref[...], preferred_element_type=jnp.float32)
    x = jnp.maximum(x + b2_ref[...], 0.0)

    # ---- fc3 + ReLU  (B, 1024) --------------------------------------------
    x = jnp.dot(x, w3_ref[...], preferred_element_type=jnp.float32)
    x = jnp.maximum(x + b3_ref[...], 0.0)

    # ---- fc4 slab + tanh  (B, tn); bf16 weight stream, f32 accumulate ------
    y = jnp.dot(x.astype(w4_ref.dtype), w4_ref[...],
                preferred_element_type=jnp.float32) + b4_ref[...]
    o_ref[...] = jnp.tanh(y).astype(o_ref.dtype)


def generator_fused(params, z, *, tn=1152):
    """Whole forward (up to the final reshape) in one pallas_call.

    tn must be a multiple of 128 dividing 6912; 1152 gives an even 6-step
    grid (v7x megacore balance) and a 2.25 MiB bf16 weight tile (4.5 MiB
    double-buffered) that fits every chip's scoped-VMEM default.
    """
    B, L = z.shape
    N = IMG_FEATURES
    assert N % tn == 0 and tn % 128 == 0

    w1, b1 = params["w1"], params["b1"].reshape(1, -1)
    gamma = params["bn_gamma"].reshape(1, -1)
    beta = params["bn_beta"].reshape(1, -1)
    w2, b2 = params["w2"], params["b2"].reshape(1, -1)
    w3, b3 = params["w3"], params["b3"].reshape(1, -1)
    w4, b4 = params["w4"], params["b4"].reshape(1, -1)

    const = lambda j: (0, 0)   # untiled operand: same block every step -> single DMA
    slab = lambda j: (0, j)    # fc4 weight / bias / output column slabs

    return pl.pallas_call(
        _generator_kernel,
        out_shape=jax.ShapeDtypeStruct((B, N), jnp.float32),
        grid=(N // tn,),
        in_specs=[
            pl.BlockSpec((B, L), const),          # z
            pl.BlockSpec(w1.shape, const),        # w1  (L, 256)
            pl.BlockSpec((1, 256), const),        # b1
            pl.BlockSpec((1, 256), const),        # bn gamma
            pl.BlockSpec((1, 256), const),        # bn beta
            pl.BlockSpec(w2.shape, const),        # w2  (256, 512)
            pl.BlockSpec((1, 512), const),        # b2
            pl.BlockSpec(w3.shape, const),        # w3  (512, 1024)
            pl.BlockSpec((1, 1024), const),       # b3
            pl.BlockSpec((1024, tn), slab),       # w4 (bf16) column slab
            pl.BlockSpec((1, tn), slab),          # b4 slab
        ],
        out_specs=pl.BlockSpec((B, tn), slab),
        compiler_params=pltpu.CompilerParams(
            dimension_semantics=("parallel",)),
    )(z, w1, b1, gamma, beta, w2, b2, w3, b3, w4, b4)


# ---------------------------------------------------------------------------
# Generator (parameter setup + forward wrapper)
# ---------------------------------------------------------------------------
def init_generator_params(key, latent_dim):
    """Deterministic init mimicking torch.nn.Linear defaults
    (uniform(-1/sqrt(fan_in), 1/sqrt(fan_in)) for weight and bias)."""
    dims = [(latent_dim, 256), (256, 512), (512, 1024), (1024, IMG_FEATURES)]
    params = {}
    keys = jax.random.split(key, 2 * len(dims))
    for i, (fan_in, fan_out) in enumerate(dims):
        bound = 1.0 / float(fan_in) ** 0.5
        params[f"w{i + 1}"] = jax.random.uniform(
            keys[2 * i], (fan_in, fan_out), jnp.float32, -bound, bound)
        params[f"b{i + 1}"] = jax.random.uniform(
            keys[2 * i + 1], (fan_out,), jnp.float32, -bound, bound)
    # fc4 weight is streamed as bf16 (dominant HBM traffic); f32 accumulate
    # happens inside the kernel.  Flagged numerics change vs torch fp32.
    params["w4"] = params["w4"].astype(jnp.bfloat16)
    # BatchNorm1d(256) affine params: gamma=1, beta=0 (torch defaults).
    params["bn_gamma"] = jnp.ones((256,), jnp.float32)
    params["bn_beta"] = jnp.zeros((256,), jnp.float32)
    return params


@jax.jit
def generator_forward(params, z):
    x = generator_fused(params, z)       # (B, 6912) f32
    return x.reshape(-1, 3, 48, 48)      # torch view(-1, 3, 48, 48), NCHW


if __name__ == "__main__":
    latent_dim = 32
    batch = 2  # BatchNorm1d (training-mode batch stats) needs batch > 1

    key = jax.random.PRNGKey(0)
    pkey, zkey = jax.random.split(key)
    params = init_generator_params(pkey, latent_dim)
    z = jax.random.normal(zkey, (batch, latent_dim), jnp.float32)

    out = jax.block_until_ready(generator_forward(params, z))

    assert out.shape == (batch, 3, 48, 48), out.shape
    assert out.dtype == jnp.float32
    assert bool(jnp.all(jnp.isfinite(out)))
    assert bool(jnp.all(jnp.abs(out) <= 1.0 + 1e-6))  # tanh range
    print("KERNEL_OK")
</pallas_src>

<mosaic_0001>
module attributes {stable_mosaic.version = 11 : i64} {
  func.func @_generator_kernel(%arg0: i32, %arg1: memref<2x32xf32, #tpu.memory_space<vmem>>, %arg2: memref<32x256xf32, #tpu.memory_space<vmem>>, %arg3: memref<1x256xf32, #tpu.memory_space<vmem>>, %arg4: memref<1x256xf32, #tpu.memory_space<vmem>>, %arg5: memref<1x256xf32, #tpu.memory_space<vmem>>, %arg6: memref<256x512xf32, #tpu.memory_space<vmem>>, %arg7: memref<1x512xf32, #tpu.memory_space<vmem>>, %arg8: memref<512x1024xf32, #tpu.memory_space<vmem>>, %arg9: memref<1x1024xf32, #tpu.memory_space<vmem>>, %arg10: memref<1024x1152xbf16, #tpu.memory_space<vmem>>, %arg11: memref<1x1152xf32, #tpu.memory_space<vmem>>, %arg12: memref<2x1152xf32, #tpu.memory_space<vmem>>) attributes {dimension_semantics = [#tpu.dimension_semantics<parallel>], iteration_bounds = array<i64: 6>, scalar_prefetch = 0 : i64, scratch_operands = 0 : i64, tpu.core_type = #tpu.core_type<tc>, window_params = [{pipeline_mode = #tpu.pipeline_mode<synchronous>, transform_indices = @transform_0, window_bounds = array<i64: 2, 32>}, {pipeline_mode = #tpu.pipeline_mode<synchronous>, transform_indices = @transform_1, window_bounds = array<i64: 32, 256>}, {pipeline_mode = #tpu.pipeline_mode<synchronous>, transform_indices = @transform_2, window_bounds = array<i64: 1, 256>}, {pipeline_mode = #tpu.pipeline_mode<synchronous>, transform_indices = @transform_3, window_bounds = array<i64: 1, 256>}, {pipeline_mode = #tpu.pipeline_mode<synchronous>, transform_indices = @transform_4, window_bounds = array<i64: 1, 256>}, {pipeline_mode = #tpu.pipeline_mode<synchronous>, transform_indices = @transform_5, window_bounds = array<i64: 256, 512>}, {pipeline_mode = #tpu.pipeline_mode<synchronous>, transform_indices = @transform_6, window_bounds = array<i64: 1, 512>}, {pipeline_mode = #tpu.pipeline_mode<synchronous>, transform_indices = @transform_7, window_bounds = array<i64: 512, 1024>}, {pipeline_mode = #tpu.pipeline_mode<synchronous>, transform_indices = @transform_8, window_bounds = array<i64: 1, 1024>}, {transform_indices = @transform_9, window_bounds = array<i64: 1024, 1152>}, {transform_indices = @transform_10, window_bounds = array<i64: 1, 1152>}, {transform_indices = @transform_11, window_bounds = array<i64: 2, 1152>}]} {
    %c0 = arith.constant 0 : index
    %c0_0 = arith.constant 0 : index
    %0 = vector.load %arg1[%c0, %c0_0] : memref<2x32xf32, #tpu.memory_space<vmem>>, vector<2x32xf32>
    %c0_1 = arith.constant 0 : index
    %c0_2 = arith.constant 0 : index
    %1 = vector.load %arg2[%c0_1, %c0_2] : memref<32x256xf32, #tpu.memory_space<vmem>>, vector<32x256xf32>
    %cst = arith.constant dense<0.000000e+00> : vector<2x256xf32>
    %2 = tpu.matmul %0, %1, %cst {dimension_numbers = #tpu.dot_dimension_numbers<[1], [0], [0], [1], [0, 0, 1, 1], [], []>} : vector<2x32xf32>, vector<32x256xf32>, vector<2x256xf32> -> vector<2x256xf32>
    %c0_3 = arith.constant 0 : index
    %c0_4 = arith.constant 0 : index
    %3 = vector.load %arg3[%c0_3, %c0_4] : memref<1x256xf32, #tpu.memory_space<vmem>>, vector<1x256xf32>
    %4 = vector.broadcast %3 : vector<1x256xf32> to vector<2x256xf32>
    %5 = arith.addf %2, %4 : vector<2x256xf32>
    %cst_5 = arith.constant 0.000000e+00 : f32
    %6 = vector.broadcast %cst_5 : f32 to vector<2x256xf32>
    %7 = arith.maximumf %5, %6 : vector<2x256xf32>
    %cst_6 = arith.constant dense<0.000000e+00> : vector<256xf32>
    %8 = vector.multi_reduction <add>, %7, %cst_6 [0] : vector<2x256xf32> to vector<256xf32>
    %9 = vector.shape_cast %8 : vector<256xf32> to vector<1x256xf32>
    %cst_7 = arith.constant 2.000000e+00 : f32
    %10 = vector.broadcast %cst_7 : f32 to vector<1x256xf32>
    %11 = arith.divf %9, %10 : vector<1x256xf32>
    %12 = vector.broadcast %11 : vector<1x256xf32> to vector<2x256xf32>
    %13 = arith.subf %7, %12 : vector<2x256xf32>
    %14 = arith.mulf %13, %13 : vector<2x256xf32>
    %cst_8 = arith.constant dense<0.000000e+00> : vector<256xf32>
    %15 = vector.multi_reduction <add>, %14, %cst_8 [0] : vector<2x256xf32> to vector<256xf32>
    %16 = vector.shape_cast %15 : vector<256xf32> to vector<1x256xf32>
    %cst_9 = arith.constant 2.000000e+00 : f32
    %17 = vector.broadcast %cst_9 : f32 to vector<1x256xf32>
    %18 = arith.divf %16, %17 : vector<1x256xf32>
    %c0_10 = arith.constant 0 : index
    %c0_11 = arith.constant 0 : index
    %19 = vector.load %arg4[%c0_10, %c0_11] : memref<1x256xf32, #tpu.memory_space<vmem>>, vector<1x256xf32>
    %20 = vector.broadcast %11 : vector<1x256xf32> to vector<2x256xf32>
    %21 = arith.subf %7, %20 : vector<2x256xf32>
    %22 = vector.broadcast %19 : vector<1x256xf32> to vector<2x256xf32>
    %23 = arith.mulf %22, %21 : vector<2x256xf32>
    %cst_12 = arith.constant 9.99999974E-6 : f32
    %24 = vector.broadcast %cst_12 : f32 to vector<1x256xf32>
    %25 = arith.addf %18, %24 : vector<1x256xf32>
    %26 = math.rsqrt %25 : vector<1x256xf32>
    %27 = vector.broadcast %26 : vector<1x256xf32> to vector<2x256xf32>
    %28 = arith.mulf %23, %27 : vector<2x256xf32>
    %c0_13 = arith.constant 0 : index
    %c0_14 = arith.constant 0 : index
    %29 = vector.load %arg5[%c0_13, %c0_14] : memref<1x256xf32, #tpu.memory_space<vmem>>, vector<1x256xf32>
    %30 = vector.broadcast %29 : vector<1x256xf32> to vector<2x256xf32>
    %31 = arith.addf %28, %30 : vector<2x256xf32>
    %c0_15 = arith.constant 0 : index
    %c0_16 = arith.constant 0 : index
    %32 = vector.load %arg6[%c0_15, %c0_16] : memref<256x512xf32, #tpu.memory_space<vmem>>, vector<256x512xf32>
    %cst_17 = arith.constant dense<0.000000e+00> : vector<2x512xf32>
    %33 = tpu.matmul %31, %32, %cst_17 {dimension_numbers = #tpu.dot_dimension_numbers<[1], [0], [0], [1], [0, 0, 1, 1], [], []>} : vector<2x256xf32>, vector<256x512xf32>, vector<2x512xf32> -> vector<2x512xf32>
    %c0_18 = arith.constant 0 : index
    %c0_19 = arith.constant 0 : index
    %34 = vector.load %arg7[%c0_18, %c0_19] : memref<1x512xf32, #tpu.memory_space<vmem>>, vector<1x512xf32>
    %35 = vector.broadcast %34 : vector<1x512xf32> to vector<2x512xf32>
    %36 = arith.addf %33, %35 : vector<2x512xf32>
    %cst_20 = arith.constant 0.000000e+00 : f32
    %37 = vector.broadcast %cst_20 : f32 to vector<2x512xf32>
    %38 = arith.maximumf %36, %37 : vector<2x512xf32>
    %c0_21 = arith.constant 0 : index
    %c0_22 = arith.constant 0 : index
    %39 = vector.load %arg8[%c0_21, %c0_22] : memref<512x1024xf32, #tpu.memory_space<vmem>>, vector<512x1024xf32>
    %cst_23 = arith.constant dense<0.000000e+00> : vector<2x1024xf32>
    %40 = tpu.matmul %38, %39, %cst_23 {dimension_numbers = #tpu.dot_dimension_numbers<[1], [0], [0], [1], [0, 0, 1, 1], [], []>} : vector<2x512xf32>, vector<512x1024xf32>, vector<2x1024xf32> -> vector<2x1024xf32>
    %c0_24 = arith.constant 0 : index
    %c0_25 = arith.constant 0 : index
    %41 = vector.load %arg9[%c0_24, %c0_25] : memref<1x1024xf32, #tpu.memory_space<vmem>>, vector<1x1024xf32>
    %42 = vector.broadcast %41 : vector<1x1024xf32> to vector<2x1024xf32>
    %43 = arith.addf %40, %42 : vector<2x1024xf32>
    %cst_26 = arith.constant 0.000000e+00 : f32
    %44 = vector.broadcast %cst_26 : f32 to vector<2x1024xf32>
    %45 = arith.maximumf %43, %44 : vector<2x1024xf32>
    %46 = arith.truncf %45 : vector<2x1024xf32> to vector<2x1024xbf16>
    %c0_27 = arith.constant 0 : index
    %c0_28 = arith.constant 0 : index
    %47 = vector.load %arg10[%c0_27, %c0_28] : memref<1024x1152xbf16, #tpu.memory_space<vmem>>, vector<1024x1152xbf16>
    %cst_29 = arith.constant dense<0.000000e+00> : vector<2x1152xf32>
    %48 = tpu.matmul %46, %47, %cst_29 {dimension_numbers = #tpu.dot_dimension_numbers<[1], [0], [0], [1], [0, 0, 1, 1], [], []>} : vector<2x1024xbf16>, vector<1024x1152xbf16>, vector<2x1152xf32> -> vector<2x1152xf32>
    %c0_30 = arith.constant 0 : index
    %c0_31 = arith.constant 0 : index
    %49 = vector.load %arg11[%c0_30, %c0_31] : memref<1x1152xf32, #tpu.memory_space<vmem>>, vector<1x1152xf32>
    %50 = vector.broadcast %49 : vector<1x1152xf32> to vector<2x1152xf32>
    %51 = arith.addf %48, %50 : vector<2x1152xf32>
    %52 = math.tanh %51 : vector<2x1152xf32>
    %c0_32 = arith.constant 0 : index
    %c0_33 = arith.constant 0 : index
    %53 = vector.load %arg12[%c0_32, %c0_33] : memref<2x1152xf32, #tpu.memory_space<vmem>>, vector<2x1152xf32>
    tpu.vector_store %arg12[%c0_32, %c0_33], %52 {strides = array<i32>} : memref<2x1152xf32, #tpu.memory_space<vmem>>, vector<2x1152xf32>,
    return
  }
  func.func @transform_0(%arg0: i32) -> (i32, i32) {
    %c0_i32 = arith.constant 0 : i32
    %c0_i32_0 = arith.constant 0 : i32
    %c0_i32_1 = arith.constant 0 : i32
    return %c0_i32, %c0_i32_0 : i32, i32
  }
  func.func @transform_1(%arg0: i32) -> (i32, i32) {
    %c0_i32 = arith.constant 0 : i32
    %c0_i32_0 = arith.constant 0 : i32
    %c0_i32_1 = arith.constant 0 : i32
    return %c0_i32, %c0_i32_0 : i32, i32
  }
  func.func @transform_2(%arg0: i32) -> (i32, i32) {
    %c0_i32 = arith.constant 0 : i32
    %c0_i32_0 = arith.constant 0 : i32
    %c0_i32_1 = arith.constant 0 : i32
    return %c0_i32, %c0_i32_0 : i32, i32
  }
  func.func @transform_3(%arg0: i32) -> (i32, i32) {
    %c0_i32 = arith.constant 0 : i32
    %c0_i32_0 = arith.constant 0 : i32
    %c0_i32_1 = arith.constant 0 : i32
    return %c0_i32, %c0_i32_0 : i32, i32
  }
  func.func @transform_4(%arg0: i32) -> (i32, i32) {
    %c0_i32 = arith.constant 0 : i32
    %c0_i32_0 = arith.constant 0 : i32
    %c0_i32_1 = arith.constant 0 : i32
    return %c0_i32, %c0_i32_0 : i32, i32
  }
  func.func @transform_5(%arg0: i32) -> (i32, i32) {
    %c0_i32 = arith.constant 0 : i32
    %c0_i32_0 = arith.constant 0 : i32
    %c0_i32_1 = arith.constant 0 : i32
    return %c0_i32, %c0_i32_0 : i32, i32
  }
  func.func @transform_6(%arg0: i32) -> (i32, i32) {
    %c0_i32 = arith.constant 0 : i32
    %c0_i32_0 = arith.constant 0 : i32
    %c0_i32_1 = arith.constant 0 : i32
    return %c0_i32, %c0_i32_0 : i32, i32
  }
  func.func @transform_7(%arg0: i32) -> (i32, i32) {
    %c0_i32 = arith.constant 0 : i32
    %c0_i32_0 = arith.constant 0 : i32
    %c0_i32_1 = arith.constant 0 : i32
    return %c0_i32, %c0_i32_0 : i32, i32
  }
  func.func @transform_8(%arg0: i32) -> (i32, i32) {
    %c0_i32 = arith.constant 0 : i32
    %c0_i32_0 = arith.constant 0 : i32
    %c0_i32_1 = arith.constant 0 : i32
    return %c0_i32, %c0_i32_0 : i32, i32
  }
  func.func @transform_9(%arg0: i32) -> (i32, i32) {
    %c0_i32 = arith.constant 0 : i32
    %c0_i32_0 = arith.constant 0 : i32
    return %c0_i32, %arg0 : i32, i32
  }
  func.func @transform_10(%arg0: i32) -> (i32, i32) {
    %c0_i32 = arith.constant 0 : i32
    %c0_i32_0 = arith.constant 0 : i32
    return %c0_i32, %arg0 : i32, i32
  }
  func.func @transform_11(%arg0: i32) -> (i32, i32) {
    %c0_i32 = arith.constant 0 : i32
    %c0_i32_0 = arith.constant 0 : i32
    return %c0_i32, %arg0 : i32, i32
  }
}

</mosaic_0001>

<bundles_post_ra>
// kernel: generator_forward.1
= control target key start
LH: loop header
LB: loop body
LE: loop exit
PB: predicated region body
PF: predicated region fallthrough
CT: control target
= control target key end

     0   :  { %s10784_s0 = inlined_call_operand.hbm [shape: f32[2,32], index: 0, kind: input, shape index: {}]   ;;  %s10785_s1 = inlined_call_operand.hbm [shape: f32[32,256], index: 1, kind: input, shape index: {}]   ;;  %s10786_s2 = inlined_call_operand.hbm [shape: f32[1,256], index: 2, kind: input, shape index: {}]   ;;  %s10787_s3 = inlined_call_operand.hbm [shape: f32[1,256], index: 3, kind: input, shape index: {}]   ;;  %s10788_s4 = inlined_call_operand.hbm [shape: f32[1,256], index: 4, kind: input, shape index: {}]   ;;  %s10789_s5 = inlined_call_operand.hbm [shape: f32[256,512], index: 5, kind: input, shape index: {}]   ;;  %s10790_s6 = inlined_call_operand.hbm [shape: f32[1,512], index: 6, kind: input, shape index: {}]   ;;  %s10791_s7 = inlined_call_operand.hbm [shape: f32[512,1024], index: 7, kind: input, shape index: {}]   ;;  %s10792_s8 = inlined_call_operand.hbm [shape: f32[1,1024], index: 8, kind: input, shape index: {}]   ;;  %s10793_s9 = inlined_call_operand.hbm [shape: bf16[1024,6912], index: 9, kind: input, shape index: {}]   ;;  %s10794_s10 = inlined_call_operand.vmem [shape: f32[1,6912], index: 10, kind: input, shape index: {}]   ;;  %s10795_s11 = inlined_call_operand.vmem [shape: f32[2,6912], index: 11, kind: output, shape index: {}]  }
   0x1   :  { %10801 = sst [smem:[#allocation25_spill]] %s10794_s10 }
   0x2   :  { %10802 = sst [smem:[#allocation26_spill]] %s10795_s11 }
   0x3   :  { %16 = vsyncpa [#allocation3], 0 }
   0x4   :  { %17 = vsyncpa [#allocation5], 0 }
   0x5   :  { %18 = vsyncpa [#allocation8], 0 }
   0x6   :  { %19 = vsyncpa [#allocation11], 0 }
   0x7   :  { %20 = vsyncpa [#allocation14], 0 }
   0x8   :  { %21 = vsyncpa [#allocation17], 0 }
   0x9   :  { %23 = vsyncpa [#allocation17 + $0x1], 0  ;;  %s9661_s17 = smov 0   ;;  %s9663_s18 = smov 0  }
   0xa   :  { %s9665_s19 = smov 0   ;;  %s9667_s20 = smov 0  }
   0xb LB: > { %s9580_s21 = smov [#allocation4]   ;;  %s10796_s23 = sadd.s32 4294967295, %s9578_s20   ;;  %s9578_s20 = sphi %s9667_s20, %s10820_s20   ;;  %s9574_s19 = sphi %s9665_s19, %s10819_s19   ;;  %s9570_s18 = sphi %s9663_s18, %s10818_s18   ;;  %s9566_s17 = sphi %s9661_s17, %s10817_s17  }
   0xc   : > { %s324_s22 = sshll.u32 %s9580_s21, 4  ;;  %p6832_p0 = scmp.ge.s32.totalorder %s9578_s20, 1  ;;  %s9690_s22 = int_to_ptr.vmem [resolvable:$true] %s324_s22 }
   0xd   : > { %p9685_p1 = scmp.eq.s32.totalorder %s10796_s23, 0  ;;  %p301_p2 = scmp.lt.s32.totalorder %s9578_s20, 7 }
   0xe   : > { %s9581_s26 = smov [#allocation7]   ;;  %s9582_s29 = smov [#allocation10]  }
   0xf   : > { %s10803_s24 = scalar_select %p9685_p1, 1, 0 }
  0x10   : > { %p9692_p3 = pnand %p6832_p0, %p301_p2  ;;  %s349_s27 = sshll.u32 %s9581_s26, 4  ;;  %s9704_s27 = int_to_ptr.vmem [resolvable:$true] %s349_s27 }
  0x11   : > { %s370_s30 = sshll.u32 %s9582_s29, 4  ;;  %s9242_s14 = scalar_lea.hbm %s10785_s1, 1024  ;;  %s9706_s30 = int_to_ptr.vmem [resolvable:$true] %s370_s30 }
  0x12   : > { %s10804_s25 = scalar_select %p9692_p3, 1, 0 }
  0x13   : > { %p8285_p4 = pneg %p9692_p3  ;;  %p9243_p6 = scmp.ne.s32.totalorder %s10785_s1, %s9242_s14 }
  0x14   : > { %10805 = sst [smem:[#allocation24_spill]] %s10804_s25  ;;  %p9249_p10 = scmp.lt.u32.totalorder %s9242_s14, %s10785_s1 }
  0x15   : > { %p9700_p5 = pnand %p8285_p4, %p9685_p1 }
  0x17   : > { %p9716_p7 = pneg %p9700_p5 }
  0x19   : > { %p9245_p8 = pnand %p9716_p7, %p9243_p6 }
  0x1b   : > { %p9246_p9 = pneg %p9245_p8 }
  0x1d   : > { %p9251_p11 = pnand %p9249_p10, %p9246_p9 }
  0x1f   : > { %9254 = shalt.err (!%p9251_p11)
}
  0x20   : > { %s9255_s12 = scalar_lea.vmem %s9690_s22, 1024  ;;  %p9263_p2 = scmp.lt.s32.totalorder %s9690_s22, %s9690_s22 }
  0x21   : > { %p9256_p12 = scmp.ne.s32.totalorder %s9690_s22, %s9255_s12  ;;  %p9264_p4 = scmp.lt.s32.totalorder %s9255_s12, %s9255_s12 }
  0x23   : > { %p9258_p13 = pnand %p9256_p12, %p9716_p7  ;;  %p9265_p6 = por %p9264_p4, %p9263_p2 }
  0x25   : > { %p9259_p0 = pneg %p9258_p13 }
  0x27   : > { %p9266_p8 = pnand %p9265_p6, %p9259_p0 }
  0x29   : > { %9269 = shalt.err (!%p9266_p8)
}
  0x2a   : > { %s9583_s13 = smov 256   ;;  %s9584_s14 = smov 16  }
  0x2b   : > { %8291 = dma.hbm_to_vmem [thread:$0]  (!%p9700_p5), %s10785_s1, 1024, %s9690_s22, [#allocation5], %s9583_s13, %s9583_s13, %s9584_s14  }
  0x2c   : > { %s9270_s23 = scalar_lea.hbm %s10787_s3, 32 }
  0x2d   : > { %p9271_p9 = scmp.ne.s32.totalorder %s10787_s3, %s9270_s23  ;;  %p9277_p12 = scmp.lt.u32.totalorder %s9270_s23, %s10787_s3 }
  0x2f   : > { %p9273_p10 = pnand %p9271_p9, %p9716_p7 }
  0x31   : > { %p9274_p11 = pneg %p9273_p10 }
  0x33   : > { %p9279_p13 = pnand %p9277_p12, %p9274_p11 }
  0x35   : > { %9282 = shalt.err (!%p9279_p13)
}
  0x36   : > { %s9283_s22 = scalar_lea.vmem %s9704_s27, 32  ;;  %p9291_p6 = scmp.lt.s32.totalorder %s9704_s27, %s9704_s27 }
  0x37   : > { %p9284_p0 = scmp.ne.s32.totalorder %s9704_s27, %s9283_s22  ;;  %p9292_p8 = scmp.lt.s32.totalorder %s9283_s22, %s9283_s22 }
  0x39   : > { %p9286_p2 = pnand %p9284_p0, %p9716_p7  ;;  %p9293_p9 = por %p9292_p8, %p9291_p6 }
  0x3b   : > { %p9287_p4 = pneg %p9286_p2 }
  0x3d   : > { %p9294_p10 = pnand %p9293_p9, %p9287_p4 }
  0x3f   : > { %9297 = shalt.err (!%p9294_p10)
}
  0x40   : > { %8297 = dma.hbm_to_vmem [thread:$0]  (!%p9700_p5), %s10787_s3, 32, %s9704_s27, [#allocation8]  }
  0x41   : > { %s9298_s13 = scalar_lea.hbm %s10789_s5, 16384 }
  0x42   : > { %p9299_p11 = scmp.ne.s32.totalorder %s10789_s5, %s9298_s13  ;;  %p9305_p0 = scmp.lt.u32.totalorder %s9298_s13, %s10789_s5 }
  0x44   : > { %p9301_p12 = pnand %p9299_p11, %p9716_p7 }
  0x46   : > { %p9302_p13 = pneg %p9301_p12 }
  0x48   : > { %p9307_p2 = pnand %p9305_p0, %p9302_p13 }
  0x4a   : > { %9310 = shalt.err (!%p9307_p2)
}
  0x4b   : > { %s9311_s27 = scalar_lea.vmem %s9706_s30, 16384  ;;  %p9319_p9 = scmp.lt.s32.totalorder %s9706_s30, %s9706_s30 }
  0x4c   : > { %p9312_p4 = scmp.ne.s32.totalorder %s9706_s30, %s9311_s27  ;;  %p9320_p10 = scmp.lt.s32.totalorder %s9311_s27, %s9311_s27 }
  0x4e   : > { %p9314_p6 = pnand %p9312_p4, %p9716_p7  ;;  %p9321_p11 = por %p9320_p10, %p9319_p9 }
  0x50   : > { %p9315_p8 = pneg %p9314_p6 }
  0x52   : > { %p9322_p12 = pnand %p9321_p11, %p9315_p8 }
  0x54   : > { %9325 = shalt.err (!%p9322_p12)
}
  0x55   : > { %s9585_s29 = smov 512   ;;  %s9586_s12 = smov 32  }
  0x56   : > { %8303 = dma.hbm_to_vmem [thread:$0]  (!%p9700_p5), %s10789_s5, 16384, %s9706_s30, [#allocation11], %s9585_s29, %s9585_s29, %s9586_s12  }
  0x57   : > { %s9587_s11 = smov [#allocation13]   ;;  %s9326_s14 = scalar_lea.hbm %s10791_s7, 65536 }
  0x58   : > { %s394_s23 = sshll.u32 %s9587_s11, 4  ;;  %p9327_p13 = scmp.ne.s32.totalorder %s10791_s7, %s9326_s14  ;;  %s395_s23 = int_to_ptr.vmem [resolvable:$true] %s394_s23 }
  0x59   : > { %p9333_p4 = scmp.lt.u32.totalorder %s9326_s14, %s10791_s7 }
  0x5a   : > { %p9329_p0 = pnand %p9327_p13, %p9716_p7 }
  0x5c   : > { %p9330_p2 = pneg %p9329_p0 }
  0x5e   : > { %p9335_p6 = pnand %p9333_p4, %p9330_p2 }
  0x60   : > { %9338 = shalt.err (!%p9335_p6)
}
  0x61   : > { %s9339_s30 = scalar_lea.vmem %s395_s23, 65536  ;;  %p9347_p11 = scmp.lt.s32.totalorder %s395_s23, %s395_s23 }
  0x62   : > { %p9340_p8 = scmp.ne.s32.totalorder %s395_s23, %s9339_s30  ;;  %p9348_p12 = scmp.lt.s32.totalorder %s9339_s30, %s9339_s30 }
  0x64   : > { %p9342_p9 = pnand %p9340_p8, %p9716_p7  ;;  %p9349_p3 = por %p9348_p12, %p9347_p11 }
  0x66   : > { %p9343_p10 = pneg %p9342_p9 }
  0x68   : > { %p9350_p1 = pnand %p9349_p3, %p9343_p10 }
  0x6a   : > { %9353 = shalt.err (!%p9350_p1)
}
  0x6b   : > { %s9588_s29 = smov 1024   ;;  %s9589_s12 = smov 64  }
  0x6c   : > { %8309 = dma.hbm_to_vmem [thread:$0]  (!%p9700_p5), %s10791_s7, 65536, %s395_s23, [#allocation14], %s9588_s29, %s9588_s29, %s9589_s12  }
  0x6d   : > { %s9590_s11 = smov [#allocation2]   ;;  %s9591_s13 = smov [#allocation6]  }
  0x6e   : > { %s314_s25 = sshll.u32 %s9590_s11, 4  ;;  %s338_s14 = sshll.u32 %s9591_s13, 4  ;;  %s315_s25 = int_to_ptr.vmem [resolvable:$true] %s314_s25  ;;  %s9801_s14 = int_to_ptr.vmem [resolvable:$true] %s338_s14 }
  0x6f   : > { %s9354_s26 = scalar_lea.hbm %s10784_s0, 32 }
  0x70   : > { %p9355_p1 = scmp.ne.s32.totalorder %s10784_s0, %s9354_s26  ;;  %p9361_p0 = scmp.lt.u32.totalorder %s9354_s26, %s10784_s0 }
  0x72   : > { %p9357_p3 = pnand %p9355_p1, %p9716_p7 }
  0x74   : > { %p9358_p13 = pneg %p9357_p3 }
  0x76   : > { %p9363_p2 = pnand %p9361_p0, %p9358_p13 }
  0x78   : > { %9366 = shalt.err (!%p9363_p2)
}
  0x79   : > { %s9367_s29 = scalar_lea.vmem %s315_s25, 32  ;;  %p9375_p9 = scmp.lt.s32.totalorder %s315_s25, %s315_s25 }
  0x7a   : > { %p9368_p4 = scmp.ne.s32.totalorder %s315_s25, %s9367_s29  ;;  %p9376_p10 = scmp.lt.s32.totalorder %s9367_s29, %s9367_s29 }
  0x7c   : > { %p9370_p6 = pnand %p9368_p4, %p9716_p7  ;;  %p9377_p11 = por %p9376_p10, %p9375_p9 }
  0x7e   : > { %p9371_p8 = pneg %p9370_p6 }
  0x80   : > { %p9378_p12 = pnand %p9377_p11, %p9371_p8 }
  0x82   : > { %9381 = shalt.err (!%p9378_p12)
}
  0x83   : > { %8288 = dma.hbm_to_vmem [thread:$0]  (!%p9700_p5), %s10784_s0, 32, %s315_s25, [#allocation3]  }
  0x84   : > { %s9382_s15 = scalar_lea.hbm %s10786_s2, 32 }
  0x85   : > { %p9383_p1 = scmp.ne.s32.totalorder %s10786_s2, %s9382_s15  ;;  %p9389_p0 = scmp.lt.u32.totalorder %s9382_s15, %s10786_s2 }
  0x87   : > { %p9385_p3 = pnand %p9383_p1, %p9716_p7 }
  0x89   : > { %p9386_p13 = pneg %p9385_p3 }
  0x8b   : > { %p9391_p2 = pnand %p9389_p0, %p9386_p13 }
  0x8d   : > { %9394 = shalt.err (!%p9391_p2)
}
  0x8e   : > { %s9395_s25 = scalar_lea.vmem %s9801_s14, 32  ;;  %p9403_p9 = scmp.lt.s32.totalorder %s9801_s14, %s9801_s14 }
  0x8f   : > { %p9396_p4 = scmp.ne.s32.totalorder %s9801_s14, %s9395_s25  ;;  %p9404_p10 = scmp.lt.s32.totalorder %s9395_s25, %s9395_s25 }
  0x91   : > { %p9398_p6 = pnand %p9396_p4, %p9716_p7  ;;  %p9405_p11 = por %p9404_p10, %p9403_p9 }
  0x93   : > { %p9399_p8 = pneg %p9398_p6 }
  0x95   : > { %p9406_p12 = pnand %p9405_p11, %p9399_p8 }
  0x97   : > { %9409 = shalt.err (!%p9406_p12)
}
  0x98   : > { %8294 = dma.hbm_to_vmem [thread:$0]  (!%p9700_p5), %s10786_s2, 32, %s9801_s14, [#allocation5]  }
  0x99   : > { %s9592_s29 = smov [#allocation9]   ;;  %s9593_s10 = smov [#allocation12]  }
  0x9a   : > { %s360_s12 = sshll.u32 %s9592_s29, 4  ;;  %s384_s11 = sshll.u32 %s9593_s10, 4  ;;  %s361_s12 = int_to_ptr.vmem [resolvable:$true] %s360_s12  ;;  %s9844_s11 = int_to_ptr.vmem [resolvable:$true] %s384_s11 }
  0x9b   : > { %s9410_s16 = scalar_lea.hbm %s10788_s4, 32 }
  0x9c   : > { %p9411_p1 = scmp.ne.s32.totalorder %s10788_s4, %s9410_s16  ;;  %p9417_p0 = scmp.lt.u32.totalorder %s9410_s16, %s10788_s4 }
  0x9e   : > { %p9413_p3 = pnand %p9411_p1, %p9716_p7 }
  0xa0   : > { %p9414_p13 = pneg %p9413_p3 }
  0xa2   : > { %p9419_p2 = pnand %p9417_p0, %p9414_p13 }
  0xa4   : > { %9422 = shalt.err (!%p9419_p2)
}
  0xa5   : > { %s9423_s25 = scalar_lea.vmem %s361_s12, 32  ;;  %p9431_p9 = scmp.lt.s32.totalorder %s361_s12, %s361_s12 }
  0xa6   : > { %p9424_p4 = scmp.ne.s32.totalorder %s361_s12, %s9423_s25  ;;  %p9432_p10 = scmp.lt.s32.totalorder %s9423_s25, %s9423_s25 }
  0xa8   : > { %p9426_p6 = pnand %p9424_p4, %p9716_p7  ;;  %p9433_p11 = por %p9432_p10, %p9431_p9 }
  0xaa   : > { %p9427_p8 = pneg %p9426_p6 }
  0xac   : > { %p9434_p12 = pnand %p9433_p11, %p9427_p8 }
  0xae   : > { %9437 = shalt.err (!%p9434_p12)
}
  0xaf   : > { %8300 = dma.hbm_to_vmem [thread:$0]  (!%p9700_p5), %s10788_s4, 32, %s361_s12, [#allocation8]  }
  0xb0   : > { %s9438_s13 = scalar_lea.hbm %s10790_s6, 64 }
  0xb1   : > { %p9439_p1 = scmp.ne.s32.totalorder %s10790_s6, %s9438_s13  ;;  %p9445_p0 = scmp.lt.u32.totalorder %s9438_s13, %s10790_s6 }
  0xb3   : > { %p9441_p3 = pnand %p9439_p1, %p9716_p7 }
  0xb5   : > { %p9442_p13 = pneg %p9441_p3 }
  0xb7   : > { %p9447_p2 = pnand %p9445_p0, %p9442_p13 }
  0xb9   : > { %9450 = shalt.err (!%p9447_p2)
}
  0xba   : > { %s9451_s12 = scalar_lea.vmem %s9844_s11, 64  ;;  %p9459_p9 = scmp.lt.s32.totalorder %s9844_s11, %s9844_s11 }
  0xbb   : > { %p9452_p4 = scmp.ne.s32.totalorder %s9844_s11, %s9451_s12  ;;  %p9460_p10 = scmp.lt.s32.totalorder %s9451_s12, %s9451_s12 }
  0xbd   : > { %p9454_p6 = pnand %p9452_p4, %p9716_p7  ;;  %p9461_p11 = por %p9460_p10, %p9459_p9 }
  0xbf   : > { %p9455_p8 = pneg %p9454_p6 }
  0xc1   : > { %p9462_p12 = pnand %p9461_p11, %p9455_p8 }
  0xc3   : > { %9465 = shalt.err (!%p9462_p12)
}
  0xc4   : > { %8306 = dma.hbm_to_vmem [thread:$0]  (!%p9700_p5), %s10790_s6, 64, %s9844_s11, [#allocation11]  }
  0xc5   : > { %s9594_s25 = smov [#allocation15]   ;;  %s9466_s10 = scalar_lea.hbm %s10792_s8, 128 }
  0xc6   : > { %s408_s22 = sshll.u32 %s9594_s25, 4  ;;  %p9467_p1 = scmp.ne.s32.totalorder %s10792_s8, %s9466_s10  ;;  %s409_s22 = int_to_ptr.vmem [resolvable:$true] %s408_s22 }
  0xc7   : > { %p9473_p0 = scmp.lt.u32.totalorder %s9466_s10, %s10792_s8 }
  0xc8   : > { %p9469_p3 = pnand %p9467_p1, %p9716_p7 }
  0xca   : > { %p9470_p13 = pneg %p9469_p3 }
  0xcc   : > { %p9475_p2 = pnand %p9473_p0, %p9470_p13 }
  0xce   : > { %9478 = shalt.err (!%p9475_p2)
}
  0xcf   : > { %s9479_s11 = scalar_lea.vmem %s409_s22, 128  ;;  %p9487_p9 = scmp.lt.s32.totalorder %s409_s22, %s409_s22 }
  0xd0   : > { %p9480_p4 = scmp.ne.s32.totalorder %s409_s22, %s9479_s11  ;;  %p9488_p10 = scmp.lt.s32.totalorder %s9479_s11, %s9479_s11 }
  0xd2   : > { %p9482_p6 = pnand %p9480_p4, %p9716_p7  ;;  %p9489_p11 = por %p9488_p10, %p9487_p9 }
  0xd4   : > { %p9483_p8 = pneg %p9482_p6 }
  0xd6   : > { %p9490_p12 = pnand %p9489_p11, %p9483_p8 }
  0xd8   : > { %9493 = shalt.err (!%p9490_p12)
}
  0xd9   : > { %8312 = dma.hbm_to_vmem [thread:$0]  (!%p9700_p5), %s10792_s8, 128, %s409_s22, [#allocation14]  }
  0xda   : > { %s9906_s21 = sadd.s32 1, %s9578_s20   ;;  %s225_s30 = sadd.s32 1, %s9574_s19 }
  0xdb   : > { %s222_s28 = ssub.s32 %s9578_s20, %s9906_s21  ;;  %p232_p1 = scmp.ne.s32.totalorder %s9574_s19, %s9570_s18 }
  0xdc   : > { %p223_p7 = scmp.eq.s32.totalorder %s222_s28, 0  ;;  %p233_p3 = scmp.eq.s32.totalorder %s9578_s20, 0 }
  0xdd   : > { %p238_p13 = scmp.ne.s32.totalorder %s9570_s18, %s9566_s17  ;;  %p10808_p2 = scmp.ne.s32.totalorder %s10803_s24, 0 }
  0xde   : > { %s9917_s14 = scalar_select %p223_p7, %s9574_s19, %s225_s30  }
  0xdf   : > { %p234_p0 = por %p233_p3, %p232_p1  ;;  %p9921_p4 = por %p10808_p2, %p238_p13 }
  0xe0   : > { %p8326_p6 = scmp.lt.s32.totalorder %s9578_s20, 6  ;;  %s419_s23 = sand.u32 1, %s9574_s19  }
  0xe1   : > { %s8245_s22 = smul.u32 4608, %s419_s23  ;;  %s9939_s11 = scalar_lea.sflag [#allocation17], %s419_s23 }
  0xe2   : > { %s7436_s29 = smul.u32 576, %s9578_s20  ;;  %p9928_p5 = pnand %p8326_p6, %p234_p0 }
  0xe3   : > { %s423_s16 = scalar_lea.vmem [#allocation16], %s8245_s22  ;;  %s9499_s30 = scalar_lea.hbm %s10793_s9, 442368 }
  0xe4   : > { %s9935_s17 = scalar_lea.hbm %s10793_s9, %s7436_s29  ;;  %s430_s26 = sshll.u32 %s423_s16, 4  ;;  %s9937_s26 = int_to_ptr.vmem [resolvable:$true] %s430_s26 }
  0xe5   : > { %s9494_s27 = scalar_lea.hbm %s9935_s17, 73728  ;;  %p9496_p9 = pneg %p9928_p5 }
  0xe6   : > { %p9495_p8 = scmp.ne.s32.totalorder %s9935_s17, %s9494_s27  ;;  %p9500_p12 = scmp.lt.u32.totalorder %s9935_s17, %s10793_s9 }
  0xe7   : > { %p9501_p7 = scmp.lt.u32.totalorder %s9499_s30, %s9494_s27  ;;  %p9503_p3 = scmp.lt.u32.totalorder %s9494_s27, %s9935_s17 }
  0xe8   : > { %p9497_p10 = pnand %p9496_p9, %p9495_p8 }
  0xe9   : > { %p9502_p1 = por %p9501_p7, %p9500_p12 }
  0xea   : > { %p9498_p11 = pneg %p9497_p10 }
  0xeb   : > { %p9504_p13 = por %p9503_p3, %p9502_p1 }
  0xed   : > { %p9505_p0 = pnand %p9504_p13, %p9498_p11 }
  0xef   : > { %9508 = shalt.err (!%p9505_p0)
}
  0xf0   : > { %s9509_s23 = scalar_lea.vmem %s9937_s26, 73728  ;;  %s9595_s22 = smov [#allocation16]  }
  0xf1   : > { %p9510_p2 = scmp.ne.s32.totalorder %s9937_s26, %s9509_s23  ;;  %s9514_s15 = sshll.u32 %s9595_s22, 4  ;;  %s9515_s15 = int_to_ptr.vmem [resolvable:$false] %s9514_s15 }
  0xf2   : > { %s9516_s16 = scalar_lea.vmem %s9515_s15, 147456  ;;  %p9517_p10 = scmp.lt.s32.totalorder %s9937_s26, %s9515_s15 }
  0xf3   : > { %p9512_p6 = pnand %p9510_p2, %p9496_p9  ;;  %p9518_p12 = scmp.lt.s32.totalorder %s9516_s16, %s9509_s23 }
  0xf5   : > { %p9513_p8 = pneg %p9512_p6  ;;  %p9519_p7 = por %p9518_p12, %p9517_p10 }
  0xf7   : > { %p9520_p1 = pnand %p9519_p7, %p9513_p8 }
  0xf9   : > { %9523 = shalt.err (!%p9520_p1)
}
  0xfa   : > { %s9596_s27 = smov 3456   ;;  %s9597_s12 = smov 576  }
  0xfb   : > { %s9598_s28 = smov 36   ;;  %s10811_s30 = sld [smem:[#allocation24_spill]] }
  0xfc   : > { %8316 = dma.hbm_to_vmem [thread:$0]  (!%p9928_p5), %s9935_s17, 73728, %s9937_s26, %s9939_s11, %s9596_s27, %s9597_s12, %s9598_s28  }
 0x101   : > { %p10812_p9 = scmp.ne.s32.totalorder %s10811_s30, 0 }
 0x102   : > { %p10813_p11 = scmp.ne.s32.totalorder (!%p10812_p9), %s10803_s24, 0 }
 0x103   : > { %450 = sbr.rel (%p10812_p9) target bundleno = 1805 (0x70d), region = 64 }
 0x10a   : > { %9541 = dma.done.wait (%p10813_p11), [#allocation3], 32  }
 0x10b   : > { %9543 = vsyncadd (%p10813_p11), [#allocation3], 4294967264 }
 0x10c   : > { %9545 = dma.done.wait (%p10813_p11), [#allocation5], 1056  }
 0x10d   : > { %9547 = vsyncadd (%p10813_p11), [#allocation5], 4294966240 }
 0x10e   : > { %9549 = dma.done.wait (%p10813_p11), [#allocation8], 64  }
 0x10f   : > { %9551 = vsyncadd (%p10813_p11), [#allocation8], 4294967232 }
 0x110   : > { %9553 = dma.done.wait (%p10813_p11), [#allocation11], 16448  }
 0x111   : > { %9555 = vsyncadd (%p10813_p11), [#allocation11], 4294950848 }
 0x112   : > { %9557 = dma.done.wait (%p10813_p11), [#allocation14], 65664  }
 0x113   : > { %9559 = vsyncadd (%p10813_p11), [#allocation14], 4294901632  ;;  %s488_s10 = sand.u32 1, %s9570_s18  }
 0x114   : > { %s8246_s17 = smul.u32 4608, %s488_s10  ;;  %s489_s26 = scalar_lea.sflag [#allocation17], %s488_s10 }
 0x116   : > { %s9990_s11 = scalar_lea.vmem [#allocation16], %s8246_s17 }
 0x117   : > { %9561 = dma.done.wait (%p9921_p4), %s489_s26, 73728  }
 0x118   : > { %9563 = vsyncadd (%p9921_p4), %s489_s26, 4294893568  ;;  %v9599_v0 = vmov 0.0   ;;  %v550_v1 = vld [vmem:[#allocation4 + $0x8] sm:$0xff]  ;;  %v552_v2 = vld [vmem:[#allocation4 + $0x18] sm:$0xff]  ;;  %vm569_vm0 = vcmask 261120   ;;  %vm646_vm1 = vcmask 1041408  }
 0x119   : > { %637 = vmatprep.mubr.f32.mxu0 %v9599_v0  ;;  %v549_v3 = vld [vmem:[#allocation4] sm:$0xff]  ;;  %v7525_v4 = vpack.c.bf16 %v552_v2, %v550_v1  ;;  %v551_v5 = vld [vmem:[#allocation4 + $0x10] sm:$0xff]  ;;  %v554_v6 = vld [vmem:[#allocation4 + $0x28] sm:$0xff]  ;;  %s10814_s24 = sadd.s32 4294967295, %s9578_s20   ;;  %s10815_s13 = sld [smem:[#allocation25_spill]] }
 0x11a   : > { %v556_v7 = vld [vmem:[#allocation4 + $0x38] sm:$0xff]  ;;  %v7527_v8 = vpack.c.bf16 %v551_v5, %v549_v3  ;;  %v553_v10 = vld [vmem:[#allocation4 + $0x20] sm:$0xff]  ;;  %v555_v11 = vld [vmem:[#allocation4 + $0x30] sm:$0xff]  ;;  %s536_s25 = smul.u32 9, %s10814_s24  ;;  %s10816_s27 = sld [smem:[#allocation26_spill]] }
 0x11b   : > { %v7529_v9 = vpack.c.bf16 %v556_v7, %v554_v6  ;;  %7526 = vmatprep.subr.bf16.mxu0 %v7525_v4  ;;  %v719_v12 = vld [vmem:[#allocation10 + $0x8] sm:$0xff]  ;;  %v721_v14 = vld [vmem:[#allocation10 + $0x18] sm:$0xff]  ;;  %v7531_v15 = vpack.c.bf16 %v555_v11, %v553_v10  ;;  %v718_v18 = vld [vmem:[#allocation10] sm:$0xff] }
 0x11c   : > { %v723_v13 = vld [vmem:[#allocation10 + $0x28] sm:$0xff]  ;;  %7528 = vmatpush1.bf16.msra.mxu0 %v7527_v8  ;;  %v725_v17 = vld [vmem:[#allocation10 + $0x38] sm:$0xff]  ;;  %v722_v19 = vld [vmem:[#allocation10 + $0x20] sm:$0xff]  ;;  %p537_p4 = scmp.lt.s32.totalorder %s536_s25, 53 }
 0x11d   : > { %v7533_v16 = vpack.c.bf16 %v723_v13, %v719_v12  ;;  %7530 = vmatprep.subr.bf16.mxu0 %v7529_v9  ;;  %v7597_v20 = vpack.c.bf16 %v725_v17, %v721_v14  ;;  %v7535_v21 = vpack.c.bf16 %v722_v19, %v718_v18  ;;  %v720_v22 = vld [vmem:[#allocation10 + $0x10] sm:$0xff]  ;;  %v727_v24 = vld [vmem:[#allocation10 + $0x48] sm:$0xff]  ;;  %v729_v26 = vld [vmem:[#allocation10 + $0x58] sm:$0xff] }
 0x11e   : > { %v724_v23 = vld [vmem:[#allocation10 + $0x30] sm:$0xff]  ;;  %v731_v25 = vld [vmem:[#allocation10 + $0x68] sm:$0xff]  ;;  %v733_v27 = vld [vmem:[#allocation10 + $0x78] sm:$0xff]  ;;  %s10822_s25 = smov (!%p537_p4, %s536_s25), 53 }
 0x11f   : > { %7534 = vmatprep.subr.bf16.mxu1 %v7533_v16  ;;  %v548_v28 = vld [vmem:[#allocation2] sm:$0x3]  ;;  %v7537_v29 = vpack.c.bf16 %v731_v25, %v727_v24  ;;  %v726_v30 = vld [vmem:[#allocation10 + $0x40] sm:$0xff]  ;;  %v7599_v32 = vpack.c.bf16 %v724_v23, %v720_v22  ;;  %v728_v34 = vld [vmem:[#allocation10 + $0x50] sm:$0xff]  ;;  %v7601_v36 = vpack.c.bf16 %v733_v27, %v729_v26  ;;  %s10608_s23 = scalar_lea.vmem %s10815_s13, %s10822_s25  ;;  %s6854_s22 = sshll.u32 %s10822_s25, 1 }
 0x120   : > { %7536 = vmatpush1.bf16.msra.mxu1 %v7535_v21  ;;  %v730_v31 = vld [vmem:[#allocation10 + $0x60] sm:$0xff]  ;;  %7532 = vmatpush1.bf16.msra.mxu0 %v7531_v15  ;;  %v732_v35 = vld [vmem:[#allocation10 + $0x70] sm:$0xff]  ;;  %v735_v38 = vld [vmem:[#allocation10 + $0x88] sm:$0xff]  ;;  %s10658_s12 = scalar_lea.vmem %s10816_s27, %s6854_s22 }
 0x121   : > { %v7539_v33 = vpack.c.bf16 %v730_v31, %v726_v30  ;;  %7598 = vmatprep.subr.bf16.mxu0 %v7597_v20  ;;  %7538 = vmatprep.subr.bf16.mxu1 %v7537_v29  ;;  %v7603_v37 = vpack.c.bf16 %v732_v35, %v728_v34  ;;  %v739_v39 = vld [vmem:[#allocation10 + $0xa8] sm:$0xff]  ;;  %v737_v40 = vld [vmem:[#allocation10 + $0x98] sm:$0xff]  ;;  %v734_v43 = vld [vmem:[#allocation10 + $0x80] sm:$0xff] }
 0x122   : > { %v7541_v41 = vpack.c.bf16 %v739_v39, %v735_v38  ;;  %v741_v42 = vld [vmem:[#allocation10 + $0xb8] sm:$0xff]  ;;  %v738_v44 = vld [vmem:[#allocation10 + $0xa0] sm:$0xff]  ;;  %v736_v47 = vld [vmem:[#allocation10 + $0x90] sm:$0xff] }
 0x123   : > { %6855 = vmatmul.mubr.msk.f32.vlgmr.msra.gmra.mrb[0].mxu0 %vm569_vm0, %v548_v28  ;;  %v7605_v45 = vpack.c.bf16 %v741_v42, %v737_v40  ;;  %v7543_v46 = vpack.c.bf16 %v738_v44, %v734_v43  ;;  %v740_v48 = vld [vmem:[#allocation10 + $0xb0] sm:$0xff]  ;;  %v743_v50 = vld [vmem:[#allocation10 + $0xc8] sm:$0xff]  ;;  %v745_v52 = vld [vmem:[#allocation10 + $0xd8] sm:$0xff] }
 0x124   : > { %7540 = vmatpush1.bf16.msra.mxu1 %v7539_v33  ;;  %7600 = vmatpush1.bf16.msra.mxu0 %v7599_v32  ;;  %v7607_v49 = vpack.c.bf16 %v740_v48, %v736_v47  ;;  %v747_v51 = vld [vmem:[#allocation10 + $0xe8] sm:$0xff]  ;;  %v749_v54 = vld [vmem:[#allocation10 + $0xf8] sm:$0xff]  ;;  %v742_v55 = vld [vmem:[#allocation10 + $0xc0] sm:$0xff] }
 0x125   : > { %7602 = vmatprep.subr.bf16.mxu0 %v7601_v36  ;;  %7542 = vmatprep.subr.bf16.mxu1 %v7541_v41  ;;  %v7545_v53 = vpack.c.bf16 %v747_v51, %v743_v50  ;;  %v746_v56 = vld [vmem:[#allocation10 + $0xe0] sm:$0xff]  ;;  %v7609_v57 = vpack.c.bf16 %v749_v54, %v745_v52  ;;  %v744_v59 = vld [vmem:[#allocation10 + $0xd0] sm:$0xff]  ;;  %v751_v62 = vld [vmem:[#allocation10 + $0x108] sm:$0xff] }
 0x126   : > { %v7547_v58 = vpack.c.bf16 %v746_v56, %v742_v55  ;;  %v748_v60 = vld [vmem:[#allocation10 + $0xf0] sm:$0xff]  ;;  %v755_v63 = vld [vmem:[#allocation10 + $0x128] sm:$0xff]  ;;  %v753_v0 = vld [vmem:[#allocation10 + $0x118] sm:$0xff] }
 0x127   : > { %v7611_v61 = vpack.c.bf16 %v748_v60, %v744_v59  ;;  %v7549_v1 = vpack.c.bf16 %v755_v63, %v751_v62  ;;  %v757_v2 = vld [vmem:[#allocation10 + $0x138] sm:$0xff]  ;;  %v750_v3 = vld [vmem:[#allocation10 + $0x100] sm:$0xff]  ;;  %v752_v7 = vld [vmem:[#allocation10 + $0x110] sm:$0xff] }
 0x128   : > { %7604 = vmatpush1.bf16.msra.mxu0 %v7603_v37  ;;  %7544 = vmatpush1.bf16.msra.mxu1 %v7543_v46  ;;  %v754_v4 = vld [vmem:[#allocation10 + $0x120] sm:$0xff]  ;;  %v7613_v5 = vpack.c.bf16 %v757_v2, %v753_v0  ;;  %v756_v8 = vld [vmem:[#allocation10 + $0x130] sm:$0xff]  ;;  %v759_v10 = vld [vmem:[#allocation10 + $0x148] sm:$0xff] }
 0x129   : > { %7606 = vmatprep.subr.bf16.mxu0 %v7605_v45  ;;  %7546 = vmatprep.subr.bf16.mxu1 %v7545_v53  ;;  %v7551_v6 = vpack.c.bf16 %v754_v4, %v750_v3  ;;  %v7615_v9 = vpack.c.bf16 %v756_v8, %v752_v7  ;;  %v763_v11 = vld [vmem:[#allocation10 + $0x168] sm:$0xff]  ;;  %v761_v12 = vld [vmem:[#allocation10 + $0x158] sm:$0xff]  ;;  %v758_v15 = vld [vmem:[#allocation10 + $0x140] sm:$0xff] }
 0x12a   : > { %v7553_v13 = vpack.c.bf16 %v763_v11, %v759_v10  ;;  %v765_v14 = vld [vmem:[#allocation10 + $0x178] sm:$0xff]  ;;  %v762_v16 = vld [vmem:[#allocation10 + $0x160] sm:$0xff]  ;;  %v760_v19 = vld [vmem:[#allocation10 + $0x150] sm:$0xff] }
 0x12b   : > { %v7617_v17 = vpack.c.bf16 %v765_v14, %v761_v12  ;;  %v7555_v18 = vpack.c.bf16 %v762_v16, %v758_v15  ;;  %v764_v20 = vld [vmem:[#allocation10 + $0x170] sm:$0xff]  ;;  %v767_v22 = vld [vmem:[#allocation10 + $0x188] sm:$0xff]  ;;  %v769_v24 = vld [vmem:[#allocation10 + $0x198] sm:$0xff] }
 0x12c   : > { %7608 = vmatpush1.bf16.msra.mxu0 %v7607_v49  ;;  %7548 = vmatpush1.bf16.msra.mxu1 %v7547_v58  ;;  %v7619_v21 = vpack.c.bf16 %v764_v20, %v760_v19  ;;  %v771_v23 = vld [vmem:[#allocation10 + $0x1a8] sm:$0xff]  ;;  %v773_v26 = vld [vmem:[#allocation10 + $0x1b8] sm:$0xff]  ;;  %v766_v27 = vld [vmem:[#allocation10 + $0x180] sm:$0xff] }
 0x12d   : > { %7610 = vmatprep.subr.bf16.mxu0 %v7609_v57  ;;  %7550 = vmatprep.subr.bf16.mxu1 %v7549_v1  ;;  %v7557_v25 = vpack.c.bf16 %v771_v23, %v767_v22  ;;  %v770_v28 = vld [vmem:[#allocation10 + $0x1a0] sm:$0xff]  ;;  %v7621_v29 = vpack.c.bf16 %v773_v26, %v769_v24  ;;  %v768_v31 = vld [vmem:[#allocation10 + $0x190] sm:$0xff]  ;;  %v775_v34 = vld [vmem:[#allocation10 + $0x1c8] sm:$0xff] }
 0x12e   : > { %v7559_v30 = vpack.c.bf16 %v770_v28, %v766_v27  ;;  %v772_v32 = vld [vmem:[#allocation10 + $0x1b0] sm:$0xff]  ;;  %v779_v35 = vld [vmem:[#allocation10 + $0x1e8] sm:$0xff]  ;;  %v777_v37 = vld [vmem:[#allocation10 + $0x1d8] sm:$0xff] }
 0x12f   : > { %v7623_v33 = vpack.c.bf16 %v772_v32, %v768_v31  ;;  %v7561_v36 = vpack.c.bf16 %v779_v35, %v775_v34  ;;  %v781_v38 = vld [vmem:[#allocation10 + $0x1f8] sm:$0xff]  ;;  %v774_v39 = vld [vmem:[#allocation10 + $0x1c0] sm:$0xff]  ;;  %v776_v42 = vld [vmem:[#allocation10 + $0x1d0] sm:$0xff] }
 0x130   : > { %7612 = vmatpush1.bf16.msra.mxu0 %v7611_v61  ;;  %7552 = vmatpush1.bf16.msra.mxu1 %v7551_v6  ;;  %v7625_v40 = vpack.c.bf16 %v781_v38, %v777_v37  ;;  %v778_v41 = vld [vmem:[#allocation10 + $0x1e0] sm:$0xff]  ;;  %v780_v43 = vld [vmem:[#allocation10 + $0x1f0] sm:$0xff]  ;;  %v783_v46 = vld [vmem:[#allocation10 + $0x208] sm:$0xff] }
 0x131   : > { %7614 = vmatprep.subr.bf16.mxu0 %v7613_v5  ;;  %7554 = vmatprep.subr.bf16.mxu1 %v7553_v13  ;;  %v7563_v44 = vpack.c.bf16 %v778_v41, %v774_v39  ;;  %v7627_v45 = vpack.c.bf16 %v780_v43, %v776_v42  ;;  %v787_v47 = vld [vmem:[#allocation10 + $0x228] sm:$0xff]  ;;  %v785_v48 = vld [vmem:[#allocation10 + $0x218] sm:$0xff]  ;;  %v782_v51 = vld [vmem:[#allocation10 + $0x200] sm:$0xff] }
 0x132   : > { %v7565_v49 = vpack.c.bf16 %v787_v47, %v783_v46  ;;  %v789_v50 = vld [vmem:[#allocation10 + $0x238] sm:$0xff]  ;;  %v786_v52 = vld [vmem:[#allocation10 + $0x220] sm:$0xff]  ;;  %v784_v55 = vld [vmem:[#allocation10 + $0x210] sm:$0xff] }
 0x133   : > { %v7629_v53 = vpack.c.bf16 %v789_v50, %v785_v48  ;;  %v7567_v54 = vpack.c.bf16 %v786_v52, %v782_v51  ;;  %v788_v56 = vld [vmem:[#allocation10 + $0x230] sm:$0xff]  ;;  %v791_v58 = vld [vmem:[#allocation10 + $0x248] sm:$0xff]  ;;  %v793_v60 = vld [vmem:[#allocation10 + $0x258] sm:$0xff] }
 0x134   : > { %7616 = vmatpush1.bf16.msra.mxu0 %v7615_v9  ;;  %7556 = vmatpush1.bf16.msra.mxu1 %v7555_v18  ;;  %v7631_v57 = vpack.c.bf16 %v788_v56, %v784_v55  ;;  %v795_v59 = vld [vmem:[#allocation10 + $0x268] sm:$0xff]  ;;  %v797_v62 = vld [vmem:[#allocation10 + $0x278] sm:$0xff]  ;;  %v790_v63 = vld [vmem:[#allocation10 + $0x240] sm:$0xff] }
 0x135   : > { %7618 = vmatprep.subr.bf16.mxu0 %v7617_v17  ;;  %7558 = vmatprep.subr.bf16.mxu1 %v7557_v25  ;;  %v7569_v61 = vpack.c.bf16 %v795_v59, %v791_v58  ;;  %v794_v0 = vld [vmem:[#allocation10 + $0x260] sm:$0xff]  ;;  %v7633_v1 = vpack.c.bf16 %v797_v62, %v793_v60  ;;  %v792_v3 = vld [vmem:[#allocation10 + $0x250] sm:$0xff]  ;;  %v799_v6 = vld [vmem:[#allocation10 + $0x288] sm:$0xff] }
 0x136   : > { %v7571_v2 = vpack.c.bf16 %v794_v0, %v790_v63  ;;  %v796_v4 = vld [vmem:[#allocation10 + $0x270] sm:$0xff]  ;;  %v803_v7 = vld [vmem:[#allocation10 + $0x2a8] sm:$0xff]  ;;  %v801_v8 = vld [vmem:[#allocation10 + $0x298] sm:$0xff] }
 0x137   : > { %v7635_v5 = vpack.c.bf16 %v796_v4, %v792_v3  ;;  %v7573_v9 = vpack.c.bf16 %v803_v7, %v799_v6  ;;  %v805_v10 = vld [vmem:[#allocation10 + $0x2b8] sm:$0xff]  ;;  %v798_v11 = vld [vmem:[#allocation10 + $0x280] sm:$0xff]  ;;  %v800_v15 = vld [vmem:[#allocation10 + $0x290] sm:$0xff] }
 0x138   : > { %7620 = vmatpush1.bf16.msra.mxu0 %v7619_v21  ;;  %7560 = vmatpush1.bf16.msra.mxu1 %v7559_v30  ;;  %v802_v12 = vld [vmem:[#allocation10 + $0x2a0] sm:$0xff]  ;;  %v7637_v13 = vpack.c.bf16 %v805_v10, %v801_v8  ;;  %v804_v16 = vld [vmem:[#allocation10 + $0x2b0] sm:$0xff]  ;;  %v807_v18 = vld [vmem:[#allocation10 + $0x2c8] sm:$0xff] }
 0x139   : > { %7622 = vmatprep.subr.bf16.mxu0 %v7621_v29  ;;  %7562 = vmatprep.subr.bf16.mxu1 %v7561_v36  ;;  %v7575_v14 = vpack.c.bf16 %v802_v12, %v798_v11  ;;  %v7639_v17 = vpack.c.bf16 %v804_v16, %v800_v15  ;;  %v811_v19 = vld [vmem:[#allocation10 + $0x2e8] sm:$0xff]  ;;  %v809_v20 = vld [vmem:[#allocation10 + $0x2d8] sm:$0xff]  ;;  %v806_v23 = vld [vmem:[#allocation10 + $0x2c0] sm:$0xff] }
 0x13a   : > { %v7577_v21 = vpack.c.bf16 %v811_v19, %v807_v18  ;;  %v813_v22 = vld [vmem:[#allocation10 + $0x2f8] sm:$0xff]  ;;  %v810_v24 = vld [vmem:[#allocation10 + $0x2e0] sm:$0xff]  ;;  %v808_v27 = vld [vmem:[#allocation10 + $0x2d0] sm:$0xff] }
 0x13b   : > { %v7641_v25 = vpack.c.bf16 %v813_v22, %v809_v20  ;;  %v7579_v26 = vpack.c.bf16 %v810_v24, %v806_v23  ;;  %v812_v28 = vld [vmem:[#allocation10 + $0x2f0] sm:$0xff]  ;;  %v815_v30 = vld [vmem:[#allocation10 + $0x308] sm:$0xff]  ;;  %v817_v32 = vld [vmem:[#allocation10 + $0x318] sm:$0xff]  ;;  %v559_v20 = vlaneseq }
 0x13c   : > { %7624 = vmatpush1.bf16.msra.mxu0 %v7623_v33  ;;  %7564 = vmatpush1.bf16.msra.mxu1 %v7563_v44  ;;  %v7643_v29 = vpack.c.bf16 %v812_v28, %v808_v27  ;;  %v819_v31 = vld [vmem:[#allocation10 + $0x328] sm:$0xff]  ;;  %v821_v34 = vld [vmem:[#allocation10 + $0x338] sm:$0xff]  ;;  %v814_v35 = vld [vmem:[#allocation10 + $0x300] sm:$0xff] }
 0x13d   : > { %7626 = vmatprep.subr.bf16.mxu0 %v7625_v40  ;;  %7566 = vmatprep.subr.bf16.mxu1 %v7565_v49  ;;  %v7581_v33 = vpack.c.bf16 %v819_v31, %v815_v30  ;;  %v818_v36 = vld [vmem:[#allocation10 + $0x320] sm:$0xff]  ;;  %v7645_v37 = vpack.c.bf16 %v821_v34, %v817_v32  ;;  %v816_v39 = vld [vmem:[#allocation10 + $0x310] sm:$0xff]  ;;  %v823_v42 = vld [vmem:[#allocation10 + $0x348] sm:$0xff] }
 0x13e   : > { %v7583_v38 = vpack.c.bf16 %v818_v36, %v814_v35  ;;  %v820_v40 = vld [vmem:[#allocation10 + $0x330] sm:$0xff]  ;;  %v827_v43 = vld [vmem:[#allocation10 + $0x368] sm:$0xff]  ;;  %v825_v44 = vld [vmem:[#allocation10 + $0x358] sm:$0xff] }
 0x13f   : > { %v7647_v41 = vpack.c.bf16 %v820_v40, %v816_v39  ;;  %v829_v46 = vld [vmem:[#allocation10 + $0x378] sm:$0xff]  ;;  %v822_v47 = vld [vmem:[#allocation10 + $0x340] sm:$0xff]  ;;  %v824_v51 = vld [vmem:[#allocation10 + $0x350] sm:$0xff] }
 0x140   : > { %7628 = vmatpush1.bf16.msra.mxu0 %v7627_v45  ;;  %7568 = vmatpush1.bf16.msra.mxu1 %v7567_v54  ;;  %v7585_v45 = vpack.c.bf16 %v827_v43, %v823_v42  ;;  %v826_v48 = vld [vmem:[#allocation10 + $0x360] sm:$0xff]  ;;  %v7649_v49 = vpack.c.bf16 %v829_v46, %v825_v44  ;;  %v828_v52 = vld [vmem:[#allocation10 + $0x370] sm:$0xff]  ;;  %v835_v55 = vld [vmem:[#allocation10 + $0x3a8] sm:$0xff] }
 0x141   : > { %7630 = vmatprep.subr.bf16.mxu0 %v7629_v53  ;;  %7570 = vmatprep.subr.bf16.mxu1 %v7569_v61  ;;  %v7587_v50 = vpack.c.bf16 %v826_v48, %v822_v47  ;;  %v831_v53 = vld [vmem:[#allocation10 + $0x388] sm:$0xff]  ;;  %v7651_v54 = vpack.c.bf16 %v828_v52, %v824_v51  ;;  %v833_v56 = vld [vmem:[#allocation10 + $0x398] sm:$0xff]  ;;  %v830_v60 = vld [vmem:[#allocation10 + $0x380] sm:$0xff] }
 0x142   : > { %v7589_v58 = vpack.c.bf16 %v835_v55, %v831_v53  ;;  %v834_v61 = vld [vmem:[#allocation10 + $0x3a0] sm:$0xff]  ;;  %v832_v62 = vld [vmem:[#allocation10 + $0x390] sm:$0xff]  ;;  %v839_v0 = vld [vmem:[#allocation10 + $0x3c8] sm:$0xff] }
 0x143   : > { %v836_v63 = vld [vmem:[#allocation10 + $0x3b0] sm:$0xff]  ;;  %v841_v4 = vld [vmem:[#allocation10 + $0x3d8] sm:$0xff]  ;;  %v838_v6 = vld [vmem:[#allocation10 + $0x3c0] sm:$0xff] }
 0x144   : > { %7632 = vmatpush1.bf16.msra.mxu0 %v7631_v57  ;;  %7572 = vmatpush1.bf16.msra.mxu1 %v7571_v2  ;;  %v837_v57 = vld [vmem:[#allocation10 + $0x3b8] sm:$0xff]  ;;  %v7591_v2 = vpack.c.bf16 %v834_v61, %v830_v60  ;;  %v7655_v3 = vpack.c.bf16 %v836_v63, %v832_v62  ;;  %v840_v10 = vld [vmem:[#allocation10 + $0x3d0] sm:$0xff] }
 0x145   : > { %7634 = vmatprep.subr.bf16.mxu0 %v7633_v1  ;;  %7574 = vmatprep.subr.bf16.mxu1 %v7573_v9  ;;  %v7653_v59 = vpack.c.bf16 %v837_v57, %v833_v56  ;;  %v843_v1 = vld [vmem:[#allocation10 + $0x3e8] sm:$0xff]  ;;  %v842_v9 = vld [vmem:[#allocation10 + $0x3e0] sm:$0xff]  ;;  %v844_v11 = vld [vmem:[#allocation10 + $0x3f0] sm:$0xff] }
 0x146   : > { %v7593_v7 = vpack.c.bf16 %v843_v1, %v839_v0  ;;  %v7595_v12 = vpack.c.bf16 %v842_v9, %v838_v6  ;;  %v1023_v15 = vld [vmem:[#allocation13 + $0x48] sm:$0xff]  ;;  %v1017_v16 = vld [vmem:[#allocation13 + $0x18] sm:$0xff]  ;;  %v557_v22 = vld [vmem:[#allocation6] sm:$0x3] }
 0x147   : > { %v1025_v18 = vld [vmem:[#allocation13 + $0x58] sm:$0xff] }
 0x148   : > { %7636 = vmatpush1.bf16.msra.mxu0 %v7635_v5  ;;  %7576 = vmatpush1.bf16.msra.mxu1 %v7575_v14  ;;  %v845_v5 = vld [vmem:[#allocation10 + $0x3f8] sm:$0xff]  ;;  %v1015_v14 = vld [vmem:[#allocation13 + $0x8] sm:$0xff]  ;;  %v7789_v19 = vpack.c.bf16 %v1025_v18, %v1017_v16 }
 0x149   : > { %7638 = vmatprep.subr.bf16.mxu0 %v7637_v13  ;;  %7578 = vmatprep.subr.bf16.mxu1 %v7577_v21  ;;  %v7657_v8 = vpack.c.bf16 %v845_v5, %v841_v4  ;;  %v7659_v13 = vpack.c.bf16 %v844_v11, %v840_v10  ;;  %v9996_v21 = vshrl.u32 %v559_v20, 7  ;;  %v704_v9 = vld [vmem:[#allocation9] sm:$0x3]  ;;  %v1039_v20 = vld [vmem:[#allocation13 + $0xc8] sm:$0xff] }
 0x14b   : > { %v9999_v23 = vsub.s32 0, %v9996_v21  ;;  %v10002_v24 = vsub.s32 1, %v9996_v21 }
 0x14c   : > { %7640 = vmatpush1.bf16.msra.mxu0 %v7639_v17  ;;  %7580 = vmatpush1.bf16.msra.mxu1 %v7579_v26  ;;  %v7661_v17 = vpack.c.bf16 %v1023_v15, %v1015_v14  ;;  %v1016_v14 = vld [vmem:[#allocation13 + $0x10] sm:$0xff] }
 0x14d   : > { %7642 = vmatprep.subr.bf16.mxu0 %v7641_v25  ;;  %7582 = vmatprep.subr.bf16.mxu1 %v7581_v33  ;;  %v562_v25 = vrot.slane %v557_v22, %v9999_v23  ;;  %v566_v26 = vrot.slane %v557_v22, %v10002_v24  ;;  %v1024_v15 = vld [vmem:[#allocation13 + $0x50] sm:$0xff]  ;;  %v713_v18 = vrot.slane %v704_v9, %v10002_v24  ;;  %v1033_v22 = vld [vmem:[#allocation13 + $0x98] sm:$0xff] }
 0x150   : > { %7644 = vmatpush1.bf16.msra.mxu0 %v7643_v29  ;;  %7584 = vmatpush1.bf16.msra.mxu1 %v7583_v38 }
 0x151   : > { %7646 = vmatprep.subr.bf16.mxu0 %v7645_v37  ;;  %7586 = vmatprep.subr.bf16.mxu1 %v7585_v45 }
 0x154   : > { %7648 = vmatpush1.bf16.msra.mxu0 %v7647_v41  ;;  %7588 = vmatpush1.bf16.msra.mxu1 %v7587_v50 }
 0x155   : > { %7650 = vmatprep.subr.bf16.mxu0 %v7649_v49  ;;  %7590 = vmatprep.subr.bf16.mxu1 %v7589_v58 }
 0x158   : > { %7652 = vmatpush1.bf16.msra.mxu0 %v7651_v54  ;;  %7592 = vmatpush1.bf16.msra.mxu1 %v7591_v2 }
 0x159   : > { %7654 = vmatprep.subr.bf16.mxu0 %v7653_v59  ;;  %7594 = vmatprep.subr.bf16.mxu1 %v7593_v7  ;;  %v684_v7 = vld [vmem:[#allocation7] sm:$0x3] }
 0x15a   : > { %v693_v10 = vrot.slane %v684_v7, %v10002_v24 }
 0x15c   : > { %7656 = vmatpush1.bf16.msra.mxu0 %v7655_v3  ;;  %7596 = vmatpush1.bf16.msra.mxu1 %v7595_v12  ;;  %v1014_v12 = vld [vmem:[#allocation13] sm:$0xff] }
 0x15d   : > { %7658 = vmatprep.subr.bf16.mxu0 %v7657_v8  ;;  %7662 = vmatprep.subr.bf16.mxu1 %v7661_v17  ;;  %v689_v8 = vrot.slane %v684_v7, %v9999_v23  ;;  %v1088_v7 = vld [vmem:[#allocation13 + $0x250] sm:$0xff] }
 0x160   : > { %7660 = vmatpush1.bf16.msra.mxu0 %v7659_v13  ;;  %v1022_v13 = vld [vmem:[#allocation13 + $0x40] sm:$0xff] }
 0x161   : > { %7790 = vmatprep.subr.bf16.mxu0 %v7789_v19  ;;  %v1031_v19 = vld [vmem:[#allocation13 + $0x88] sm:$0xff] }
 0x1f6   : > { %v639_v27 = vpop.f32.mrb[0].mxu0 }
 0x1f7   : > { %v640_v28 = vadd.f32 %v639_v27, %v562_v25  ;;  %v641_v29 = vpop.f32.mrb[1].mxu0  ;;  %v1041_v25 = vld [vmem:[#allocation13 + $0xd8] sm:$0xff]  ;;  %v709_v27 = vrot.slane %v704_v9, %v9999_v23 }
 0x1f8   : > { %v642_v30 = vadd.f32 %v641_v29, %v566_v26 }
 0x1f9   : > { %v644_v31 = vmax.f32 %v640_v28, 0.0 }
 0x1fa   : > { %v645_v32 = vmax.f32 %v642_v30, 0.0  ;;  %v1030_v30 = vld [vmem:[#allocation13 + $0x80] sm:$0xff] }
 0x1fb   : > { %v647_v33 = vsel %vm646_vm1, %v644_v31, 0.0 }
 0x1fc   : > { %v648_v34 = vrot.slane %v647_v33, 4  ;;  %v654_v35 = vsel %vm646_vm1, %v645_v32, 0.0 }
 0x1fd   : > { %v655_v36 = vrot.slane %v654_v35, 4 }
 0x1fe   : > { %v649_v37 = vadd.f32 %v648_v34, %v647_v33  ;;  %v1040_v33 = vld [vmem:[#allocation13 + $0xd0] sm:$0xff] }
 0x1ff   : > { %v656_v38 = vadd.f32 %v655_v36, %v654_v35  ;;  %v7663_v35 = vpack.c.bf16 %v1022_v13, %v1014_v12  ;;  %v7791_v36 = vpack.c.bf16 %v1024_v15, %v1016_v14  ;;  %v1097_v12 = vld [vmem:[#allocation13 + $0x298] sm:$0xff] }
 0x200   : > { %v650_v39 = vrot.slane %v649_v37, 2  ;;  %v1105_v13 = vld [vmem:[#allocation13 + $0x2d8] sm:$0xff] }
 0x201   : > { %v657_v40 = vrot.slane %v656_v38, 2 }
 0x202   : > { %v651_v41 = vadd.f32 %v650_v39, %v649_v37  ;;  %v1047_v37 = vld [vmem:[#allocation13 + $0x108] sm:$0xff]  ;;  %v1049_v39 = vld [vmem:[#allocation13 + $0x118] sm:$0xff] }
 0x203   : > { %v658_v42 = vadd.f32 %v657_v40, %v656_v38  ;;  %v1055_v38 = vld [vmem:[#allocation13 + $0x148] sm:$0xff]  ;;  %v1057_v40 = vld [vmem:[#allocation13 + $0x158] sm:$0xff] }
 0x204   : > { %v652_v43 = vrot.slane %v651_v41, 1 }
 0x205   : > { %v659_v44 = vrot.slane %v658_v42, 1 }
 0x206   : > { %v653_v45 = vadd.f32 %v652_v43, %v651_v41  ;;  %v7793_v43 = vpack.c.bf16 %v1041_v25, %v1033_v22  ;;  %v1111_v25 = vld [vmem:[#allocation13 + $0x308] sm:$0xff] }
 0x207   : > { %v660_v46 = vadd.f32 %v659_v44, %v658_v42  ;;  %v7665_v42 = vpack.c.bf16 %v1039_v20, %v1031_v19  ;;  %v1046_v44 = vld [vmem:[#allocation13 + $0x100] sm:$0xff]  ;;  %v1104_v19 = vld [vmem:[#allocation13 + $0x2d0] sm:$0xff] }
 0x208   : > { %v662_v47 = vmul.f32 0.5, %v653_v45  ;;  %v1054_v45 = vld [vmem:[#allocation13 + $0x140] sm:$0xff] }
 0x209   : > { %v663_v48 = vmul.f32 0.5, %v660_v46  ;;  %v1048_v46 = vld [vmem:[#allocation13 + $0x110] sm:$0xff] }
 0x20a   : > { %v664_v49 = vsub.f32 %v644_v31, %v662_v47  ;;  %v1038_v31 = vld [vmem:[#allocation13 + $0xc0] sm:$0xff]  ;;  %v1056_v47 = vld [vmem:[#allocation13 + $0x150] sm:$0xff] }
 0x20b   : > { %v665_v50 = vsub.f32 %v645_v32, %v663_v48  ;;  %v1032_v32 = vld [vmem:[#allocation13 + $0x90] sm:$0xff]  ;;  %v7667_v48 = vpack.c.bf16 %v1038_v31, %v1030_v30  ;;  %v7809_v30 = vpack.c.bf16 %v1105_v13, %v1097_v12  ;;  %v1110_v31 = vld [vmem:[#allocation13 + $0x300] sm:$0xff]  ;;  %v1183_v12 = vld [vmem:[#allocation13 + $0x548] sm:$0xff] }
 0x20c   : > { %v666_v51 = vmul.f32 %v664_v49, %v664_v49  ;;  %v696_v11 = vmul.f32 %v689_v8, %v664_v49  ;;  %v7795_v49 = vpack.c.bf16 %v1040_v33, %v1032_v32  ;;  %v1118_v32 = vld [vmem:[#allocation13 + $0x340] sm:$0xff]  ;;  %v1112_v33 = vld [vmem:[#allocation13 + $0x310] sm:$0xff]  ;;  %v1177_v13 = vld [vmem:[#allocation13 + $0x518] sm:$0xff] }
 0x20d   : > { %v667_v52 = vmul.f32 %v665_v50, %v665_v50  ;;  %v697_v17 = vmul.f32 %v693_v10, %v665_v50  ;;  %v1063_v50 = vld [vmem:[#allocation13 + $0x188] sm:$0xff] }
 0x20e   : > { %v668_v53 = vsel %vm646_vm1, %v666_v51, 0.0  ;;  %v1071_v51 = vld [vmem:[#allocation13 + $0x1c8] sm:$0xff] }
 0x20f   : > { %v669_v54 = vrot.slane %v668_v53, 4  ;;  %v675_v55 = vsel %vm646_vm1, %v667_v52, 0.0  ;;  %v1065_v52 = vld [vmem:[#allocation13 + $0x198] sm:$0xff]  ;;  %v1095_v10 = vld [vmem:[#allocation13 + $0x288] sm:$0xff] }
 0x210   : > { %v676_v56 = vrot.slane %v675_v55, 4 }
 0x211   : > { %v670_v57 = vadd.f32 %v669_v54, %v668_v53  ;;  %v1073_v53 = vld [vmem:[#allocation13 + $0x1d8] sm:$0xff]  ;;  %v7669_v54 = vpack.c.bf16 %v1055_v38, %v1047_v37  ;;  %v1127_v37 = vld [vmem:[#allocation13 + $0x388] sm:$0xff] }
 0x212   : > { %v677_v58 = vadd.f32 %v676_v56, %v675_v55  ;;  %v7797_v55 = vpack.c.bf16 %v1057_v40, %v1049_v39  ;;  %v1062_v56 = vld [vmem:[#allocation13 + $0x180] sm:$0xff]  ;;  %v1135_v38 = vld [vmem:[#allocation13 + $0x3c8] sm:$0xff]  ;;  %v1129_v39 = vld [vmem:[#allocation13 + $0x398] sm:$0xff] }
 0x213   : > { %v671_v59 = vrot.slane %v670_v57, 2  ;;  %v1137_v40 = vld [vmem:[#allocation13 + $0x3d8] sm:$0xff] }
 0x214   : > { %v678_v60 = vrot.slane %v677_v58, 2 }
 0x215   : > { %v672_v61 = vadd.f32 %v671_v59, %v670_v57  ;;  %v1070_v57 = vld [vmem:[#allocation13 + $0x1c0] sm:$0xff]  ;;  %v1072_v59 = vld [vmem:[#allocation13 + $0x1d0] sm:$0xff] }
 0x216   : > { %v679_v62 = vadd.f32 %v678_v60, %v677_v58  ;;  %v1064_v58 = vld [vmem:[#allocation13 + $0x190] sm:$0xff]  ;;  %v7671_v60 = vpack.c.bf16 %v1054_v45, %v1046_v44  ;;  %v7675_v8 = vpack.c.bf16 %v1070_v57, %v1062_v56  ;;  %v7687_v44 = vpack.c.bf16 %v1118_v32, %v1110_v31  ;;  %v1142_v57 = vld [vmem:[#allocation13 + $0x400] sm:$0xff] }
 0x217   : > { %v673_v63 = vrot.slane %v672_v61, 1  ;;  %v7803_v9 = vpack.c.bf16 %v1072_v59, %v1064_v58  ;;  %v1150_v58 = vld [vmem:[#allocation13 + $0x440] sm:$0xff] }
 0x218   : > { %v680_v0 = vrot.slane %v679_v62, 1  ;;  %v1190_v32 = vld [vmem:[#allocation13 + $0x580] sm:$0xff] }
 0x219   : > { %v674_v1 = vadd.f32 %v673_v63, %v672_v61  ;;  %v7799_v61 = vpack.c.bf16 %v1056_v47, %v1048_v46  ;;  %v1087_v63 = vld [vmem:[#allocation13 + $0x248] sm:$0xff]  ;;  %v1134_v46 = vld [vmem:[#allocation13 + $0x3c0] sm:$0xff]  ;;  %v7689_v47 = vpack.c.bf16 %v1135_v38, %v1127_v37  ;;  %v1200_v37 = vld [vmem:[#allocation13 + $0x5d0] sm:$0xff] }
 0x21a   : > { %v681_v2 = vadd.f32 %v680_v0, %v679_v62  ;;  %v1079_v62 = vld [vmem:[#allocation13 + $0x208] sm:$0xff]  ;;  %v1081_v0 = vld [vmem:[#allocation13 + $0x218] sm:$0xff] }
 0x21b   : > { %v682_v3 = vmul.f32 0.5, %v674_v1  ;;  %v1089_v1 = vld [vmem:[#allocation13 + $0x258] sm:$0xff]  ;;  %v7677_v14 = vpack.c.bf16 %v1087_v63, %v1079_v62  ;;  %v1152_v62 = vld [vmem:[#allocation13 + $0x450] sm:$0xff]  ;;  %v1159_v63 = vld [vmem:[#allocation13 + $0x488] sm:$0xff] }
 0x21c   : > { %v683_v4 = vmul.f32 0.5, %v681_v2  ;;  %v7673_v2 = vpack.c.bf16 %v1071_v51, %v1063_v50  ;;  %v7805_v15 = vpack.c.bf16 %v1089_v1, %v1081_v0  ;;  %v1136_v50 = vld [vmem:[#allocation13 + $0x3d0] sm:$0xff]  ;;  %v1143_v51 = vld [vmem:[#allocation13 + $0x408] sm:$0xff]  ;;  %v1161_v1 = vld [vmem:[#allocation13 + $0x498] sm:$0xff] }
 0x21d   : > { %v698_v5 = vadd.f32 1e-05, %v682_v3  ;;  %v7801_v3 = vpack.c.bf16 %v1073_v53, %v1065_v52  ;;  %v1151_v52 = vld [vmem:[#allocation13 + $0x448] sm:$0xff]  ;;  %v1145_v53 = vld [vmem:[#allocation13 + $0x418] sm:$0xff] }
 0x21e   : > { %v699_v6 = vadd.f32 1e-05, %v683_v4  ;;  %v1078_v4 = vld [vmem:[#allocation13 + $0x200] sm:$0xff]  ;;  %v7693_v59 = vpack.c.bf16 %v1151_v52, %v1143_v51  ;;  %v1167_v0 = vld [vmem:[#allocation13 + $0x4c8] sm:$0xff]  ;;  %v1225_v52 = vld [vmem:[#allocation13 + $0x698] sm:$0xff] }
 0x21f   : > { %9220 = vrsqrt.f32 %v698_v5  ;;  %v1086_v5 = vld [vmem:[#allocation13 + $0x240] sm:$0xff]  ;;  %v1207_v38 = vld [vmem:[#allocation13 + $0x608] sm:$0xff] }
 0x220   : > { %9222 = vrsqrt.f32 %v699_v6  ;;  %v1080_v6 = vld [vmem:[#allocation13 + $0x210] sm:$0xff]  ;;  %v7679_v20 = vpack.c.bf16 %v1086_v5, %v1078_v4  ;;  %v1158_v5 = vld [vmem:[#allocation13 + $0x480] sm:$0xff]  ;;  %v1231_v51 = vld [vmem:[#allocation13 + $0x6c8] sm:$0xff] }
 0x221   : > { %v7807_v22 = vpack.c.bf16 %v1088_v7, %v1080_v6  ;;  %v1166_v6 = vld [vmem:[#allocation13 + $0x4c0] sm:$0xff]  ;;  %v7697_v7 = vpack.c.bf16 %v1167_v0, %v1159_v63  ;;  %v1247_v63 = vld [vmem:[#allocation13 + $0x748] sm:$0xff]  ;;  %v1241_v0 = vld [vmem:[#allocation13 + $0x718] sm:$0xff] }
 0x229   : > { %v9221_v16 = vpop.eup %9220 }
 0x22a   : > { %v9223_v26 = vpop.eup %9222  ;;  %v702_v28 = vmul.f32 %v9221_v16, %v696_v11  ;;  %v1103_v11 = vld [vmem:[#allocation13 + $0x2c8] sm:$0xff]  ;;  %v1094_v16 = vld [vmem:[#allocation13 + $0x280] sm:$0xff] }
 0x22b   : > { %v703_v29 = vmul.f32 %v9223_v26, %v697_v17  ;;  %v1102_v17 = vld [vmem:[#allocation13 + $0x2c0] sm:$0xff]  ;;  %v1119_v26 = vld [vmem:[#allocation13 + $0x348] sm:$0xff] }
 0x22c   : > { %v716_v41 = vadd.f32 %v709_v27, %v702_v28  ;;  %v1113_v27 = vld [vmem:[#allocation13 + $0x318] sm:$0xff] }
 0x22d   : > { %v717_v34 = vadd.f32 %v713_v18, %v703_v29  ;;  %v1096_v18 = vld [vmem:[#allocation13 + $0x290] sm:$0xff]  ;;  %v1121_v28 = vld [vmem:[#allocation13 + $0x358] sm:$0xff]  ;;  %v7681_v29 = vpack.c.bf16 %v1103_v11, %v1095_v10  ;;  %v1175_v11 = vld [vmem:[#allocation13 + $0x508] sm:$0xff] }
 0x22e   : > { %v1168_v10 = vld [vmem:[#allocation13 + $0x4d0] sm:$0xff] }
 0x22f   : > { %932 = vmatprep.mubr.f32.mxu1 %v717_v34  ;;  %1003 = vmatprep.mubr.f32.mxu0 %v717_v34  ;;  %v1120_v34 = vld [vmem:[#allocation13 + $0x350] sm:$0xff] }
 0x230   : > { %933 = vmatmul.mubr.f32.vlgmr.msra.gmra.mrb[0].mxu1 %v716_v41  ;;  %1004 = vmatmul.mubr.f32.vlgmr.msra.gmra.mrb[2].mxu0 %v716_v41  ;;  %v7685_v41 = vpack.c.bf16 %v1119_v26, %v1111_v25  ;;  %v7815_v45 = vpack.c.bf16 %v1120_v34, %v1112_v33  ;;  %v1184_v25 = vld [vmem:[#allocation13 + $0x550] sm:$0xff]  ;;  %v1191_v26 = vld [vmem:[#allocation13 + $0x588] sm:$0xff]  ;;  %v1198_v33 = vld [vmem:[#allocation13 + $0x5c0] sm:$0xff] }
 0x231   : > { %7664 = vmatpush1.bf16.msra.mxu1 %v7663_v35  ;;  %7792 = vmatpush1.bf16.msra.mxu0 %v7791_v36  ;;  %v7683_v35 = vpack.c.bf16 %v1102_v17, %v1094_v16  ;;  %v7811_v36 = vpack.c.bf16 %v1104_v19, %v1096_v18  ;;  %v1174_v17 = vld [vmem:[#allocation13 + $0x500] sm:$0xff]  ;;  %v7701_v19 = vpack.c.bf16 %v1183_v12, %v1175_v11  ;;  %v1255_v12 = vld [vmem:[#allocation13 + $0x788] sm:$0xff] }
 0x232   : > { %7666 = vmatprep.subr.bf16.mxu1 %v7665_v42  ;;  %7794 = vmatprep.subr.bf16.mxu0 %v7793_v43  ;;  %v7813_v42 = vpack.c.bf16 %v1121_v28, %v1113_v27  ;;  %v1126_v43 = vld [vmem:[#allocation13 + $0x380] sm:$0xff]  ;;  %v1199_v27 = vld [vmem:[#allocation13 + $0x5c8] sm:$0xff]  ;;  %v1193_v28 = vld [vmem:[#allocation13 + $0x598] sm:$0xff] }
 0x233   : > { %v1182_v18 = vld [vmem:[#allocation13 + $0x540] sm:$0xff]  ;;  %v7705_v34 = vpack.c.bf16 %v1199_v27, %v1191_v26  ;;  %v1271_v27 = vld [vmem:[#allocation13 + $0x808] sm:$0xff] }
 0x235   : > { %7668 = vmatpush1.bf16.msra.mxu1 %v7667_v48  ;;  %7796 = vmatpush1.bf16.msra.mxu0 %v7795_v49  ;;  %v7817_v48 = vpack.c.bf16 %v1137_v40, %v1129_v39  ;;  %v1128_v49 = vld [vmem:[#allocation13 + $0x390] sm:$0xff]  ;;  %v1215_v39 = vld [vmem:[#allocation13 + $0x648] sm:$0xff]  ;;  %v1209_v40 = vld [vmem:[#allocation13 + $0x618] sm:$0xff] }
 0x236   : > { %7670 = vmatprep.subr.bf16.mxu1 %v7669_v54  ;;  %7798 = vmatprep.subr.bf16.mxu0 %v7797_v55  ;;  %v1153_v54 = vld [vmem:[#allocation13 + $0x458] sm:$0xff]  ;;  %v7691_v55 = vpack.c.bf16 %v1134_v46, %v1126_v43  ;;  %v7819_v56 = vpack.c.bf16 %v1136_v50, %v1128_v49  ;;  %v7709_v46 = vpack.c.bf16 %v1215_v39, %v1207_v38  ;;  %v1216_v49 = vld [vmem:[#allocation13 + $0x650] sm:$0xff]  ;;  %v1223_v50 = vld [vmem:[#allocation13 + $0x688] sm:$0xff] }
 0x239   : > { %7672 = vmatpush1.bf16.msra.mxu1 %v7671_v60  ;;  %7800 = vmatpush1.bf16.msra.mxu0 %v7799_v61  ;;  %v7821_v60 = vpack.c.bf16 %v1153_v54, %v1145_v53  ;;  %v1144_v61 = vld [vmem:[#allocation13 + $0x410] sm:$0xff]  ;;  %v1233_v53 = vld [vmem:[#allocation13 + $0x6d8] sm:$0xff] }
 0x23a   : > { %7674 = vmatprep.subr.bf16.mxu1 %v7673_v2  ;;  %7802 = vmatprep.subr.bf16.mxu0 %v7801_v3  ;;  %v1169_v2 = vld [vmem:[#allocation13 + $0x4d8] sm:$0xff]  ;;  %v7695_v3 = vpack.c.bf16 %v1150_v58, %v1142_v57  ;;  %v7823_v4 = vpack.c.bf16 %v1152_v62, %v1144_v61  ;;  %v1230_v57 = vld [vmem:[#allocation13 + $0x6c0] sm:$0xff]  ;;  %v7713_v58 = vpack.c.bf16 %v1231_v51, %v1223_v50  ;;  %v1232_v61 = vld [vmem:[#allocation13 + $0x6d0] sm:$0xff] }
 0x23b   : > { %v1239_v62 = vld [vmem:[#allocation13 + $0x708] sm:$0xff]  ;;  %v1289_v51 = vld [vmem:[#allocation13 + $0x898] sm:$0xff] }
 0x23c   : > { %v1295_v50 = vld [vmem:[#allocation13 + $0x8c8] sm:$0xff] }
 0x23d   : > { %7676 = vmatpush1.bf16.msra.mxu1 %v7675_v8  ;;  %7804 = vmatpush1.bf16.msra.mxu0 %v7803_v9  ;;  %v7825_v8 = vpack.c.bf16 %v1169_v2, %v1161_v1  ;;  %v1160_v9 = vld [vmem:[#allocation13 + $0x490] sm:$0xff]  ;;  %v1249_v1 = vld [vmem:[#allocation13 + $0x758] sm:$0xff] }
 0x23e   : > { %7678 = vmatprep.subr.bf16.mxu1 %v7677_v14  ;;  %7806 = vmatprep.subr.bf16.mxu0 %v7805_v15  ;;  %v1185_v14 = vld [vmem:[#allocation13 + $0x558] sm:$0xff]  ;;  %v7699_v15 = vpack.c.bf16 %v1166_v6, %v1158_v5  ;;  %v7827_v16 = vpack.c.bf16 %v1168_v10, %v1160_v9  ;;  %v7717_v5 = vpack.c.bf16 %v1247_v63, %v1239_v62  ;;  %v1248_v9 = vld [vmem:[#allocation13 + $0x750] sm:$0xff] }
 0x23f   : > { %v7845_v6 = vpack.c.bf16 %v1249_v1, %v1241_v0  ;;  %v1311_v0 = vld [vmem:[#allocation13 + $0x948] sm:$0xff]  ;;  %v1305_v1 = vld [vmem:[#allocation13 + $0x918] sm:$0xff] }
 0x241   : > { %7680 = vmatpush1.bf16.msra.mxu1 %v7679_v20  ;;  %7808 = vmatpush1.bf16.msra.mxu0 %v7807_v22  ;;  %v7829_v20 = vpack.c.bf16 %v1185_v14, %v1177_v13  ;;  %v1176_v22 = vld [vmem:[#allocation13 + $0x510] sm:$0xff]  ;;  %v1263_v13 = vld [vmem:[#allocation13 + $0x7c8] sm:$0xff]  ;;  %v1257_v14 = vld [vmem:[#allocation13 + $0x798] sm:$0xff] }
 0x242   : > { %7682 = vmatprep.subr.bf16.mxu1 %v7681_v29  ;;  %7810 = vmatprep.subr.bf16.mxu0 %v7809_v30  ;;  %v1201_v29 = vld [vmem:[#allocation13 + $0x5d8] sm:$0xff]  ;;  %v7703_v30 = vpack.c.bf16 %v1182_v18, %v1174_v17  ;;  %v7831_v31 = vpack.c.bf16 %v1184_v25, %v1176_v22  ;;  %v1254_v17 = vld [vmem:[#allocation13 + $0x780] sm:$0xff]  ;;  %v1256_v22 = vld [vmem:[#allocation13 + $0x790] sm:$0xff] }
 0x243   : > { %v1262_v18 = vld [vmem:[#allocation13 + $0x7c0] sm:$0xff]  ;;  %v1264_v25 = vld [vmem:[#allocation13 + $0x7d0] sm:$0xff] }
 0x244   : > { %v7851_v26 = vpack.c.bf16 %v1264_v25, %v1256_v22  ;;  %v1320_v25 = vld [vmem:[#allocation13 + $0x990] sm:$0xff] }
 0x245   : > { %7684 = vmatpush1.bf16.msra.mxu1 %v7683_v35  ;;  %7812 = vmatpush1.bf16.msra.mxu0 %v7811_v36  ;;  %v7833_v35 = vpack.c.bf16 %v1201_v29, %v1193_v28  ;;  %v1192_v36 = vld [vmem:[#allocation13 + $0x590] sm:$0xff]  ;;  %v1279_v28 = vld [vmem:[#allocation13 + $0x848] sm:$0xff]  ;;  %v1273_v29 = vld [vmem:[#allocation13 + $0x818] sm:$0xff] }
 0x246   : > { %7686 = vmatprep.subr.bf16.mxu1 %v7685_v41  ;;  %7814 = vmatprep.subr.bf16.mxu0 %v7813_v42  ;;  %v1217_v41 = vld [vmem:[#allocation13 + $0x658] sm:$0xff]  ;;  %v7707_v42 = vpack.c.bf16 %v1198_v33, %v1190_v32  ;;  %v7835_v43 = vpack.c.bf16 %v1200_v37, %v1192_v36 }
 0x247   : > { %v10014_v33 = vld [vmem:[#allocation12] sm:$0xf] }
 0x248   : > { %v855_v36 = vrot.slane %v10014_v33, %v10002_v24 }
 0x249   : > { %7688 = vmatpush1.bf16.msra.mxu1 %v7687_v44  ;;  %7816 = vmatpush1.bf16.msra.mxu0 %v7815_v45  ;;  %v1206_v44 = vld [vmem:[#allocation13 + $0x600] sm:$0xff] }
 0x24a   : > { %7690 = vmatprep.subr.bf16.mxu1 %v7689_v47  ;;  %7818 = vmatprep.subr.bf16.mxu0 %v7817_v48  ;;  %v1214_v45 = vld [vmem:[#allocation13 + $0x640] sm:$0xff]  ;;  %v7837_v47 = vpack.c.bf16 %v1217_v41, %v1209_v40  ;;  %v1208_v48 = vld [vmem:[#allocation13 + $0x610] sm:$0xff] }
 0x24b   : > { %v7711_v54 = vpack.c.bf16 %v1214_v45, %v1206_v44  ;;  %v1270_v40 = vld [vmem:[#allocation13 + $0x800] sm:$0xff]  ;;  %v1272_v45 = vld [vmem:[#allocation13 + $0x810] sm:$0xff] }
 0x24c   : > { %v1278_v44 = vld [vmem:[#allocation13 + $0x840] sm:$0xff] }
 0x24d   : > { %7692 = vmatpush1.bf16.msra.mxu1 %v7691_v55  ;;  %7820 = vmatpush1.bf16.msra.mxu0 %v7819_v56  ;;  %v7839_v55 = vpack.c.bf16 %v1216_v49, %v1208_v48  ;;  %v1222_v56 = vld [vmem:[#allocation13 + $0x680] sm:$0xff]  ;;  %v1287_v48 = vld [vmem:[#allocation13 + $0x888] sm:$0xff] }
 0x24e   : > { %7694 = vmatprep.subr.bf16.mxu1 %v7693_v59  ;;  %7822 = vmatprep.subr.bf16.mxu0 %v7821_v60  ;;  %v7841_v59 = vpack.c.bf16 %v1233_v53, %v1225_v52  ;;  %v1224_v60 = vld [vmem:[#allocation13 + $0x690] sm:$0xff]  ;;  %v7715_v2 = vpack.c.bf16 %v1230_v57, %v1222_v56  ;;  %v1297_v52 = vld [vmem:[#allocation13 + $0x8d8] sm:$0xff]  ;;  %v1286_v56 = vld [vmem:[#allocation13 + $0x880] sm:$0xff]  ;;  %v7729_v62 = vpack.c.bf16 %v1295_v50, %v1287_v48 }
 0x24f   : > { %v1294_v57 = vld [vmem:[#allocation13 + $0x8c0] sm:$0xff]  ;;  %v7857_v63 = vpack.c.bf16 %v1297_v52, %v1289_v51  ;;  %v1352_v52 = vld [vmem:[#allocation13 + $0xa90] sm:$0xff] }
 0x250   : > { %v1350_v48 = vld [vmem:[#allocation13 + $0xa80] sm:$0xff] }
 0x251   : > { %7696 = vmatpush1.bf16.msra.mxu1 %v7695_v3  ;;  %7824 = vmatpush1.bf16.msra.mxu0 %v7823_v4  ;;  %v7843_v3 = vpack.c.bf16 %v1232_v61, %v1224_v60  ;;  %v1238_v4 = vld [vmem:[#allocation13 + $0x700] sm:$0xff]  ;;  %v1296_v60 = vld [vmem:[#allocation13 + $0x8d0] sm:$0xff]  ;;  %v1303_v61 = vld [vmem:[#allocation13 + $0x908] sm:$0xff] }
 0x252   : > { %7698 = vmatprep.subr.bf16.mxu1 %v7697_v7  ;;  %7826 = vmatprep.subr.bf16.mxu0 %v7825_v8  ;;  %v1246_v7 = vld [vmem:[#allocation13 + $0x740] sm:$0xff]  ;;  %v1240_v8 = vld [vmem:[#allocation13 + $0x710] sm:$0xff] }
 0x253   : > { %v7719_v10 = vpack.c.bf16 %v1246_v7, %v1238_v4  ;;  %v7847_v11 = vpack.c.bf16 %v1248_v9, %v1240_v8  ;;  %v7731_v4 = vpack.c.bf16 %v1294_v57, %v1286_v56  ;;  %v1310_v7 = vld [vmem:[#allocation13 + $0x940] sm:$0xff]  ;;  %v7733_v8 = vpack.c.bf16 %v1311_v0, %v1303_v61  ;;  %v1375_v56 = vld [vmem:[#allocation13 + $0xb48] sm:$0xff]  ;;  %v1369_v57 = vld [vmem:[#allocation13 + $0xb18] sm:$0xff] }
 0x255   : > { %7700 = vmatpush1.bf16.msra.mxu1 %v7699_v15  ;;  %7828 = vmatpush1.bf16.msra.mxu0 %v7827_v16  ;;  %v7721_v15 = vpack.c.bf16 %v1263_v13, %v1255_v12  ;;  %v1265_v16 = vld [vmem:[#allocation13 + $0x7d8] sm:$0xff]  ;;  %v1319_v12 = vld [vmem:[#allocation13 + $0x988] sm:$0xff] }
 0x256   : > { %7702 = vmatprep.subr.bf16.mxu1 %v7701_v19  ;;  %7830 = vmatprep.subr.bf16.mxu0 %v7829_v20  ;;  %v7849_v19 = vpack.c.bf16 %v1265_v16, %v1257_v14  ;;  %v7723_v20 = vpack.c.bf16 %v1262_v18, %v1254_v17  ;;  %v1327_v13 = vld [vmem:[#allocation13 + $0x9c8] sm:$0xff]  ;;  %v1321_v14 = vld [vmem:[#allocation13 + $0x998] sm:$0xff]  ;;  %v1318_v18 = vld [vmem:[#allocation13 + $0x980] sm:$0xff] }
 0x259   : > { %7704 = vmatpush1.bf16.msra.mxu1 %v7703_v30  ;;  %7832 = vmatpush1.bf16.msra.mxu0 %v7831_v31  ;;  %v7725_v30 = vpack.c.bf16 %v1279_v28, %v1271_v27  ;;  %v1281_v31 = vld [vmem:[#allocation13 + $0x858] sm:$0xff]  ;;  %v1335_v27 = vld [vmem:[#allocation13 + $0xa08] sm:$0xff] }
 0x25a   : > { %7706 = vmatprep.subr.bf16.mxu1 %v7705_v34  ;;  %7834 = vmatprep.subr.bf16.mxu0 %v7833_v35  ;;  %v7853_v32 = vpack.c.bf16 %v1281_v31, %v1273_v29  ;;  %v10017_v34 = vsub.s32 3, %v9996_v21  ;;  %v851_v35 = vrot.slane %v10014_v33, %v9999_v23  ;;  %v1343_v28 = vld [vmem:[#allocation13 + $0xa48] sm:$0xff]  ;;  %v1337_v29 = vld [vmem:[#allocation13 + $0xa18] sm:$0xff] }
 0x25c   : > { %v863_v37 = vrot.slane %v10014_v33, %v10017_v34 }
 0x25d   : > { %7708 = vmatpush1.bf16.msra.mxu1 %v7707_v42  ;;  %7836 = vmatpush1.bf16.msra.mxu0 %v7835_v43 }
 0x25e   : > { %7710 = vmatprep.subr.bf16.mxu1 %v7709_v46  ;;  %7838 = vmatprep.subr.bf16.mxu0 %v7837_v47  ;;  %v1280_v46 = vld [vmem:[#allocation13 + $0x850] sm:$0xff] }
 0x261   : > { %7712 = vmatpush1.bf16.msra.mxu1 %v7711_v54  ;;  %7840 = vmatpush1.bf16.msra.mxu0 %v7839_v55  ;;  %v7727_v54 = vpack.c.bf16 %v1278_v44, %v1270_v40  ;;  %v7855_v55 = vpack.c.bf16 %v1280_v46, %v1272_v45  ;;  %v1336_v40 = vld [vmem:[#allocation13 + $0xa10] sm:$0xff]  ;;  %v1353_v44 = vld [vmem:[#allocation13 + $0xa98] sm:$0xff] }
 0x262   : > { %7714 = vmatprep.subr.bf16.mxu1 %v7713_v58  ;;  %7842 = vmatprep.subr.bf16.mxu0 %v7841_v59  ;;  %v1288_v59 = vld [vmem:[#allocation13 + $0x890] sm:$0xff]  ;;  %v1361_v45 = vld [vmem:[#allocation13 + $0xad8] sm:$0xff] }
 0x263   : > { %v7873_v51 = vpack.c.bf16 %v1361_v45, %v1353_v44  ;;  %v1416_v45 = vld [vmem:[#allocation13 + $0xc90] sm:$0xff] }
 0x265   : > { %7716 = vmatpush1.bf16.msra.mxu1 %v7715_v2  ;;  %7844 = vmatpush1.bf16.msra.mxu0 %v7843_v3  ;;  %v1313_v2 = vld [vmem:[#allocation13 + $0x958] sm:$0xff] }
 0x266   : > { %7718 = vmatprep.subr.bf16.mxu1 %v7717_v5  ;;  %7846 = vmatprep.subr.bf16.mxu0 %v7845_v6  ;;  %v7859_v5 = vpack.c.bf16 %v1296_v60, %v1288_v59  ;;  %v1302_v6 = vld [vmem:[#allocation13 + $0x900] sm:$0xff]  ;;  %v7861_v9 = vpack.c.bf16 %v1313_v2, %v1305_v1  ;;  %v1377_v59 = vld [vmem:[#allocation13 + $0xb58] sm:$0xff]  ;;  %v1368_v2 = vld [vmem:[#allocation13 + $0xb10] sm:$0xff] }
 0x267   : > { %v7735_v16 = vpack.c.bf16 %v1310_v7, %v1302_v6  ;;  %v7877_v1 = vpack.c.bf16 %v1377_v59, %v1369_v57  ;;  %v1391_v6 = vld [vmem:[#allocation13 + $0xbc8] sm:$0xff]  ;;  %v1385_v7 = vld [vmem:[#allocation13 + $0xb98] sm:$0xff]  ;;  %v1432_v59 = vld [vmem:[#allocation13 + $0xd10] sm:$0xff] }
 0x269   : > { %7720 = vmatpush1.bf16.msra.mxu1 %v7719_v10  ;;  %7848 = vmatpush1.bf16.msra.mxu0 %v7847_v11  ;;  %v1304_v10 = vld [vmem:[#allocation13 + $0x910] sm:$0xff] }
 0x26a   : > { %7722 = vmatprep.subr.bf16.mxu1 %v7721_v15  ;;  %7850 = vmatprep.subr.bf16.mxu0 %v7849_v19  ;;  %v1312_v11 = vld [vmem:[#allocation13 + $0x950] sm:$0xff]  ;;  %v1329_v15 = vld [vmem:[#allocation13 + $0x9d8] sm:$0xff]  ;;  %v1326_v19 = vld [vmem:[#allocation13 + $0x9c0] sm:$0xff] }
 0x26b   : > { %v7863_v17 = vpack.c.bf16 %v1312_v11, %v1304_v10  ;;  %v7865_v22 = vpack.c.bf16 %v1329_v15, %v1321_v14  ;;  %v7739_v31 = vpack.c.bf16 %v1326_v19, %v1318_v18  ;;  %v1382_v11 = vld [vmem:[#allocation13 + $0xb80] sm:$0xff]  ;;  %v1384_v15 = vld [vmem:[#allocation13 + $0xb90] sm:$0xff]  ;;  %v1407_v18 = vld [vmem:[#allocation13 + $0xc48] sm:$0xff] }
 0x26c   : > { %v1401_v19 = vld [vmem:[#allocation13 + $0xc18] sm:$0xff] }
 0x26d   : > { %7724 = vmatpush1.bf16.msra.mxu1 %v7723_v20  ;;  %7852 = vmatpush1.bf16.msra.mxu0 %v7851_v26  ;;  %v7737_v20 = vpack.c.bf16 %v1327_v13, %v1319_v12  ;;  %v1328_v26 = vld [vmem:[#allocation13 + $0x9d0] sm:$0xff]  ;;  %v1390_v12 = vld [vmem:[#allocation13 + $0xbc0] sm:$0xff] }
 0x26e   : > { %7726 = vmatprep.subr.bf16.mxu1 %v7725_v30  ;;  %7854 = vmatprep.subr.bf16.mxu0 %v7853_v32  ;;  %v1345_v30 = vld [vmem:[#allocation13 + $0xa58] sm:$0xff]  ;;  %v7867_v32 = vpack.c.bf16 %v1328_v26, %v1320_v25  ;;  %v1398_v26 = vld [vmem:[#allocation13 + $0xc00] sm:$0xff] }
 0x303   : > { %v934_v38 = vpop.f32.mrb[0].mxu1  ;;  %v10025_v39 = vpop.f32.mrb[2].mxu0 }
 0x304   : > { %v935_v41 = vadd.f32 %v934_v38, %v851_v35  ;;  %v936_v42 = vpop.f32.mrb[1].mxu1  ;;  %v1007_v43 = vpop.f32.mrb[3].mxu0  ;;  %v1334_v35 = vld [vmem:[#allocation13 + $0xa00] sm:$0xff]  ;;  %v7869_v38 = vpack.c.bf16 %v1345_v30, %v1337_v29  ;;  %v1400_v30 = vld [vmem:[#allocation13 + $0xc10] sm:$0xff] }
 0x305   : > { %v937_v47 = vadd.f32 %v936_v42, %v855_v36  ;;  %v1008_v49 = vadd.f32 %v1007_v43, %v863_v37  ;;  %v1342_v36 = vld [vmem:[#allocation13 + $0xa40] sm:$0xff]  ;;  %v7741_v37 = vpack.c.bf16 %v1343_v28, %v1335_v27  ;;  %v1351_v42 = vld [vmem:[#allocation13 + $0xa88] sm:$0xff] }
 0x306   : > { %v10029_v58 = vmax.f32 %v935_v41, 0.0  ;;  %v1344_v41 = vld [vmem:[#allocation13 + $0xa50] sm:$0xff]  ;;  %v1359_v43 = vld [vmem:[#allocation13 + $0xac8] sm:$0xff]  ;;  %v7743_v46 = vpack.c.bf16 %v1342_v36, %v1334_v35  ;;  %v1406_v27 = vld [vmem:[#allocation13 + $0xc40] sm:$0xff] }
 0x307   : > { %v10027_v53 = vmax.f32 %v937_v47, 0.0  ;;  %v10033_v3 = vmax.f32 %v1008_v49, 0.0  ;;  %v7871_v47 = vpack.c.bf16 %v1344_v41, %v1336_v40  ;;  %v1358_v49 = vld [vmem:[#allocation13 + $0xac0] sm:$0xff]  ;;  %v7745_v50 = vpack.c.bf16 %v1359_v43, %v1351_v42  ;;  %v1423_v35 = vld [vmem:[#allocation13 + $0xcc8] sm:$0xff]  ;;  %v1417_v36 = vld [vmem:[#allocation13 + $0xc98] sm:$0xff] }
 0x308   : > { %v7747_v60 = vpack.c.bf16 %v1358_v49, %v1350_v48  ;;  %v1414_v41 = vld [vmem:[#allocation13 + $0xc80] sm:$0xff]  ;;  %v1439_v48 = vld [vmem:[#allocation13 + $0xd48] sm:$0xff]  ;;  %v1433_v49 = vld [vmem:[#allocation13 + $0xd18] sm:$0xff] }
 0x309   : > { %1632 = vmatprep.mubr.f32.mxu1 %v10027_v53  ;;  %1774 = vmatprep.mubr.f32.mxu0 %v10027_v53  ;;  %v1422_v42 = vld [vmem:[#allocation13 + $0xcc0] sm:$0xff] }
 0x30a   : > { %1633 = vmatmul.mubr.f32.vlgmr.msra.gmra.mrb[2].mxu1 %v10029_v58  ;;  %1775 = vmatmul.mubr.f32.vlgmr.msra.gmra.mrb[4].mxu0 %v10029_v58 }
 0x30b   : > { %7728 = vmatpush1.bf16.msra.mxu1 %v7727_v54  ;;  %7856 = vmatpush1.bf16.msra.mxu0 %v7855_v55  ;;  %v1360_v54 = vld [vmem:[#allocation13 + $0xad0] sm:$0xff]  ;;  %v1367_v55 = vld [vmem:[#allocation13 + $0xb08] sm:$0xff] }
 0x30c   : > { %1703 = vmatprep.mubr.f32.mxu1 %v10033_v3  ;;  %1845 = vmatprep.mubr.f32.mxu0 %v10033_v3  ;;  %v7875_v61 = vpack.c.bf16 %v1360_v54, %v1352_v52  ;;  %v7749_v0 = vpack.c.bf16 %v1375_v56, %v1367_v55  ;;  %v1430_v54 = vld [vmem:[#allocation13 + $0xd00] sm:$0xff] }
 0x30d   : > { %7730 = vmatprep.subr.bf16.mxu1 %v7729_v62  ;;  %7858 = vmatprep.subr.bf16.mxu0 %v7857_v63  ;;  %v1366_v62 = vld [vmem:[#allocation13 + $0xb00] sm:$0xff] }
 0x30e   : > { %v1374_v63 = vld [vmem:[#allocation13 + $0xb40] sm:$0xff] }
 0x30f   : > { %7732 = vmatpush1.bf16.msra.mxu1 %v7731_v4  ;;  %7860 = vmatpush1.bf16.msra.mxu0 %v7859_v5  ;;  %v1376_v4 = vld [vmem:[#allocation13 + $0xb50] sm:$0xff]  ;;  %v1383_v5 = vld [vmem:[#allocation13 + $0xb88] sm:$0xff]  ;;  %v1438_v55 = vld [vmem:[#allocation13 + $0xd40] sm:$0xff] }
 0x310   : > { %7734 = vmatprep.subr.bf16.mxu1 %v7733_v8  ;;  %7862 = vmatprep.subr.bf16.mxu0 %v7861_v9  ;;  %v1393_v8 = vld [vmem:[#allocation13 + $0xbd8] sm:$0xff]  ;;  %v7751_v9 = vpack.c.bf16 %v1374_v63, %v1366_v62  ;;  %v7879_v10 = vpack.c.bf16 %v1376_v4, %v1368_v2  ;;  %v7753_v13 = vpack.c.bf16 %v1391_v6, %v1383_v5  ;;  %v1455_v62 = vld [vmem:[#allocation13 + $0xdc8] sm:$0xff]  ;;  %v1446_v4 = vld [vmem:[#allocation13 + $0xd80] sm:$0xff] }
 0x311   : > { %v7881_v14 = vpack.c.bf16 %v1393_v8, %v1385_v7  ;;  %v1449_v63 = vld [vmem:[#allocation13 + $0xd98] sm:$0xff]  ;;  %v1454_v5 = vld [vmem:[#allocation13 + $0xdc0] sm:$0xff]  ;;  %v1448_v8 = vld [vmem:[#allocation13 + $0xd90] sm:$0xff] }
 0x313   : > { %7736 = vmatpush1.bf16.msra.mxu1 %v7735_v16  ;;  %7864 = vmatpush1.bf16.msra.mxu0 %v7863_v17  ;;  %v1392_v16 = vld [vmem:[#allocation13 + $0xbd0] sm:$0xff]  ;;  %v1399_v17 = vld [vmem:[#allocation13 + $0xc08] sm:$0xff] }
 0x314   : > { %7738 = vmatprep.subr.bf16.mxu1 %v7737_v20  ;;  %7866 = vmatprep.subr.bf16.mxu0 %v7865_v22  ;;  %v1409_v20 = vld [vmem:[#allocation13 + $0xc58] sm:$0xff]  ;;  %v7755_v22 = vpack.c.bf16 %v1390_v12, %v1382_v11  ;;  %v7883_v25 = vpack.c.bf16 %v1392_v16, %v1384_v15  ;;  %v7757_v28 = vpack.c.bf16 %v1407_v18, %v1399_v17  ;;  %v1471_v11 = vld [vmem:[#allocation13 + $0xe48] sm:$0xff]  ;;  %v1462_v16 = vld [vmem:[#allocation13 + $0xe00] sm:$0xff] }
 0x315   : > { %v7885_v29 = vpack.c.bf16 %v1409_v20, %v1401_v19  ;;  %v1465_v12 = vld [vmem:[#allocation13 + $0xe18] sm:$0xff]  ;;  %v1470_v17 = vld [vmem:[#allocation13 + $0xe40] sm:$0xff]  ;;  %v1464_v20 = vld [vmem:[#allocation13 + $0xe10] sm:$0xff] }
 0x317   : > { %7740 = vmatpush1.bf16.msra.mxu1 %v7739_v31  ;;  %7868 = vmatpush1.bf16.msra.mxu0 %v7867_v32  ;;  %v1408_v31 = vld [vmem:[#allocation13 + $0xc50] sm:$0xff]  ;;  %v1415_v32 = vld [vmem:[#allocation13 + $0xc88] sm:$0xff] }
 0x318   : > { %7742 = vmatprep.subr.bf16.mxu1 %v7741_v37  ;;  %7870 = vmatprep.subr.bf16.mxu0 %v7869_v38  ;;  %v1425_v37 = vld [vmem:[#allocation13 + $0xcd8] sm:$0xff]  ;;  %v7759_v38 = vpack.c.bf16 %v1406_v27, %v1398_v26  ;;  %v7887_v40 = vpack.c.bf16 %v1408_v31, %v1400_v30  ;;  %v7761_v43 = vpack.c.bf16 %v1423_v35, %v1415_v32  ;;  %v1487_v26 = vld [vmem:[#allocation13 + $0xec8] sm:$0xff]  ;;  %v1478_v31 = vld [vmem:[#allocation13 + $0xe80] sm:$0xff] }
 0x319   : > { %v7889_v44 = vpack.c.bf16 %v1425_v37, %v1417_v36  ;;  %v1481_v27 = vld [vmem:[#allocation13 + $0xe98] sm:$0xff]  ;;  %v1486_v32 = vld [vmem:[#allocation13 + $0xec0] sm:$0xff]  ;;  %v1480_v37 = vld [vmem:[#allocation13 + $0xe90] sm:$0xff] }
 0x31b   : > { %7744 = vmatpush1.bf16.msra.mxu1 %v7743_v46  ;;  %7872 = vmatpush1.bf16.msra.mxu0 %v7871_v47  ;;  %v1424_v46 = vld [vmem:[#allocation13 + $0xcd0] sm:$0xff]  ;;  %v1431_v47 = vld [vmem:[#allocation13 + $0xd08] sm:$0xff] }
 0x31c   : > { %7746 = vmatprep.subr.bf16.mxu1 %v7745_v50  ;;  %7874 = vmatprep.subr.bf16.mxu0 %v7873_v51  ;;  %v1441_v50 = vld [vmem:[#allocation13 + $0xd58] sm:$0xff]  ;;  %v7763_v51 = vpack.c.bf16 %v1422_v42, %v1414_v41  ;;  %v7891_v52 = vpack.c.bf16 %v1424_v46, %v1416_v45  ;;  %v7765_v56 = vpack.c.bf16 %v1439_v48, %v1431_v47  ;;  %v1503_v41 = vld [vmem:[#allocation13 + $0xf48] sm:$0xff]  ;;  %v1494_v46 = vld [vmem:[#allocation13 + $0xf00] sm:$0xff]  ;;  %v10040_v48 = vsub.s32 2, %v9996_v21 }
 0x31d   : > { %v7893_v57 = vpack.c.bf16 %v1441_v50, %v1433_v49  ;;  %v1497_v42 = vld [vmem:[#allocation13 + $0xf18] sm:$0xff]  ;;  %v1502_v47 = vld [vmem:[#allocation13 + $0xf40] sm:$0xff] }
 0x31f   : > { %7748 = vmatpush1.bf16.msra.mxu1 %v7747_v60  ;;  %7876 = vmatpush1.bf16.msra.mxu0 %v7875_v61  ;;  %v1440_v60 = vld [vmem:[#allocation13 + $0xd50] sm:$0xff]  ;;  %v1447_v61 = vld [vmem:[#allocation13 + $0xd88] sm:$0xff] }
 0x320   : > { %7750 = vmatprep.subr.bf16.mxu1 %v7749_v0  ;;  %7878 = vmatprep.subr.bf16.mxu0 %v7877_v1  ;;  %v1457_v0 = vld [vmem:[#allocation13 + $0xdd8] sm:$0xff]  ;;  %v7767_v1 = vpack.c.bf16 %v1438_v55, %v1430_v54  ;;  %v7895_v2 = vpack.c.bf16 %v1440_v60, %v1432_v59  ;;  %v7769_v6 = vpack.c.bf16 %v1455_v62, %v1447_v61  ;;  %v1511_v54 = vld [vmem:[#allocation13 + $0xf88] sm:$0xff]  ;;  %v1510_v61 = vld [vmem:[#allocation13 + $0xf80] sm:$0xff] }
 0x321   : > { %v7897_v7 = vpack.c.bf16 %v1457_v0, %v1449_v63  ;;  %v1519_v55 = vld [vmem:[#allocation13 + $0xfc8] sm:$0xff]  ;;  %v7783_v59 = vpack.c.bf16 %v1502_v47, %v1494_v46  ;;  %v1518_v62 = vld [vmem:[#allocation13 + $0xfc0] sm:$0xff]  ;;  %v859_v63 = vrot.slane %v10014_v33, %v10040_v48  ;;  %v1060_v46 = vld [vmem:[#allocation13 + $0x170] sm:$0xff] }
 0x322   : > { %v7785_v0 = vpack.c.bf16 %v1519_v55, %v1511_v54  ;;  %v1067_v47 = vld [vmem:[#allocation13 + $0x1a8] sm:$0xff] }
 0x323   : > { %7752 = vmatpush1.bf16.msra.mxu1 %v7751_v9  ;;  %7880 = vmatpush1.bf16.msra.mxu0 %v7879_v10  ;;  %v1456_v9 = vld [vmem:[#allocation13 + $0xdd0] sm:$0xff]  ;;  %v1463_v10 = vld [vmem:[#allocation13 + $0xe08] sm:$0xff] }
 0x324   : > { %7754 = vmatprep.subr.bf16.mxu1 %v7753_v13  ;;  %7882 = vmatprep.subr.bf16.mxu0 %v7881_v14  ;;  %v1473_v13 = vld [vmem:[#allocation13 + $0xe58] sm:$0xff]  ;;  %v7771_v14 = vpack.c.bf16 %v1454_v5, %v1446_v4  ;;  %v7899_v15 = vpack.c.bf16 %v1456_v9, %v1448_v8  ;;  %v7773_v18 = vpack.c.bf16 %v1471_v11, %v1463_v10  ;;  %v1520_v4 = vld [vmem:[#allocation13 + $0xfd0] sm:$0xff]  ;;  %v1019_v5 = vld [vmem:[#allocation13 + $0x28] sm:$0xff] }
 0x325   : > { %v7901_v19 = vpack.c.bf16 %v1473_v13, %v1465_v12  ;;  %v1029_v8 = vld [vmem:[#allocation13 + $0x78] sm:$0xff]  ;;  %v7787_v9 = vpack.c.bf16 %v1518_v62, %v1510_v61  ;;  %v1006_v11 = vadd.f32 %v10025_v39, %v859_v63  ;;  %v1018_v13 = vld [vmem:[#allocation13 + $0x20] sm:$0xff]  ;;  %v1083_v61 = vld [vmem:[#allocation13 + $0x228] sm:$0xff] }
 0x326   : > { %v1091_v62 = vld [vmem:[#allocation13 + $0x268] sm:$0xff]  ;;  %v1085_v63 = vld [vmem:[#allocation13 + $0x238] sm:$0xff] }
 0x327   : > { %7756 = vmatpush1.bf16.msra.mxu1 %v7755_v22  ;;  %7884 = vmatpush1.bf16.msra.mxu0 %v7883_v25  ;;  %v1472_v22 = vld [vmem:[#allocation13 + $0xe50] sm:$0xff]  ;;  %v1479_v25 = vld [vmem:[#allocation13 + $0xe88] sm:$0xff] }
 0x328   : > { %7758 = vmatprep.subr.bf16.mxu1 %v7757_v28  ;;  %7886 = vmatprep.subr.bf16.mxu0 %v7885_v29  ;;  %v1489_v28 = vld [vmem:[#allocation13 + $0xed8] sm:$0xff]  ;;  %v7775_v29 = vpack.c.bf16 %v1470_v17, %v1462_v16  ;;  %v7903_v30 = vpack.c.bf16 %v1472_v22, %v1464_v20  ;;  %v7777_v35 = vpack.c.bf16 %v1487_v26, %v1479_v25  ;;  %v1028_v16 = vld [vmem:[#allocation13 + $0x70] sm:$0xff]  ;;  %v1035_v17 = vld [vmem:[#allocation13 + $0xa8] sm:$0xff]  ;;  %v10045_v25 = vmax.f32 %v1006_v11, 0.0 }
 0x329   : > { %v7905_v36 = vpack.c.bf16 %v1489_v28, %v1481_v27  ;;  %v1045_v20 = vld [vmem:[#allocation13 + $0xf8] sm:$0xff]  ;;  %v1034_v26 = vld [vmem:[#allocation13 + $0xa0] sm:$0xff]  ;;  %v1036_v28 = vld [vmem:[#allocation13 + $0xb0] sm:$0xff] }
 0x32a   : > { %v1042_v27 = vld [vmem:[#allocation13 + $0xe0] sm:$0xff]  ;;  %v1107_v11 = vld [vmem:[#allocation13 + $0x2e8] sm:$0xff] }
 0x32b   : > { %7760 = vmatpush1.bf16.msra.mxu1 %v7759_v38  ;;  %7888 = vmatpush1.bf16.msra.mxu0 %v7887_v40  ;;  %v1488_v38 = vld [vmem:[#allocation13 + $0xed0] sm:$0xff]  ;;  %v1495_v40 = vld [vmem:[#allocation13 + $0xf08] sm:$0xff] }
 0x32c   : > { %7762 = vmatprep.subr.bf16.mxu1 %v7761_v43  ;;  %7890 = vmatprep.subr.bf16.mxu0 %v7889_v44  ;;  %v1505_v43 = vld [vmem:[#allocation13 + $0xf58] sm:$0xff]  ;;  %v7779_v44 = vpack.c.bf16 %v1486_v32, %v1478_v31  ;;  %v7907_v45 = vpack.c.bf16 %v1488_v38, %v1480_v37  ;;  %v7781_v49 = vpack.c.bf16 %v1503_v41, %v1495_v40  ;;  %v1044_v31 = vld [vmem:[#allocation13 + $0xf0] sm:$0xff]  ;;  %v1051_v32 = vld [vmem:[#allocation13 + $0x128] sm:$0xff] }
 0x32d   : > { %v7909_v50 = vpack.c.bf16 %v1505_v43, %v1497_v42  ;;  %v1061_v37 = vld [vmem:[#allocation13 + $0x178] sm:$0xff]  ;;  %v7923_v38 = vpack.c.bf16 %v1042_v27, %v1034_v26  ;;  %v8051_v40 = vpack.c.bf16 %v1044_v31, %v1036_v28  ;;  %v1050_v42 = vld [vmem:[#allocation13 + $0x120] sm:$0xff] }
 0x32e   : > { %v1058_v43 = vld [vmem:[#allocation13 + $0x160] sm:$0xff]  ;;  %v1117_v26 = vld [vmem:[#allocation13 + $0x338] sm:$0xff] }
 0x32f   : > { %7764 = vmatpush1.bf16.msra.mxu1 %v7763_v51  ;;  %7892 = vmatpush1.bf16.msra.mxu0 %v7891_v52  ;;  %v1496_v51 = vld [vmem:[#allocation13 + $0xf10] sm:$0xff]  ;;  %v1125_v27 = vld [vmem:[#allocation13 + $0x378] sm:$0xff]  ;;  %v1114_v31 = vld [vmem:[#allocation13 + $0x320] sm:$0xff] }
 0x330   : > { %7766 = vmatprep.subr.bf16.mxu1 %v7765_v56  ;;  %7894 = vmatprep.subr.bf16.mxu0 %v7893_v57  ;;  %v1504_v52 = vld [vmem:[#allocation13 + $0xf50] sm:$0xff]  ;;  %v1513_v56 = vld [vmem:[#allocation13 + $0xf98] sm:$0xff] }
 0x331   : > { %v1521_v57 = vld [vmem:[#allocation13 + $0xfd8] sm:$0xff]  ;;  %v7911_v60 = vpack.c.bf16 %v1504_v52, %v1496_v51  ;;  %v7927_v52 = vpack.c.bf16 %v1058_v43, %v1050_v42 }
 0x332   : > { %v1077_v51 = vld [vmem:[#allocation13 + $0x1f8] sm:$0xff] }
 0x333   : > { %7768 = vmatpush1.bf16.msra.mxu1 %v7767_v1  ;;  %7896 = vmatpush1.bf16.msra.mxu0 %v7895_v2  ;;  %v7913_v1 = vpack.c.bf16 %v1521_v57, %v1513_v56  ;;  %v1512_v2 = vld [vmem:[#allocation13 + $0xf90] sm:$0xff]  ;;  %v1074_v56 = vld [vmem:[#allocation13 + $0x1e0] sm:$0xff]  ;;  %v1141_v42 = vld [vmem:[#allocation13 + $0x3f8] sm:$0xff] }
 0x334   : > { %7770 = vmatprep.subr.bf16.mxu1 %v7769_v6  ;;  %7898 = vmatprep.subr.bf16.mxu0 %v7897_v7  ;;  %v1027_v6 = vld [vmem:[#allocation13 + $0x68] sm:$0xff]  ;;  %v1021_v7 = vld [vmem:[#allocation13 + $0x38] sm:$0xff]  ;;  %v7915_v10 = vpack.c.bf16 %v1520_v4, %v1512_v2  ;;  %v1068_v57 = vld [vmem:[#allocation13 + $0x1b0] sm:$0xff]  ;;  %v7933_v4 = vpack.c.bf16 %v1091_v62, %v1083_v61 }
 0x335   : > { %v7917_v12 = vpack.c.bf16 %v1027_v6, %v1019_v5  ;;  %v8045_v33 = vpack.c.bf16 %v1029_v8, %v1021_v7  ;;  %v1082_v5 = vld [vmem:[#allocation13 + $0x220] sm:$0xff]  ;;  %v1084_v7 = vld [vmem:[#allocation13 + $0x230] sm:$0xff] }
 0x336   : > { %v1090_v6 = vld [vmem:[#allocation13 + $0x260] sm:$0xff]  ;;  %v1148_v62 = vld [vmem:[#allocation13 + $0x430] sm:$0xff] }
 0x337   : > { %7772 = vmatpush1.bf16.msra.mxu1 %v7771_v14  ;;  %7900 = vmatpush1.bf16.msra.mxu0 %v7899_v15  ;;  %v1026_v14 = vld [vmem:[#allocation13 + $0x60] sm:$0xff]  ;;  %v1020_v15 = vld [vmem:[#allocation13 + $0x30] sm:$0xff] }
 0x338   : > { %7774 = vmatprep.subr.bf16.mxu1 %v7773_v18  ;;  %7902 = vmatprep.subr.bf16.mxu0 %v7901_v19  ;;  %v1043_v18 = vld [vmem:[#allocation13 + $0xe8] sm:$0xff]  ;;  %v1037_v19 = vld [vmem:[#allocation13 + $0xb8] sm:$0xff]  ;;  %v7919_v22 = vpack.c.bf16 %v1026_v14, %v1018_v13  ;;  %v8047_v39 = vpack.c.bf16 %v1028_v16, %v1020_v15  ;;  %v7935_v13 = vpack.c.bf16 %v1090_v6, %v1082_v5  ;;  %v1098_v16 = vld [vmem:[#allocation13 + $0x2a0] sm:$0xff] }
 0x339   : > { %v1154_v61 = vld [vmem:[#allocation13 + $0x460] sm:$0xff]  ;;  %v1173_v5 = vld [vmem:[#allocation13 + $0x4f8] sm:$0xff] }
 0x33b   : > { %7776 = vmatpush1.bf16.msra.mxu1 %v7775_v29  ;;  %7904 = vmatpush1.bf16.msra.mxu0 %v7903_v30  ;;  %v7921_v29 = vpack.c.bf16 %v1043_v18, %v1035_v17  ;;  %v8049_v30 = vpack.c.bf16 %v1045_v20, %v1037_v19  ;;  %v1106_v17 = vld [vmem:[#allocation13 + $0x2e0] sm:$0xff]  ;;  %v1100_v18 = vld [vmem:[#allocation13 + $0x2b0] sm:$0xff] }
 0x33c   : > { %7778 = vmatprep.subr.bf16.mxu1 %v7777_v35  ;;  %7906 = vmatprep.subr.bf16.mxu0 %v7905_v36  ;;  %v1059_v35 = vld [vmem:[#allocation13 + $0x168] sm:$0xff]  ;;  %v1053_v36 = vld [vmem:[#allocation13 + $0x138] sm:$0xff]  ;;  %v1108_v20 = vld [vmem:[#allocation13 + $0x2f0] sm:$0xff]  ;;  %v7939_v28 = vpack.c.bf16 %v1106_v17, %v1098_v16 }
 0x33d   : > { %v7925_v41 = vpack.c.bf16 %v1059_v35, %v1051_v32  ;;  %v1122_v32 = vld [vmem:[#allocation13 + $0x360] sm:$0xff]  ;;  %v1116_v35 = vld [vmem:[#allocation13 + $0x330] sm:$0xff]  ;;  %v1189_v16 = vld [vmem:[#allocation13 + $0x578] sm:$0xff] }
 0x33e   : > { %v7943_v43 = vpack.c.bf16 %v1122_v32, %v1114_v31  ;;  %v1205_v31 = vld [vmem:[#allocation13 + $0x5f8] sm:$0xff] }
 0x33f   : > { %7780 = vmatpush1.bf16.msra.mxu1 %v7779_v44  ;;  %7908 = vmatpush1.bf16.msra.mxu0 %v7907_v45  ;;  %v1052_v44 = vld [vmem:[#allocation13 + $0x130] sm:$0xff]  ;;  %v8053_v45 = vpack.c.bf16 %v1061_v37, %v1053_v36  ;;  %v8069_v36 = vpack.c.bf16 %v1125_v27, %v1117_v26 }
 0x340   : > { %7782 = vmatprep.subr.bf16.mxu1 %v7781_v49  ;;  %7910 = vmatprep.subr.bf16.mxu0 %v7909_v50  ;;  %v1075_v49 = vld [vmem:[#allocation13 + $0x1e8] sm:$0xff]  ;;  %v1069_v50 = vld [vmem:[#allocation13 + $0x1b8] sm:$0xff]  ;;  %v8055_v54 = vpack.c.bf16 %v1060_v46, %v1052_v44  ;;  %v1124_v37 = vld [vmem:[#allocation13 + $0x370] sm:$0xff] }
 0x341   : > { %v7929_v55 = vpack.c.bf16 %v1075_v49, %v1067_v47  ;;  %v8071_v44 = vpack.c.bf16 %v1124_v37, %v1116_v35  ;;  %v1130_v46 = vld [vmem:[#allocation13 + $0x3a0] sm:$0xff]  ;;  %v1132_v49 = vld [vmem:[#allocation13 + $0x3b0] sm:$0xff] }
 0x342   : > { %v1138_v47 = vld [vmem:[#allocation13 + $0x3e0] sm:$0xff]  ;;  %v1188_v27 = vld [vmem:[#allocation13 + $0x570] sm:$0xff] }
 0x343   : > { %7784 = vmatpush1.bf16.msra.mxu1 %v7783_v59  ;;  %7912 = vmatpush1.bf16.msra.mxu0 %v7911_v60  ;;  %v8057_v59 = vpack.c.bf16 %v1077_v51, %v1069_v50  ;;  %v1076_v60 = vld [vmem:[#allocation13 + $0x1f0] sm:$0xff]  ;;  %v1194_v37 = vld [vmem:[#allocation13 + $0x5a0] sm:$0xff] }
 0x344   : > { %7786 = vmatprep.subr.bf16.mxu1 %v7785_v0  ;;  %7914 = vmatprep.subr.bf16.mxu0 %v7913_v1  ;;  %v1093_v0 = vld [vmem:[#allocation13 + $0x278] sm:$0xff]  ;;  %v8059_v2 = vpack.c.bf16 %v1076_v60, %v1068_v57  ;;  %v1140_v51 = vld [vmem:[#allocation13 + $0x3f0] sm:$0xff]  ;;  %v1146_v60 = vld [vmem:[#allocation13 + $0x420] sm:$0xff] }
 0x345   : > { %v8061_v8 = vpack.c.bf16 %v1093_v0, %v1085_v63  ;;  %v8075_v57 = vpack.c.bf16 %v1140_v51, %v1132_v49  ;;  %v1156_v0 = vld [vmem:[#allocation13 + $0x470] sm:$0xff]  ;;  %v7951_v6 = vpack.c.bf16 %v1154_v61, %v1146_v60  ;;  %v1210_v51 = vld [vmem:[#allocation13 + $0x620] sm:$0xff]  ;;  %v1237_v60 = vld [vmem:[#allocation13 + $0x6f8] sm:$0xff] }
 0x347   : > { %7788 = vmatpush1.bf16.msra.mxu1 %v7787_v9  ;;  %7916 = vmatpush1.bf16.msra.mxu0 %v7915_v10  ;;  %v1092_v9 = vld [vmem:[#allocation13 + $0x270] sm:$0xff]  ;;  %v1099_v10 = vld [vmem:[#allocation13 + $0x2a8] sm:$0xff] }
 0x348   : > { %7918 = vmatprep.subr.bf16.mxu1 %v7917_v12  ;;  %8046 = vmatprep.subr.bf16.mxu0 %v8045_v33  ;;  %v1101_v12 = vld [vmem:[#allocation13 + $0x2b8] sm:$0xff]  ;;  %v8063_v14 = vpack.c.bf16 %v1092_v9, %v1084_v7  ;;  %v7937_v15 = vpack.c.bf16 %v1107_v11, %v1099_v10  ;;  %v8079_v7 = vpack.c.bf16 %v1156_v0, %v1148_v62  ;;  %v1162_v9 = vld [vmem:[#allocation13 + $0x4a0] sm:$0xff]  ;;  %v1164_v11 = vld [vmem:[#allocation13 + $0x4b0] sm:$0xff] }
 0x349   : > { %v1109_v33 = vld [vmem:[#allocation13 + $0x2f8] sm:$0xff]  ;;  %v1170_v10 = vld [vmem:[#allocation13 + $0x4e0] sm:$0xff] }
 0x34a   : > { %1704 = vmatmul.mubr.f32.vlgmr.msra.gmra.mrb[2].mxu1 %v10045_v25  ;;  %1846 = vmatmul.mubr.f32.vlgmr.msra.gmra.mrb[4].mxu0 %v10045_v25  ;;  %v8065_v19 = vpack.c.bf16 %v1109_v33, %v1101_v12  ;;  %v1172_v33 = vld [vmem:[#allocation13 + $0x4f0] sm:$0xff]  ;;  %v7955_v17 = vpack.c.bf16 %v1170_v10, %v1162_v9  ;;  %v1226_v0 = vld [vmem:[#allocation13 + $0x6a0] sm:$0xff]  ;;  %v1253_v9 = vld [vmem:[#allocation13 + $0x778] sm:$0xff] }
 0x34b   : > { %7920 = vmatpush1.bf16.msra.mxu1 %v7919_v22  ;;  %1916 = vmatprep.mubr.f32.mxu1 %v10027_v53  ;;  %v1115_v22 = vld [vmem:[#allocation13 + $0x328] sm:$0xff] }
 0x34c   : > { %8048 = vmatpush1.bf16.msra.mxu0 %v8047_v39  ;;  %2058 = vmatprep.mubr.f32.mxu0 %v10027_v53  ;;  %v1066_v53 = vld [vmem:[#allocation13 + $0x1a0] sm:$0xff]  ;;  %v1123_v39 = vld [vmem:[#allocation13 + $0x368] sm:$0xff] }
 0x34d   : > { %7922 = vmatprep.subr.bf16.mxu1 %v7921_v29  ;;  %8050 = vmatprep.subr.bf16.mxu0 %v8049_v30  ;;  %v7931_v1 = vpack.c.bf16 %v1074_v56, %v1066_v53  ;;  %v8067_v29 = vpack.c.bf16 %v1108_v20, %v1100_v18  ;;  %v7941_v30 = vpack.c.bf16 %v1123_v39, %v1115_v22  ;;  %v1157_v53 = vld [vmem:[#allocation13 + $0x478] sm:$0xff]  ;;  %v1178_v20 = vld [vmem:[#allocation13 + $0x520] sm:$0xff]  ;;  %v1180_v39 = vld [vmem:[#allocation13 + $0x530] sm:$0xff] }
 0x34e   : > { %v7947_v56 = vpack.c.bf16 %v1138_v47, %v1130_v46  ;;  %v8083_v18 = vpack.c.bf16 %v1172_v33, %v1164_v11  ;;  %v1186_v22 = vld [vmem:[#allocation13 + $0x560] sm:$0xff]  ;;  %v8087_v35 = vpack.c.bf16 %v1188_v27, %v1180_v39  ;;  %v1221_v46 = vld [vmem:[#allocation13 + $0x678] sm:$0xff] }
 0x34f   : > { %7924 = vmatpush1.bf16.msra.mxu1 %v7923_v38  ;;  %v1131_v38 = vld [vmem:[#allocation13 + $0x3a8] sm:$0xff]  ;;  %v7959_v32 = vpack.c.bf16 %v1186_v22, %v1178_v20  ;;  %v1242_v33 = vld [vmem:[#allocation13 + $0x720] sm:$0xff]  ;;  %v1269_v20 = vld [vmem:[#allocation13 + $0x7f8] sm:$0xff] }
 0x350   : > { %8052 = vmatpush1.bf16.msra.mxu0 %v8051_v40  ;;  %7926 = vmatprep.subr.bf16.mxu1 %v7925_v41  ;;  %v1139_v40 = vld [vmem:[#allocation13 + $0x3e8] sm:$0xff]  ;;  %v1133_v41 = vld [vmem:[#allocation13 + $0x3b8] sm:$0xff]  ;;  %v1258_v27 = vld [vmem:[#allocation13 + $0x7a0] sm:$0xff] }
 0x351   : > { %8054 = vmatprep.subr.bf16.mxu0 %v8053_v45  ;;  %v7945_v45 = vpack.c.bf16 %v1139_v40, %v1131_v38  ;;  %v8073_v50 = vpack.c.bf16 %v1141_v42, %v1133_v41  ;;  %v1202_v38 = vld [vmem:[#allocation13 + $0x5e0] sm:$0xff]  ;;  %v1196_v40 = vld [vmem:[#allocation13 + $0x5b0] sm:$0xff] }
 0x352   : > { %v1204_v42 = vld [vmem:[#allocation13 + $0x5f0] sm:$0xff]  ;;  %v7963_v47 = vpack.c.bf16 %v1202_v38, %v1194_v37  ;;  %v1285_v37 = vld [vmem:[#allocation13 + $0x878] sm:$0xff] }
 0x353   : > { %7928 = vmatpush1.bf16.msra.mxu1 %v7927_v52  ;;  %v1147_v52 = vld [vmem:[#allocation13 + $0x428] sm:$0xff]  ;;  %v8091_v49 = vpack.c.bf16 %v1204_v42, %v1196_v40  ;;  %v1274_v42 = vld [vmem:[#allocation13 + $0x820] sm:$0xff] }
 0x354   : > { %8056 = vmatpush1.bf16.msra.mxu0 %v8055_v54  ;;  %7930 = vmatprep.subr.bf16.mxu1 %v7929_v55  ;;  %v1155_v54 = vld [vmem:[#allocation13 + $0x468] sm:$0xff]  ;;  %v1149_v55 = vld [vmem:[#allocation13 + $0x438] sm:$0xff] }
 0x355   : > { %8058 = vmatprep.subr.bf16.mxu0 %v8057_v59  ;;  %v7949_v59 = vpack.c.bf16 %v1155_v54, %v1147_v52  ;;  %v8077_v63 = vpack.c.bf16 %v1157_v53, %v1149_v55  ;;  %v1218_v52 = vld [vmem:[#allocation13 + $0x660] sm:$0xff]  ;;  %v1212_v54 = vld [vmem:[#allocation13 + $0x630] sm:$0xff] }
 0x356   : > { %v1220_v53 = vld [vmem:[#allocation13 + $0x670] sm:$0xff]  ;;  %v7967_v61 = vpack.c.bf16 %v1218_v52, %v1210_v51  ;;  %v1293_v51 = vld [vmem:[#allocation13 + $0x8b8] sm:$0xff] }
 0x357   : > { %7932 = vmatpush1.bf16.msra.mxu1 %v7931_v1  ;;  %v1163_v1 = vld [vmem:[#allocation13 + $0x4a8] sm:$0xff]  ;;  %v8095_v62 = vpack.c.bf16 %v1220_v53, %v1212_v54  ;;  %v1301_v52 = vld [vmem:[#allocation13 + $0x8f8] sm:$0xff]  ;;  %v1298_v53 = vld [vmem:[#allocation13 + $0x8e0] sm:$0xff] }
 0x358   : > { %8060 = vmatpush1.bf16.msra.mxu0 %v8059_v2  ;;  %7934 = vmatprep.subr.bf16.mxu1 %v7933_v4  ;;  %v1171_v2 = vld [vmem:[#allocation13 + $0x4e8] sm:$0xff]  ;;  %v1165_v4 = vld [vmem:[#allocation13 + $0x4b8] sm:$0xff] }
 0x359   : > { %8062 = vmatprep.subr.bf16.mxu0 %v8061_v8  ;;  %v7953_v8 = vpack.c.bf16 %v1171_v2, %v1163_v1  ;;  %v8081_v12 = vpack.c.bf16 %v1173_v5, %v1165_v4  ;;  %v1234_v1 = vld [vmem:[#allocation13 + $0x6e0] sm:$0xff]  ;;  %v1228_v2 = vld [vmem:[#allocation13 + $0x6b0] sm:$0xff] }
 0x35a   : > { %v1236_v5 = vld [vmem:[#allocation13 + $0x6f0] sm:$0xff]  ;;  %v7971_v10 = vpack.c.bf16 %v1234_v1, %v1226_v0  ;;  %v1317_v0 = vld [vmem:[#allocation13 + $0x978] sm:$0xff] }
 0x35b   : > { %7936 = vmatpush1.bf16.msra.mxu1 %v7935_v13  ;;  %v1179_v13 = vld [vmem:[#allocation13 + $0x528] sm:$0xff]  ;;  %v8099_v11 = vpack.c.bf16 %v1236_v5, %v1228_v2  ;;  %v1306_v5 = vld [vmem:[#allocation13 + $0x920] sm:$0xff] }
 0x35c   : > { %8064 = vmatpush1.bf16.msra.mxu0 %v8063_v14  ;;  %7938 = vmatprep.subr.bf16.mxu1 %v7937_v15  ;;  %v1187_v14 = vld [vmem:[#allocation13 + $0x568] sm:$0xff]  ;;  %v1181_v15 = vld [vmem:[#allocation13 + $0x538] sm:$0xff] }
 0x35d   : > { %8066 = vmatprep.subr.bf16.mxu0 %v8065_v19  ;;  %v7957_v19 = vpack.c.bf16 %v1187_v14, %v1179_v13  ;;  %v8085_v26 = vpack.c.bf16 %v1189_v16, %v1181_v15  ;;  %v1250_v13 = vld [vmem:[#allocation13 + $0x760] sm:$0xff]  ;;  %v1244_v14 = vld [vmem:[#allocation13 + $0x730] sm:$0xff] }
 0x35e   : > { %v1252_v16 = vld [vmem:[#allocation13 + $0x770] sm:$0xff]  ;;  %v7975_v22 = vpack.c.bf16 %v1250_v13, %v1242_v33 }
 0x35f   : > { %7940 = vmatpush1.bf16.msra.mxu1 %v7939_v28  ;;  %v1195_v28 = vld [vmem:[#allocation13 + $0x5a8] sm:$0xff]  ;;  %v8103_v39 = vpack.c.bf16 %v1252_v16, %v1244_v14  ;;  %v1330_v16 = vld [vmem:[#allocation13 + $0x9e0] sm:$0xff] }
 0x360   : > { %8068 = vmatpush1.bf16.msra.mxu0 %v8067_v29  ;;  %7942 = vmatprep.subr.bf16.mxu1 %v7941_v30  ;;  %v1203_v29 = vld [vmem:[#allocation13 + $0x5e8] sm:$0xff]  ;;  %v1197_v30 = vld [vmem:[#allocation13 + $0x5b8] sm:$0xff] }
 0x361   : > { %8070 = vmatprep.subr.bf16.mxu0 %v8069_v36  ;;  %v7961_v36 = vpack.c.bf16 %v1203_v29, %v1195_v28  ;;  %v8089_v41 = vpack.c.bf16 %v1205_v31, %v1197_v30  ;;  %v1266_v28 = vld [vmem:[#allocation13 + $0x7e0] sm:$0xff]  ;;  %v1260_v29 = vld [vmem:[#allocation13 + $0x7b0] sm:$0xff] }
 0x362   : > { %v1268_v31 = vld [vmem:[#allocation13 + $0x7f0] sm:$0xff]  ;;  %v7979_v38 = vpack.c.bf16 %v1266_v28, %v1258_v27 }
 0x363   : > { %7944 = vmatpush1.bf16.msra.mxu1 %v7943_v43  ;;  %v1211_v43 = vld [vmem:[#allocation13 + $0x628] sm:$0xff]  ;;  %v8107_v40 = vpack.c.bf16 %v1268_v31, %v1260_v29  ;;  %v1338_v29 = vld [vmem:[#allocation13 + $0xa20] sm:$0xff]  ;;  %v1340_v31 = vld [vmem:[#allocation13 + $0xa30] sm:$0xff] }
 0x364   : > { %8072 = vmatpush1.bf16.msra.mxu0 %v8071_v44  ;;  %7946 = vmatprep.subr.bf16.mxu1 %v7945_v45  ;;  %v1219_v44 = vld [vmem:[#allocation13 + $0x668] sm:$0xff]  ;;  %v1213_v45 = vld [vmem:[#allocation13 + $0x638] sm:$0xff] }
 0x365   : > { %8074 = vmatprep.subr.bf16.mxu0 %v8073_v50  ;;  %v7965_v50 = vpack.c.bf16 %v1219_v44, %v1211_v43  ;;  %v8093_v55 = vpack.c.bf16 %v1221_v46, %v1213_v45  ;;  %v1282_v43 = vld [vmem:[#allocation13 + $0x860] sm:$0xff]  ;;  %v1276_v45 = vld [vmem:[#allocation13 + $0x830] sm:$0xff] }
 0x366   : > { %v1284_v46 = vld [vmem:[#allocation13 + $0x870] sm:$0xff] }
 0x367   : > { %7948 = vmatpush1.bf16.msra.mxu1 %v7947_v56  ;;  %v1227_v56 = vld [vmem:[#allocation13 + $0x6a8] sm:$0xff]  ;;  %v8111_v54 = vpack.c.bf16 %v1284_v46, %v1276_v45  ;;  %v1362_v45 = vld [vmem:[#allocation13 + $0xae0] sm:$0xff]  ;;  %v1356_v46 = vld [vmem:[#allocation13 + $0xab0] sm:$0xff] }
 0x368   : > { %8076 = vmatpush1.bf16.msra.mxu0 %v8075_v57  ;;  %7950 = vmatprep.subr.bf16.mxu1 %v7949_v59  ;;  %v1235_v57 = vld [vmem:[#allocation13 + $0x6e8] sm:$0xff]  ;;  %v1229_v59 = vld [vmem:[#allocation13 + $0x6b8] sm:$0xff] }
 0x369   : > { %8078 = vmatprep.subr.bf16.mxu0 %v8077_v63  ;;  %v7969_v63 = vpack.c.bf16 %v1235_v57, %v1227_v56  ;;  %v8097_v4 = vpack.c.bf16 %v1237_v60, %v1229_v59  ;;  %v1292_v56 = vld [vmem:[#allocation13 + $0x8b0] sm:$0xff]  ;;  %v1307_v60 = vld [vmem:[#allocation13 + $0x928] sm:$0xff] }
 0x36a   : > { %v1300_v59 = vld [vmem:[#allocation13 + $0x8f0] sm:$0xff] }
 0x36b   : > { %7952 = vmatpush1.bf16.msra.mxu1 %v7951_v6  ;;  %v1243_v6 = vld [vmem:[#allocation13 + $0x728] sm:$0xff]  ;;  %v8115_v2 = vpack.c.bf16 %v1300_v59, %v1292_v56  ;;  %v1378_v59 = vld [vmem:[#allocation13 + $0xb60] sm:$0xff] }
 0x36c   : > { %8080 = vmatpush1.bf16.msra.mxu0 %v8079_v7  ;;  %7954 = vmatprep.subr.bf16.mxu1 %v7953_v8  ;;  %v1251_v7 = vld [vmem:[#allocation13 + $0x768] sm:$0xff]  ;;  %v1245_v8 = vld [vmem:[#allocation13 + $0x738] sm:$0xff] }
 0x36d   : > { %8082 = vmatprep.subr.bf16.mxu0 %v8081_v12  ;;  %v7973_v12 = vpack.c.bf16 %v1251_v7, %v1243_v6  ;;  %v8101_v15 = vpack.c.bf16 %v1253_v9, %v1245_v8  ;;  %v1314_v6 = vld [vmem:[#allocation13 + $0x960] sm:$0xff]  ;;  %v1308_v7 = vld [vmem:[#allocation13 + $0x930] sm:$0xff] }
 0x36e   : > { %v1316_v9 = vld [vmem:[#allocation13 + $0x970] sm:$0xff]  ;;  %v7991_v33 = vpack.c.bf16 %v1314_v6, %v1306_v5 }
 0x36f   : > { %7956 = vmatpush1.bf16.msra.mxu1 %v7955_v17  ;;  %v1259_v17 = vld [vmem:[#allocation13 + $0x7a8] sm:$0xff]  ;;  %v8119_v13 = vpack.c.bf16 %v1316_v9, %v1308_v7  ;;  %v1386_v7 = vld [vmem:[#allocation13 + $0xba0] sm:$0xff]  ;;  %v1388_v9 = vld [vmem:[#allocation13 + $0xbb0] sm:$0xff] }
 0x370   : > { %8084 = vmatpush1.bf16.msra.mxu0 %v8083_v18  ;;  %7958 = vmatprep.subr.bf16.mxu1 %v7957_v19  ;;  %v1267_v18 = vld [vmem:[#allocation13 + $0x7e8] sm:$0xff]  ;;  %v1261_v19 = vld [vmem:[#allocation13 + $0x7b8] sm:$0xff] }
 0x371   : > { %8086 = vmatprep.subr.bf16.mxu0 %v8085_v26  ;;  %v7977_v26 = vpack.c.bf16 %v1267_v18, %v1259_v17  ;;  %v8105_v30 = vpack.c.bf16 %v1269_v20, %v1261_v19  ;;  %v1324_v17 = vld [vmem:[#allocation13 + $0x9b0] sm:$0xff]  ;;  %v1339_v19 = vld [vmem:[#allocation13 + $0xa28] sm:$0xff] }
 0x372   : > { %v1347_v20 = vld [vmem:[#allocation13 + $0xa68] sm:$0xff] }
 0x373   : > { %7960 = vmatpush1.bf16.msra.mxu1 %v7959_v32  ;;  %v1275_v32 = vld [vmem:[#allocation13 + $0x828] sm:$0xff]  ;;  %v7997_v28 = vpack.c.bf16 %v1347_v20, %v1339_v19  ;;  %v1412_v20 = vld [vmem:[#allocation13 + $0xc70] sm:$0xff] }
 0x374   : > { %8088 = vmatpush1.bf16.msra.mxu0 %v8087_v35  ;;  %7962 = vmatprep.subr.bf16.mxu1 %v7961_v36  ;;  %v1283_v35 = vld [vmem:[#allocation13 + $0x868] sm:$0xff]  ;;  %v1277_v36 = vld [vmem:[#allocation13 + $0x838] sm:$0xff] }
 0x375   : > { %8090 = vmatprep.subr.bf16.mxu0 %v8089_v41  ;;  %v7981_v41 = vpack.c.bf16 %v1283_v35, %v1275_v32  ;;  %v8109_v44 = vpack.c.bf16 %v1285_v37, %v1277_v36  ;;  %v1348_v35 = vld [vmem:[#allocation13 + $0xa70] sm:$0xff]  ;;  %v1355_v36 = vld [vmem:[#allocation13 + $0xaa8] sm:$0xff] }
 0x376   : > { %v1363_v37 = vld [vmem:[#allocation13 + $0xae8] sm:$0xff] }
 0x377   : > { %7964 = vmatpush1.bf16.msra.mxu1 %v7963_v47  ;;  %v1291_v47 = vld [vmem:[#allocation13 + $0x8a8] sm:$0xff] }
 0x378   : > { %8092 = vmatpush1.bf16.msra.mxu0 %v8091_v49  ;;  %7966 = vmatprep.subr.bf16.mxu1 %v7965_v50  ;;  %v1299_v49 = vld [vmem:[#allocation13 + $0x8e8] sm:$0xff]  ;;  %v7983_v50 = vpack.c.bf16 %v1282_v43, %v1274_v42  ;;  %v8127_v42 = vpack.c.bf16 %v1348_v35, %v1340_v31  ;;  %v8001_v43 = vpack.c.bf16 %v1363_v37, %v1355_v36  ;;  %v1418_v31 = vld [vmem:[#allocation13 + $0xca0] sm:$0xff]  ;;  %v1420_v35 = vld [vmem:[#allocation13 + $0xcb0] sm:$0xff] }
 0x379   : > { %8094 = vmatprep.subr.bf16.mxu0 %v8093_v55  ;;  %v1290_v55 = vld [vmem:[#allocation13 + $0x8a0] sm:$0xff]  ;;  %v7985_v57 = vpack.c.bf16 %v1299_v49, %v1291_v47  ;;  %v1364_v49 = vld [vmem:[#allocation13 + $0xaf0] sm:$0xff] }
 0x37a   : > { %v7987_v1 = vpack.c.bf16 %v1298_v53, %v1290_v55  ;;  %v8131_v53 = vpack.c.bf16 %v1364_v49, %v1356_v46  ;;  %v1428_v37 = vld [vmem:[#allocation13 + $0xcf0] sm:$0xff]  ;;  %v1434_v46 = vld [vmem:[#allocation13 + $0xd20] sm:$0xff] }
 0x37b   : > { %7968 = vmatpush1.bf16.msra.mxu1 %v7967_v61  ;;  %v1315_v61 = vld [vmem:[#allocation13 + $0x968] sm:$0xff]  ;;  %v1436_v49 = vld [vmem:[#allocation13 + $0xd30] sm:$0xff] }
 0x37c   : > { %8096 = vmatpush1.bf16.msra.mxu0 %v8095_v62  ;;  %7970 = vmatprep.subr.bf16.mxu1 %v7969_v63  ;;  %v8113_v62 = vpack.c.bf16 %v1301_v52, %v1293_v51  ;;  %v1309_v63 = vld [vmem:[#allocation13 + $0x938] sm:$0xff]  ;;  %v1379_v51 = vld [vmem:[#allocation13 + $0xb68] sm:$0xff] }
 0x37d   : > { %8098 = vmatprep.subr.bf16.mxu0 %v8097_v4  ;;  %v7989_v4 = vpack.c.bf16 %v1315_v61, %v1307_v60  ;;  %v8117_v8 = vpack.c.bf16 %v1317_v0, %v1309_v63  ;;  %v1373_v52 = vld [vmem:[#allocation13 + $0xb38] sm:$0xff]  ;;  %v1372_v60 = vld [vmem:[#allocation13 + $0xb30] sm:$0xff]  ;;  %v1387_v63 = vld [vmem:[#allocation13 + $0xba8] sm:$0xff] }
 0x37e   : > { %v1395_v0 = vld [vmem:[#allocation13 + $0xbe8] sm:$0xff] }
 0x37f   : > { %7972 = vmatpush1.bf16.msra.mxu1 %v7971_v10  ;;  %v1323_v10 = vld [vmem:[#allocation13 + $0x9a8] sm:$0xff]  ;;  %v8009_v6 = vpack.c.bf16 %v1395_v0, %v1387_v63  ;;  %v1460_v0 = vld [vmem:[#allocation13 + $0xdf0] sm:$0xff] }
 0x380   : > { %8100 = vmatpush1.bf16.msra.mxu0 %v8099_v11  ;;  %7974 = vmatprep.subr.bf16.mxu1 %v7973_v12  ;;  %v1331_v11 = vld [vmem:[#allocation13 + $0x9e8] sm:$0xff]  ;;  %v1325_v12 = vld [vmem:[#allocation13 + $0x9b8] sm:$0xff] }
 0x381   : > { %8102 = vmatprep.subr.bf16.mxu0 %v8101_v15  ;;  %v7993_v14 = vpack.c.bf16 %v1331_v11, %v1323_v10  ;;  %v1322_v15 = vld [vmem:[#allocation13 + $0x9a0] sm:$0xff]  ;;  %v1396_v11 = vld [vmem:[#allocation13 + $0xbf0] sm:$0xff] }
 0x383   : > { %7976 = vmatpush1.bf16.msra.mxu1 %v7975_v22  ;;  %v1341_v22 = vld [vmem:[#allocation13 + $0xa38] sm:$0xff] }
 0x384   : > { %8104 = vmatpush1.bf16.msra.mxu0 %v8103_v39  ;;  %7978 = vmatprep.subr.bf16.mxu1 %v7977_v26  ;;  %v1349_v39 = vld [vmem:[#allocation13 + $0xa78] sm:$0xff]  ;;  %v7995_v26 = vpack.c.bf16 %v1330_v16, %v1322_v15  ;;  %v8139_v15 = vpack.c.bf16 %v1396_v11, %v1388_v9  ;;  %v1466_v9 = vld [vmem:[#allocation13 + $0xe20] sm:$0xff]  ;;  %v1468_v11 = vld [vmem:[#allocation13 + $0xe30] sm:$0xff] }
 0x385   : > { %8106 = vmatprep.subr.bf16.mxu0 %v8105_v30  ;;  %v1346_v30 = vld [vmem:[#allocation13 + $0xa60] sm:$0xff]  ;;  %v8125_v32 = vpack.c.bf16 %v1349_v39, %v1341_v22  ;;  %v1419_v22 = vld [vmem:[#allocation13 + $0xca8] sm:$0xff] }
 0x386   : > { %v1427_v39 = vld [vmem:[#allocation13 + $0xce8] sm:$0xff] }
 0x387   : > { %7980 = vmatpush1.bf16.msra.mxu1 %v7979_v38  ;;  %v1357_v38 = vld [vmem:[#allocation13 + $0xab8] sm:$0xff] }
 0x388   : > { %8108 = vmatpush1.bf16.msra.mxu0 %v8107_v40  ;;  %7982 = vmatprep.subr.bf16.mxu1 %v7981_v41  ;;  %v1365_v40 = vld [vmem:[#allocation13 + $0xaf8] sm:$0xff]  ;;  %v7999_v41 = vpack.c.bf16 %v1346_v30, %v1338_v29  ;;  %v8017_v30 = vpack.c.bf16 %v1427_v39, %v1419_v22  ;;  %v1492_v39 = vld [vmem:[#allocation13 + $0xef0] sm:$0xff] }
 0x389   : > { %8110 = vmatprep.subr.bf16.mxu0 %v8109_v44  ;;  %v1354_v44 = vld [vmem:[#allocation13 + $0xaa0] sm:$0xff]  ;;  %v8129_v47 = vpack.c.bf16 %v1365_v40, %v1357_v38  ;;  %v1435_v38 = vld [vmem:[#allocation13 + $0xd28] sm:$0xff] }
 0x38a   : > { %1917 = vmatmul.mubr.f32.vlgmr.msra.gmra.mrb[4].mxu1 %v10029_v58  ;;  %v8003_v55 = vpack.c.bf16 %v1362_v45, %v1354_v44  ;;  %v1443_v40 = vld [vmem:[#allocation13 + $0xd68] sm:$0xff]  ;;  %v8147_v44 = vpack.c.bf16 %v1428_v37, %v1420_v35  ;;  %v1498_v35 = vld [vmem:[#allocation13 + $0xf20] sm:$0xff]  ;;  %v1500_v37 = vld [vmem:[#allocation13 + $0xf30] sm:$0xff] }
 0x38b   : > { %2059 = vmatmul.mubr.f32.vlgmr.msra.gmra.mrb[6].mxu0 %v10029_v58  ;;  %7984 = vmatpush1.bf16.msra.mxu1 %v7983_v50  ;;  %v1333_v58 = vld [vmem:[#allocation13 + $0x9f8] sm:$0xff]  ;;  %v1371_v50 = vld [vmem:[#allocation13 + $0xb28] sm:$0xff]  ;;  %v8021_v45 = vpack.c.bf16 %v1443_v40, %v1435_v38  ;;  %v1508_v40 = vld [vmem:[#allocation13 + $0xf70] sm:$0xff] }
 0x38c   : > { %1987 = vmatprep.mubr.f32.mxu1 %v10033_v3  ;;  %8112 = vmatpush1.bf16.msra.mxu0 %v8111_v54  ;;  %v8121_v18 = vpack.c.bf16 %v1333_v58, %v1325_v12  ;;  %v1381_v54 = vld [vmem:[#allocation13 + $0xb78] sm:$0xff]  ;;  %v8005_v56 = vpack.c.bf16 %v1379_v51, %v1371_v50  ;;  %v1403_v12 = vld [vmem:[#allocation13 + $0xc28] sm:$0xff]  ;;  %v1444_v51 = vld [vmem:[#allocation13 + $0xd70] sm:$0xff] }
 0x38d   : > { %2129 = vmatprep.mubr.f32.mxu0 %v10033_v3  ;;  %7986 = vmatprep.subr.bf16.mxu1 %v7985_v57  ;;  %v1332_v3 = vld [vmem:[#allocation13 + $0x9f0] sm:$0xff]  ;;  %v1370_v57 = vld [vmem:[#allocation13 + $0xb20] sm:$0xff]  ;;  %v8133_v61 = vpack.c.bf16 %v1381_v54, %v1373_v52  ;;  %v1411_v58 = vld [vmem:[#allocation13 + $0xc68] sm:$0xff] }
 0x38e   : > { %8114 = vmatprep.subr.bf16.mxu0 %v8113_v62  ;;  %v8123_v27 = vpack.c.bf16 %v1332_v3, %v1324_v17  ;;  %v1380_v62 = vld [vmem:[#allocation13 + $0xb70] sm:$0xff]  ;;  %v8013_v16 = vpack.c.bf16 %v1411_v58, %v1403_v12  ;;  %v1402_v17 = vld [vmem:[#allocation13 + $0xc20] sm:$0xff]  ;;  %v1451_v52 = vld [vmem:[#allocation13 + $0xda8] sm:$0xff] }
 0x38f   : > { %7988 = vmatpush1.bf16.msra.mxu1 %v7987_v1  ;;  %v1389_v1 = vld [vmem:[#allocation13 + $0xbb8] sm:$0xff]  ;;  %v8135_v5 = vpack.c.bf16 %v1380_v62, %v1372_v60  ;;  %v1404_v3 = vld [vmem:[#allocation13 + $0xc30] sm:$0xff]  ;;  %v1459_v54 = vld [vmem:[#allocation13 + $0xde8] sm:$0xff] }
 0x390   : > { %8116 = vmatpush1.bf16.msra.mxu0 %v8115_v2  ;;  %7990 = vmatprep.subr.bf16.mxu1 %v7989_v4  ;;  %v1397_v2 = vld [vmem:[#allocation13 + $0xbf8] sm:$0xff]  ;;  %v8007_v4 = vpack.c.bf16 %v1378_v59, %v1370_v57  ;;  %v8143_v29 = vpack.c.bf16 %v1412_v20, %v1404_v3  ;;  %v8151_v57 = vpack.c.bf16 %v1444_v51, %v1436_v49  ;;  %v1450_v60 = vld [vmem:[#allocation13 + $0xda0] sm:$0xff]  ;;  %v1452_v62 = vld [vmem:[#allocation13 + $0xdb0] sm:$0xff] }
 0x391   : > { %8118 = vmatprep.subr.bf16.mxu0 %v8117_v8  ;;  %v1394_v8 = vld [vmem:[#allocation13 + $0xbe0] sm:$0xff]  ;;  %v8137_v10 = vpack.c.bf16 %v1397_v2, %v1389_v1  ;;  %v8025_v59 = vpack.c.bf16 %v1459_v54, %v1451_v52  ;;  %v1467_v1 = vld [vmem:[#allocation13 + $0xe28] sm:$0xff]  ;;  %v1476_v58 = vld [vmem:[#allocation13 + $0xe70] sm:$0xff] }
 0x392   : > { %v1475_v2 = vld [vmem:[#allocation13 + $0xe68] sm:$0xff]  ;;  %v1482_v3 = vld [vmem:[#allocation13 + $0xea0] sm:$0xff]  ;;  %v1484_v20 = vld [vmem:[#allocation13 + $0xeb0] sm:$0xff] }
 0x393   : > { %7992 = vmatpush1.bf16.msra.mxu1 %v7991_v33  ;;  %v1405_v33 = vld [vmem:[#allocation13 + $0xc38] sm:$0xff]  ;;  %v1514_v49 = vld [vmem:[#allocation13 + $0xfa0] sm:$0xff]  ;;  %v1516_v52 = vld [vmem:[#allocation13 + $0xfb0] sm:$0xff] }
 0x394   : > { %8120 = vmatpush1.bf16.msra.mxu0 %v8119_v13  ;;  %7994 = vmatprep.subr.bf16.mxu1 %v7993_v14  ;;  %v1413_v13 = vld [vmem:[#allocation13 + $0xc78] sm:$0xff]  ;;  %v8011_v14 = vpack.c.bf16 %v1394_v8, %v1386_v7  ;;  %v8155_v7 = vpack.c.bf16 %v1460_v0, %v1452_v62  ;;  %v8029_v8 = vpack.c.bf16 %v1475_v2, %v1467_v1  ;;  %v1524_v54 = vld [vmem:[#allocation13 + $0xff0] sm:$0xff]  ;;  %v8405_v2 = vld [vmem:[%s9990_s11 + $0x9c] ss:$36 sps:$4 sm:$0xff]  }
 0x395   : > { %8122 = vmatprep.subr.bf16.mxu0 %v8121_v18  ;;  %v1410_v18 = vld [vmem:[#allocation13 + $0xc60] sm:$0xff]  ;;  %v8141_v19 = vpack.c.bf16 %v1413_v13, %v1405_v33  ;;  %v1483_v33 = vld [vmem:[#allocation13 + $0xea8] sm:$0xff]  ;;  %v8397_v0 = vld [vmem:[%s9990_s11 + $0x50] ss:$36 sps:$4 sm:$0xff]  }
 0x396   : > { %v1491_v13 = vld [vmem:[#allocation13 + $0xee8] sm:$0xff]  ;;  %v8399_v62 = vld [vmem:[%s9990_s11 + $0x54] ss:$36 sps:$4 sm:$0xff]  }
 0x397   : > { %7996 = vmatpush1.bf16.msra.mxu1 %v7995_v26  ;;  %v1421_v26 = vld [vmem:[#allocation13 + $0xcb8] sm:$0xff] }
 0x398   : > { %8124 = vmatpush1.bf16.msra.mxu0 %v8123_v27  ;;  %7998 = vmatprep.subr.bf16.mxu1 %v7997_v28  ;;  %v1429_v27 = vld [vmem:[#allocation13 + $0xcf8] sm:$0xff]  ;;  %v8015_v28 = vpack.c.bf16 %v1410_v18, %v1402_v17  ;;  %v8159_v17 = vpack.c.bf16 %v1476_v58, %v1468_v11  ;;  %v8033_v18 = vpack.c.bf16 %v1491_v13, %v1483_v33  ;;  %v8412_v11 = vld [vmem:[%s9990_s11 + $0x120] ss:$36 sps:$4 sm:$0xff]   ;;  %v8418_v13 = vld [vmem:[%s9990_s11 + $0x168] ss:$36 sps:$4 sm:$0xff]  }
 0x399   : > { %8126 = vmatprep.subr.bf16.mxu0 %v8125_v32  ;;  %v1426_v32 = vld [vmem:[#allocation13 + $0xce0] sm:$0xff]  ;;  %v8145_v36 = vpack.c.bf16 %v1429_v27, %v1421_v26  ;;  %v1499_v26 = vld [vmem:[#allocation13 + $0xf28] sm:$0xff]  ;;  %v8420_v58 = vld [vmem:[%s9990_s11 + $0x16c] ss:$36 sps:$4 sm:$0xff]  }
 0x39a   : > { %v1507_v27 = vld [vmem:[#allocation13 + $0xf68] sm:$0xff]  ;;  %v8402_v1 = vld [vmem:[%s9990_s11 + $0x94] ss:$36 sps:$4 sm:$0xff]  }
 0x39b   : > { %8000 = vmatpush1.bf16.msra.mxu1 %v7999_v41  ;;  %v1437_v41 = vld [vmem:[#allocation13 + $0xd38] sm:$0xff] }
 0x39c   : > { %8128 = vmatpush1.bf16.msra.mxu0 %v8127_v42  ;;  %8002 = vmatprep.subr.bf16.mxu1 %v8001_v43  ;;  %v1445_v42 = vld [vmem:[#allocation13 + $0xd78] sm:$0xff]  ;;  %v8019_v43 = vpack.c.bf16 %v1426_v32, %v1418_v31  ;;  %v8163_v31 = vpack.c.bf16 %v1492_v39, %v1484_v20  ;;  %v8037_v32 = vpack.c.bf16 %v1507_v27, %v1499_v26  ;;  %v8430_v20 = vld [vmem:[%s9990_s11 + $0x1f8] ss:$36 sps:$4 sm:$0xff]   ;;  %v8438_v39 = vld [vmem:[%s9990_s11 + $0x244] ss:$36 sps:$4 sm:$0xff]  }
 0x39d   : > { %8130 = vmatprep.subr.bf16.mxu0 %v8129_v47  ;;  %v1442_v47 = vld [vmem:[#allocation13 + $0xd60] sm:$0xff]  ;;  %v8149_v50 = vpack.c.bf16 %v1445_v42, %v1437_v41  ;;  %v1515_v41 = vld [vmem:[#allocation13 + $0xfa8] sm:$0xff]  ;;  %v8441_v26 = vld [vmem:[%s9990_s11 + $0x24c] ss:$36 sps:$4 sm:$0xff]  }
 0x39e   : > { %v1523_v42 = vld [vmem:[#allocation13 + $0xfe8] sm:$0xff]  ;;  %v8423_v33 = vld [vmem:[%s9990_s11 + $0x174] ss:$36 sps:$4 sm:$0xff]  }
 0x39f   : > { %8004 = vmatpush1.bf16.msra.mxu1 %v8003_v55  ;;  %v1453_v55 = vld [vmem:[#allocation13 + $0xdb8] sm:$0xff]  ;;  %v8436_v27 = vld [vmem:[%s9990_s11 + $0x240] ss:$36 sps:$4 sm:$0xff]  }
 0x3a0   : > { %8132 = vmatpush1.bf16.msra.mxu0 %v8131_v53  ;;  %8006 = vmatprep.subr.bf16.mxu1 %v8005_v56  ;;  %v1461_v53 = vld [vmem:[#allocation13 + $0xdf8] sm:$0xff]  ;;  %v8023_v56 = vpack.c.bf16 %v1442_v47, %v1434_v46  ;;  %v8167_v46 = vpack.c.bf16 %v1508_v40, %v1500_v37  ;;  %v8041_v47 = vpack.c.bf16 %v1523_v42, %v1515_v41  ;;  %v8456_v40 = vld [vmem:[%s9990_s11 + $0x31c] ss:$36 sps:$4 sm:$0xff]   ;;  %v8459_v41 = vld [vmem:[%s9990_s11 + $0x324] ss:$36 sps:$4 sm:$0xff]  }
 0x3a1   : > { %8134 = vmatprep.subr.bf16.mxu0 %v8133_v61  ;;  %v1458_v61 = vld [vmem:[#allocation13 + $0xde0] sm:$0xff]  ;;  %v8153_v63 = vpack.c.bf16 %v1461_v53, %v1453_v55  ;;  %v8171_v53 = vpack.c.bf16 %v1524_v54, %v1516_v52  ;;  %v8448_v37 = vld [vmem:[%s9990_s11 + $0x2d0] ss:$36 sps:$4 sm:$0xff]  }
 0x3a2   : > { %v8454_v42 = vld [vmem:[%s9990_s11 + $0x318] ss:$36 sps:$4 sm:$0xff]   ;;  %v8469_v52 = vld [vmem:[%s9990_s11 + $0x3b0] ss:$36 sps:$4 sm:$0xff]  }
 0x3a3   : > { %8008 = vmatpush1.bf16.msra.mxu1 %v8007_v4  ;;  %v1469_v4 = vld [vmem:[#allocation13 + $0xe38] sm:$0xff] }
 0x3a4   : > { %8136 = vmatpush1.bf16.msra.mxu0 %v8135_v5  ;;  %8010 = vmatprep.subr.bf16.mxu1 %v8009_v6  ;;  %v1477_v5 = vld [vmem:[#allocation13 + $0xe78] sm:$0xff]  ;;  %v8027_v6 = vpack.c.bf16 %v1458_v61, %v1450_v60  ;;  %v8391_v60 = vld [vmem:[%s9990_s11 + $0x8] ss:$36 sps:$4 sm:$0xff]  }
 0x3a5   : > { %8138 = vmatprep.subr.bf16.mxu0 %v8137_v10  ;;  %v1474_v10 = vld [vmem:[#allocation13 + $0xe60] sm:$0xff]  ;;  %v8157_v12 = vpack.c.bf16 %v1477_v5, %v1469_v4  ;;  %v8396_v61 = vld [vmem:[%s9990_s11 + $0x4c] ss:$36 sps:$4 sm:$0xff]  }
 0x3a6   : > { %v8400_v4 = vld [vmem:[%s9990_s11 + $0x90] ss:$36 sps:$4 sm:$0xff]   ;;  %v8403_v5 = vld [vmem:[%s9990_s11 + $0x98] ss:$36 sps:$4 sm:$0xff]  }
 0x3a7   : > { %8012 = vmatpush1.bf16.msra.mxu1 %v8011_v14  ;;  %v1485_v14 = vld [vmem:[#allocation13 + $0xeb8] sm:$0xff] }
 0x3a8   : > { %8140 = vmatpush1.bf16.msra.mxu0 %v8139_v15  ;;  %8014 = vmatprep.subr.bf16.mxu1 %v8013_v16  ;;  %v1493_v15 = vld [vmem:[#allocation13 + $0xef8] sm:$0xff]  ;;  %v8031_v16 = vpack.c.bf16 %v1474_v10, %v1466_v9  ;;  %v8414_v9 = vld [vmem:[%s9990_s11 + $0x124] ss:$36 sps:$4 sm:$0xff]  }
 0x3a9   : > { %8142 = vmatprep.subr.bf16.mxu0 %v8141_v19  ;;  %v1490_v19 = vld [vmem:[#allocation13 + $0xee0] sm:$0xff]  ;;  %v8161_v22 = vpack.c.bf16 %v1493_v15, %v1485_v14  ;;  %v8417_v10 = vld [vmem:[%s9990_s11 + $0x12c] ss:$36 sps:$4 sm:$0xff]  }
 0x3aa   : > { %v8421_v14 = vld [vmem:[%s9990_s11 + $0x170] ss:$36 sps:$4 sm:$0xff]  }
 0x3ab   : > { %8016 = vmatpush1.bf16.msra.mxu1 %v8015_v28  ;;  %v1501_v28 = vld [vmem:[#allocation13 + $0xf38] sm:$0xff] }
 0x3ac   : > { %8144 = vmatpush1.bf16.msra.mxu0 %v8143_v29  ;;  %8018 = vmatprep.subr.bf16.mxu1 %v8017_v30  ;;  %v1509_v29 = vld [vmem:[#allocation13 + $0xf78] sm:$0xff]  ;;  %v8035_v30 = vpack.c.bf16 %v1490_v19, %v1482_v3  ;;  %v8432_v3 = vld [vmem:[%s9990_s11 + $0x1fc] ss:$36 sps:$4 sm:$0xff]   ;;  %v8435_v19 = vld [vmem:[%s9990_s11 + $0x204] ss:$36 sps:$4 sm:$0xff]  }
 0x3ad   : > { %8146 = vmatprep.subr.bf16.mxu0 %v8145_v36  ;;  %v1506_v36 = vld [vmem:[#allocation13 + $0xf60] sm:$0xff]  ;;  %v8165_v38 = vpack.c.bf16 %v1509_v29, %v1501_v28  ;;  %v8439_v28 = vld [vmem:[%s9990_s11 + $0x248] ss:$36 sps:$4 sm:$0xff]  }
 0x3ae   : > { %v8426_v15 = vld [vmem:[%s9990_s11 + $0x1b4] ss:$36 sps:$4 sm:$0xff]   ;;  %v8444_v29 = vld [vmem:[%s9990_s11 + $0x28c] ss:$36 sps:$4 sm:$0xff]  }
 0x3af   : > { %8020 = vmatpush1.bf16.msra.mxu1 %v8019_v43  ;;  %v1517_v43 = vld [vmem:[#allocation13 + $0xfb8] sm:$0xff] }
 0x3b0   : > { %8148 = vmatpush1.bf16.msra.mxu0 %v8147_v44  ;;  %8022 = vmatprep.subr.bf16.mxu1 %v8021_v45  ;;  %v1525_v44 = vld [vmem:[#allocation13 + $0xff8] sm:$0xff]  ;;  %v8039_v45 = vpack.c.bf16 %v1506_v36, %v1498_v35  ;;  %v8453_v36 = vld [vmem:[%s9990_s11 + $0x2dc] ss:$36 sps:$4 sm:$0xff]  }
 0x3b1   : > { %8150 = vmatprep.subr.bf16.mxu0 %v8149_v50  ;;  %v1522_v50 = vld [vmem:[#allocation13 + $0xfe0] sm:$0xff]  ;;  %v8169_v51 = vpack.c.bf16 %v1525_v44, %v1517_v43  ;;  %v8457_v43 = vld [vmem:[%s9990_s11 + $0x320] ss:$36 sps:$4 sm:$0xff]  }
 0x3b2   : > { %v8043_v55 = vpack.c.bf16 %v1522_v50, %v1514_v49  ;;  %v8450_v35 = vld [vmem:[%s9990_s11 + $0x2d4] ss:$36 sps:$4 sm:$0xff]   ;;  %v8462_v44 = vld [vmem:[%s9990_s11 + $0x364] ss:$36 sps:$4 sm:$0xff]   ;;  %v8468_v49 = vld [vmem:[%s9990_s11 + $0x3ac] ss:$36 sps:$4 sm:$0xff]  }
 0x3b3   : > { %8024 = vmatpush1.bf16.msra.mxu1 %v8023_v56  ;;  %v8390_v56 = vld [vmem:[%s9990_s11 + $0x4] ss:$36 sps:$4 sm:$0xff]   ;;  %v8471_v50 = vld [vmem:[%s9990_s11 + $0x3b4] ss:$36 sps:$4 sm:$0xff]  }
 0x3b4   : > { %8152 = vmatpush1.bf16.msra.mxu0 %v8151_v57  ;;  %8026 = vmatprep.subr.bf16.mxu1 %v8025_v59  ;;  %v8393_v57 = vld [vmem:[%s9990_s11 + $0xc] ss:$36 sps:$4 sm:$0xff]   ;;  %v8388_v59 = vld [vmem:[%s9990_s11] ss:$36 sps:$4 sm:$0xff]   ;;  %v8474_v54 = vld [vmem:[%s9990_s11 + $0x3f4] ss:$36 sps:$4 sm:$0xff]  }
 0x3b5   : > { %8154 = vmatprep.subr.bf16.mxu0 %v8153_v63  ;;  %v8394_v63 = vld [vmem:[%s9990_s11 + $0x48] ss:$36 sps:$4 sm:$0xff]  }
 0x3b7   : > { %8028 = vmatpush1.bf16.msra.mxu1 %v8027_v6  ;;  %v8411_v6 = vld [vmem:[%s9990_s11 + $0xe4] ss:$36 sps:$4 sm:$0xff]  }
 0x3b8   : > { %8156 = vmatpush1.bf16.msra.mxu0 %v8155_v7  ;;  %8030 = vmatprep.subr.bf16.mxu1 %v8029_v8  ;;  %v8406_v7 = vld [vmem:[%s9990_s11 + $0xd8] ss:$36 sps:$4 sm:$0xff]   ;;  %v8409_v8 = vld [vmem:[%s9990_s11 + $0xe0] ss:$36 sps:$4 sm:$0xff]  }
 0x3b9   : > { %8158 = vmatprep.subr.bf16.mxu0 %v8157_v12  ;;  %v8415_v12 = vld [vmem:[%s9990_s11 + $0x128] ss:$36 sps:$4 sm:$0xff]  }
 0x3bb   : > { %8032 = vmatpush1.bf16.msra.mxu1 %v8031_v16  ;;  %v8429_v16 = vld [vmem:[%s9990_s11 + $0x1bc] ss:$36 sps:$4 sm:$0xff]  }
 0x3bc   : > { %8160 = vmatpush1.bf16.msra.mxu0 %v8159_v17  ;;  %8034 = vmatprep.subr.bf16.mxu1 %v8033_v18  ;;  %v8424_v17 = vld [vmem:[%s9990_s11 + $0x1b0] ss:$36 sps:$4 sm:$0xff]   ;;  %v8427_v18 = vld [vmem:[%s9990_s11 + $0x1b8] ss:$36 sps:$4 sm:$0xff]  }
 0x3bd   : > { %8162 = vmatprep.subr.bf16.mxu0 %v8161_v22  ;;  %v8433_v22 = vld [vmem:[%s9990_s11 + $0x200] ss:$36 sps:$4 sm:$0xff]  }
 0x3bf   : > { %8036 = vmatpush1.bf16.msra.mxu1 %v8035_v30  ;;  %v8447_v30 = vld [vmem:[%s9990_s11 + $0x294] ss:$36 sps:$4 sm:$0xff]  }
 0x3c0   : > { %8164 = vmatpush1.bf16.msra.mxu0 %v8163_v31  ;;  %8038 = vmatprep.subr.bf16.mxu1 %v8037_v32  ;;  %v8442_v31 = vld [vmem:[%s9990_s11 + $0x288] ss:$36 sps:$4 sm:$0xff]   ;;  %v8445_v32 = vld [vmem:[%s9990_s11 + $0x290] ss:$36 sps:$4 sm:$0xff]  }
 0x3c1   : > { %8166 = vmatprep.subr.bf16.mxu0 %v8165_v38  ;;  %v8451_v38 = vld [vmem:[%s9990_s11 + $0x2d8] ss:$36 sps:$4 sm:$0xff]  }
 0x3c3   : > { %8040 = vmatpush1.bf16.msra.mxu1 %v8039_v45  ;;  %v8465_v45 = vld [vmem:[%s9990_s11 + $0x36c] ss:$36 sps:$4 sm:$0xff]  }
 0x3c4   : > { %8168 = vmatpush1.bf16.msra.mxu0 %v8167_v46  ;;  %8042 = vmatprep.subr.bf16.mxu1 %v8041_v47  ;;  %v8460_v46 = vld [vmem:[%s9990_s11 + $0x360] ss:$36 sps:$4 sm:$0xff]   ;;  %v8463_v47 = vld [vmem:[%s9990_s11 + $0x368] ss:$36 sps:$4 sm:$0xff]  }
 0x3c5   : > { %8170 = vmatprep.subr.bf16.mxu0 %v8169_v51  ;;  %v8466_v51 = vld [vmem:[%s9990_s11 + $0x3a8] ss:$36 sps:$4 sm:$0xff]  }
 0x3c7   : > { %8044 = vmatpush1.bf16.msra.mxu1 %v8043_v55  ;;  %v8477_v55 = vld [vmem:[%s9990_s11 + $0x3fc] ss:$36 sps:$4 sm:$0xff]  }
 0x3c8   : > { %8172 = vmatpush1.bf16.msra.mxu0 %v8171_v53  ;;  %5785 = vmatprep.subr.bf16.mxu1 %v8390_v56  ;;  %v8472_v53 = vld [vmem:[%s9990_s11 + $0x3f0] ss:$36 sps:$4 sm:$0xff]   ;;  %v8475_v56 = vld [vmem:[%s9990_s11 + $0x3f8] ss:$36 sps:$4 sm:$0xff]  }
 0x3c9   : > { %5949 = vmatprep.subr.bf16.mxu0 %v8393_v57  ;;  %v8480_v57 = vld [vmem:[%s9990_s11 + $0x43c] ss:$36 sps:$4 sm:$0xff]  }
 0x3ca   : > { %1988 = vmatmul.mubr.f32.vlgmr.msra.gmra.mrb[4].mxu1 %v10045_v25 }
 0x3cb   : > { %2130 = vmatmul.mubr.f32.vlgmr.msra.gmra.mrb[6].mxu0 %v10045_v25  ;;  %5786 = vmatpush1.bf16.msra.mxu1 %v8388_v59  ;;  %v8408_v25 = vld [vmem:[%s9990_s11 + $0xdc] ss:$36 sps:$4 sm:$0xff]   ;;  %v8483_v59 = vld [vmem:[%s9990_s11 + $0x444] ss:$36 sps:$4 sm:$0xff]  }
 0x3cc   : > { %5950 = vmatpush1.bf16.msra.mxu0 %v8391_v60  ;;  %5787 = vmatprep.subr.bf16.mxu1 %v8396_v61  ;;  %v8478_v60 = vld [vmem:[%s9990_s11 + $0x438] ss:$36 sps:$4 sm:$0xff]   ;;  %v8481_v61 = vld [vmem:[%s9990_s11 + $0x440] ss:$36 sps:$4 sm:$0xff]  }
 0x3cd   : > { %5951 = vmatprep.subr.bf16.mxu0 %v8399_v62  ;;  %v8486_v62 = vld [vmem:[%s9990_s11 + $0x484] ss:$36 sps:$4 sm:$0xff]  }
 0x3cf   : > { %5788 = vmatpush1.bf16.msra.mxu1 %v8394_v63  ;;  %v8489_v63 = vld [vmem:[%s9990_s11 + $0x48c] ss:$36 sps:$4 sm:$0xff]  }
 0x3d0   : > { %5952 = vmatpush1.bf16.msra.mxu0 %v8397_v0  ;;  %5789 = vmatprep.subr.bf16.mxu1 %v8402_v1  ;;  %v10123_v0 = vld [vmem:[#allocation15] sm:$0xff] }
 0x3d1   : > { %5953 = vmatprep.subr.bf16.mxu0 %v8405_v2  ;;  %v1531_v1 = vrot.slane %v10123_v0, %v9999_v23  ;;  %v1535_v2 = vrot.slane %v10123_v0, %v10002_v24 }
 0x3d3   : > { %5790 = vmatpush1.bf16.msra.mxu1 %v8400_v4  ;;  %v1543_v4 = vrot.slane %v10123_v0, %v10017_v34 }
 0x3d4   : > { %5954 = vmatpush1.bf16.msra.mxu0 %v8403_v5  ;;  %5791 = vmatprep.subr.bf16.mxu1 %v8408_v25 }
 0x3d5   : > { %5955 = vmatprep.subr.bf16.mxu0 %v8411_v6 }
 0x3d7   : > { %5792 = vmatpush1.bf16.msra.mxu1 %v8406_v7 }
 0x3d8   : > { %5956 = vmatpush1.bf16.msra.mxu0 %v8409_v8  ;;  %5793 = vmatprep.subr.bf16.mxu1 %v8414_v9 }
 0x3d9   : > { %5957 = vmatprep.subr.bf16.mxu0 %v8417_v10 }
 0x3db   : > { %5794 = vmatpush1.bf16.msra.mxu1 %v8412_v11 }
 0x3dc   : > { %5958 = vmatpush1.bf16.msra.mxu0 %v8415_v12  ;;  %5795 = vmatprep.subr.bf16.mxu1 %v8420_v58 }
 0x3dd   : > { %5959 = vmatprep.subr.bf16.mxu0 %v8423_v33 }
 0x3df   : > { %5796 = vmatpush1.bf16.msra.mxu1 %v8418_v13  ;;  %v8484_v13 = vld [vmem:[%s9990_s11 + $0x480] ss:$36 sps:$4 sm:$0xff]  }
 0x3e0   : > { %5960 = vmatpush1.bf16.msra.mxu0 %v8421_v14  ;;  %5797 = vmatprep.subr.bf16.mxu1 %v8426_v15  ;;  %v8487_v14 = vld [vmem:[%s9990_s11 + $0x488] ss:$36 sps:$4 sm:$0xff]  }
 0x3e1   : > { %5961 = vmatprep.subr.bf16.mxu0 %v8429_v16  ;;  %v8492_v16 = vld [vmem:[%s9990_s11 + $0x4cc] ss:$36 sps:$4 sm:$0xff]  }
 0x3e3   : > { %5798 = vmatpush1.bf16.msra.mxu1 %v8424_v17  ;;  %v8495_v17 = vld [vmem:[%s9990_s11 + $0x4d4] ss:$36 sps:$4 sm:$0xff]  }
 0x3e4   : > { %5962 = vmatpush1.bf16.msra.mxu0 %v8427_v18  ;;  %5799 = vmatprep.subr.bf16.mxu1 %v8432_v3  ;;  %v8490_v3 = vld [vmem:[%s9990_s11 + $0x4c8] ss:$36 sps:$4 sm:$0xff]  }
 0x3e5   : > { %5963 = vmatprep.subr.bf16.mxu0 %v8435_v19  ;;  %v8493_v19 = vld [vmem:[%s9990_s11 + $0x4d0] ss:$36 sps:$4 sm:$0xff]  }
 0x3e7   : > { %5800 = vmatpush1.bf16.msra.mxu1 %v8430_v20  ;;  %v8498_v20 = vld [vmem:[%s9990_s11 + $0x514] ss:$36 sps:$4 sm:$0xff]  }
 0x3e8   : > { %5964 = vmatpush1.bf16.msra.mxu0 %v8433_v22  ;;  %5801 = vmatprep.subr.bf16.mxu1 %v8438_v39  ;;  %v8501_v22 = vld [vmem:[%s9990_s11 + $0x51c] ss:$36 sps:$4 sm:$0xff]   ;;  %v8496_v39 = vld [vmem:[%s9990_s11 + $0x510] ss:$36 sps:$4 sm:$0xff]  }
 0x3e9   : > { %5965 = vmatprep.subr.bf16.mxu0 %v8441_v26  ;;  %v8499_v26 = vld [vmem:[%s9990_s11 + $0x518] ss:$36 sps:$4 sm:$0xff]  }
 0x3eb   : > { %5802 = vmatpush1.bf16.msra.mxu1 %v8436_v27  ;;  %v8504_v27 = vld [vmem:[%s9990_s11 + $0x55c] ss:$36 sps:$4 sm:$0xff]  }
 0x3ec   : > { %5966 = vmatpush1.bf16.msra.mxu0 %v8439_v28  ;;  %5803 = vmatprep.subr.bf16.mxu1 %v8444_v29  ;;  %v8507_v28 = vld [vmem:[%s9990_s11 + $0x564] ss:$36 sps:$4 sm:$0xff]   ;;  %v8502_v29 = vld [vmem:[%s9990_s11 + $0x558] ss:$36 sps:$4 sm:$0xff]  }
 0x3ed   : > { %5967 = vmatprep.subr.bf16.mxu0 %v8447_v30  ;;  %v8505_v30 = vld [vmem:[%s9990_s11 + $0x560] ss:$36 sps:$4 sm:$0xff]  }
 0x3ef   : > { %5804 = vmatpush1.bf16.msra.mxu1 %v8442_v31  ;;  %v8510_v31 = vld [vmem:[%s9990_s11 + $0x5a4] ss:$36 sps:$4 sm:$0xff]  }
 0x3f0   : > { %5968 = vmatpush1.bf16.msra.mxu0 %v8445_v32  ;;  %5805 = vmatprep.subr.bf16.mxu1 %v8450_v35  ;;  %v8513_v32 = vld [vmem:[%s9990_s11 + $0x5ac] ss:$36 sps:$4 sm:$0xff]   ;;  %v8508_v35 = vld [vmem:[%s9990_s11 + $0x5a0] ss:$36 sps:$4 sm:$0xff]  }
 0x3f1   : > { %5969 = vmatprep.subr.bf16.mxu0 %v8453_v36  ;;  %v8511_v36 = vld [vmem:[%s9990_s11 + $0x5a8] ss:$36 sps:$4 sm:$0xff]  }
 0x3f3   : > { %5806 = vmatpush1.bf16.msra.mxu1 %v8448_v37  ;;  %v8516_v37 = vld [vmem:[%s9990_s11 + $0x5ec] ss:$36 sps:$4 sm:$0xff]  }
 0x3f4   : > { %5970 = vmatpush1.bf16.msra.mxu0 %v8451_v38  ;;  %5807 = vmatprep.subr.bf16.mxu1 %v8456_v40  ;;  %v8519_v38 = vld [vmem:[%s9990_s11 + $0x5f4] ss:$36 sps:$4 sm:$0xff]   ;;  %v8514_v40 = vld [vmem:[%s9990_s11 + $0x5e8] ss:$36 sps:$4 sm:$0xff]  }
 0x3f5   : > { %5971 = vmatprep.subr.bf16.mxu0 %v8459_v41  ;;  %v8517_v41 = vld [vmem:[%s9990_s11 + $0x5f0] ss:$36 sps:$4 sm:$0xff]  }
 0x3f7   : > { %5808 = vmatpush1.bf16.msra.mxu1 %v8454_v42  ;;  %v8522_v42 = vld [vmem:[%s9990_s11 + $0x634] ss:$36 sps:$4 sm:$0xff]  }
 0x3f8   : > { %5972 = vmatpush1.bf16.msra.mxu0 %v8457_v43  ;;  %5809 = vmatprep.subr.bf16.mxu1 %v8462_v44  ;;  %v8525_v43 = vld [vmem:[%s9990_s11 + $0x63c] ss:$36 sps:$4 sm:$0xff]   ;;  %v8520_v44 = vld [vmem:[%s9990_s11 + $0x630] ss:$36 sps:$4 sm:$0xff]  }
 0x3f9   : > { %5973 = vmatprep.subr.bf16.mxu0 %v8465_v45  ;;  %v8523_v45 = vld [vmem:[%s9990_s11 + $0x638] ss:$36 sps:$4 sm:$0xff]  }
 0x3fb   : > { %5810 = vmatpush1.bf16.msra.mxu1 %v8460_v46  ;;  %v8528_v46 = vld [vmem:[%s9990_s11 + $0x67c] ss:$36 sps:$4 sm:$0xff]  }
 0x3fc   : > { %5974 = vmatpush1.bf16.msra.mxu0 %v8463_v47  ;;  %5811 = vmatprep.subr.bf16.mxu1 %v8468_v49  ;;  %v8531_v47 = vld [vmem:[%s9990_s11 + $0x684] ss:$36 sps:$4 sm:$0xff]   ;;  %v8526_v49 = vld [vmem:[%s9990_s11 + $0x678] ss:$36 sps:$4 sm:$0xff]  }
 0x3fd   : > { %5975 = vmatprep.subr.bf16.mxu0 %v8471_v50  ;;  %v8529_v50 = vld [vmem:[%s9990_s11 + $0x680] ss:$36 sps:$4 sm:$0xff]  }
 0x3ff   : > { %5812 = vmatpush1.bf16.msra.mxu1 %v8466_v51  ;;  %v8534_v51 = vld [vmem:[%s9990_s11 + $0x6c4] ss:$36 sps:$4 sm:$0xff]  }
 0x400   : > { %5976 = vmatpush1.bf16.msra.mxu0 %v8469_v52  ;;  %5813 = vmatprep.subr.bf16.mxu1 %v8474_v54  ;;  %v8537_v52 = vld [vmem:[%s9990_s11 + $0x6cc] ss:$36 sps:$4 sm:$0xff]   ;;  %v8532_v54 = vld [vmem:[%s9990_s11 + $0x6c0] ss:$36 sps:$4 sm:$0xff]  }
 0x401   : > { %5977 = vmatprep.subr.bf16.mxu0 %v8477_v55  ;;  %v8535_v55 = vld [vmem:[%s9990_s11 + $0x6c8] ss:$36 sps:$4 sm:$0xff]  }
 0x403   : > { %5814 = vmatpush1.bf16.msra.mxu1 %v8472_v53  ;;  %v8540_v53 = vld [vmem:[%s9990_s11 + $0x70c] ss:$36 sps:$4 sm:$0xff]  }
 0x404   : > { %5978 = vmatpush1.bf16.msra.mxu0 %v8475_v56  ;;  %5815 = vmatprep.subr.bf16.mxu1 %v8480_v57  ;;  %v8543_v56 = vld [vmem:[%s9990_s11 + $0x714] ss:$36 sps:$4 sm:$0xff]   ;;  %v8538_v57 = vld [vmem:[%s9990_s11 + $0x708] ss:$36 sps:$4 sm:$0xff]  }
 0x405   : > { %5979 = vmatprep.subr.bf16.mxu0 %v8483_v59  ;;  %v8541_v59 = vld [vmem:[%s9990_s11 + $0x710] ss:$36 sps:$4 sm:$0xff]  }
 0x407   : > { %5816 = vmatpush1.bf16.msra.mxu1 %v8478_v60  ;;  %v8546_v60 = vld [vmem:[%s9990_s11 + $0x754] ss:$36 sps:$4 sm:$0xff]  }
 0x408   : > { %5980 = vmatpush1.bf16.msra.mxu0 %v8481_v61  ;;  %5826 = vmatprep.subr.bf16.mxu1 %v8486_v62  ;;  %v8549_v61 = vld [vmem:[%s9990_s11 + $0x75c] ss:$36 sps:$4 sm:$0xff]   ;;  %v8544_v62 = vld [vmem:[%s9990_s11 + $0x750] ss:$36 sps:$4 sm:$0xff]  }
 0x409   : > { %5990 = vmatprep.subr.bf16.mxu0 %v8489_v63  ;;  %v8547_v63 = vld [vmem:[%s9990_s11 + $0x758] ss:$36 sps:$4 sm:$0xff]  }
 0x41d   : > { %v1705_v5 = vpop.f32.mrb[2].mxu1  ;;  %v10131_v25 = vpop.f32.mrb[4].mxu0 }
 0x41e   : > { %v8173_v6 = vadd.f32 %v1705_v5, %v1531_v1  ;;  %v1707_v7 = vpop.f32.mrb[3].mxu1  ;;  %v1849_v8 = vpop.f32.mrb[5].mxu0  ;;  %v8552_v1 = vld [vmem:[%s9990_s11 + $0x79c] ss:$36 sps:$4 sm:$0xff]  }
 0x41f   : > { %v8174_v9 = vadd.f32 %v1707_v7, %v1535_v2  ;;  %v8176_v10 = vadd.f32 %v1849_v8, %v1543_v4  ;;  %v8555_v2 = vld [vmem:[%s9990_s11 + $0x7a4] ss:$36 sps:$4 sm:$0xff]   ;;  %v8550_v4 = vld [vmem:[%s9990_s11 + $0x798] ss:$36 sps:$4 sm:$0xff]   ;;  %v8561_v7 = vld [vmem:[%s9990_s11 + $0x7ec] ss:$36 sps:$4 sm:$0xff]  }
 0x420   : > { %v2136_v11 = vmax.f32 %v8173_v6, 0.0  ;;  %v8553_v5 = vld [vmem:[%s9990_s11 + $0x7a0] ss:$36 sps:$4 sm:$0xff]  }
 0x421   : > { %v2137_v12 = vmax.f32 %v8174_v9, 0.0  ;;  %v2139_v58 = vmax.f32 %v8176_v10, 0.0  ;;  %v8558_v6 = vld [vmem:[%s9990_s11 + $0x7e4] ss:$36 sps:$4 sm:$0xff]   ;;  %v8564_v10 = vld [vmem:[%s9990_s11 + $0x82c] ss:$36 sps:$4 sm:$0xff]  }
 0x422   : > { %v10137_v15 = vpack.c.bf16 %v2136_v11, %v2136_v11  ;;  %v8556_v8 = vld [vmem:[%s9990_s11 + $0x7e0] ss:$36 sps:$4 sm:$0xff]   ;;  %v8559_v9 = vld [vmem:[%s9990_s11 + $0x7e8] ss:$36 sps:$4 sm:$0xff]   ;;  %v8567_v11 = vld [vmem:[%s9990_s11 + $0x834] ss:$36 sps:$4 sm:$0xff]  }
 0x423   : > { %v10133_v33 = vpack.c.bf16 %v2137_v12, %v2137_v12  ;;  %v10143_v18 = vpack.c.bf16 %v2139_v58, %v2139_v58  ;;  %v8562_v12 = vld [vmem:[%s9990_s11 + $0x828] ss:$36 sps:$4 sm:$0xff]   ;;  %v8565_v58 = vld [vmem:[%s9990_s11 + $0x830] ss:$36 sps:$4 sm:$0xff]  }
 0x425   : > { %5817 = vmatprep.mubr.bf16.mxu1 %v10133_v33  ;;  %5981 = vmatprep.mubr.bf16.mxu0 %v10133_v33 }
 0x426   : > { %5818 = vmatmul.mubr.bf16.vlgmr.msra.gmra.mrb[8].mxu1 %v10137_v15  ;;  %5982 = vmatmul.mubr.bf16.vlgmr.msra.gmra.mrb[8].mxu0 %v10137_v15 }
 0x427   : > { %5827 = vmatpush1.bf16.msra.mxu1 %v8484_v13  ;;  %5991 = vmatpush1.bf16.msra.mxu0 %v8487_v14  ;;  %v1539_v13 = vrot.slane %v10123_v0, %v10040_v48  ;;  %v8570_v14 = vld [vmem:[%s9990_s11 + $0x874] ss:$36 sps:$4 sm:$0xff]  }
 0x428   : > { %5858 = vmatprep.mubr.bf16.mxu1 %v10143_v18  ;;  %6022 = vmatprep.mubr.bf16.mxu0 %v10143_v18 }
 0x429   : > { %5828 = vmatprep.subr.bf16.mxu1 %v8492_v16  ;;  %5992 = vmatprep.subr.bf16.mxu0 %v8495_v17  ;;  %v8573_v16 = vld [vmem:[%s9990_s11 + $0x87c] ss:$36 sps:$4 sm:$0xff]   ;;  %v8568_v17 = vld [vmem:[%s9990_s11 + $0x870] ss:$36 sps:$4 sm:$0xff]  }
 0x42b   : > { %5829 = vmatpush1.bf16.msra.mxu1 %v8490_v3  ;;  %5993 = vmatpush1.bf16.msra.mxu0 %v8493_v19  ;;  %v8571_v3 = vld [vmem:[%s9990_s11 + $0x878] ss:$36 sps:$4 sm:$0xff]   ;;  %v8175_v19 = vadd.f32 %v10131_v25, %v1539_v13  ;;  %v8580_v25 = vld [vmem:[%s9990_s11 + $0x900] ss:$36 sps:$4 sm:$0xff]  }
 0x42c   : > { %5830 = vmatprep.subr.bf16.mxu1 %v8498_v20  ;;  %5994 = vmatprep.subr.bf16.mxu0 %v8501_v22  ;;  %v8576_v20 = vld [vmem:[%s9990_s11 + $0x8bc] ss:$36 sps:$4 sm:$0xff]   ;;  %v8579_v22 = vld [vmem:[%s9990_s11 + $0x8c4] ss:$36 sps:$4 sm:$0xff]  }
 0x42d   : > { %v8643_v13 = vld [vmem:[%s9990_s11 + $0xbd8] ss:$36 sps:$4 sm:$0xff]  }
 0x42f   : > { %5831 = vmatpush1.bf16.msra.mxu1 %v8496_v39  ;;  %5995 = vmatpush1.bf16.msra.mxu0 %v8499_v26  ;;  %v8574_v39 = vld [vmem:[%s9990_s11 + $0x8b8] ss:$36 sps:$4 sm:$0xff]   ;;  %v8577_v26 = vld [vmem:[%s9990_s11 + $0x8c0] ss:$36 sps:$4 sm:$0xff]  }
 0x430   : > { %5832 = vmatprep.subr.bf16.mxu1 %v8504_v27  ;;  %5996 = vmatprep.subr.bf16.mxu0 %v8507_v28  ;;  %v2138_v27 = vmax.f32 %v8175_v19, 0.0  ;;  %v8582_v28 = vld [vmem:[%s9990_s11 + $0x904] ss:$36 sps:$4 sm:$0xff]  }
 0x431   : > { %v8654_v19 = vld [vmem:[%s9990_s11 + $0xc64] ss:$36 sps:$4 sm:$0xff]  }
 0x433   : > { %5833 = vmatpush1.bf16.msra.mxu1 %v8502_v29  ;;  %5997 = vmatpush1.bf16.msra.mxu0 %v8505_v30  ;;  %v8585_v29 = vld [vmem:[%s9990_s11 + $0x90c] ss:$36 sps:$4 sm:$0xff]  }
 0x434   : > { %5834 = vmatprep.subr.bf16.mxu1 %v8510_v31  ;;  %5998 = vmatprep.subr.bf16.mxu0 %v8513_v32  ;;  %v8583_v30 = vld [vmem:[%s9990_s11 + $0x908] ss:$36 sps:$4 sm:$0xff]   ;;  %v10214_v31 = vpack.c.bf16 %v2138_v27, %v2138_v27  ;;  %v8663_v27 = vld [vmem:[%s9990_s11 + $0xcb4] ss:$36 sps:$4 sm:$0xff]  }
 0x435   : > { %v8588_v32 = vld [vmem:[%s9990_s11 + $0x94c] ss:$36 sps:$4 sm:$0xff]  }
 0x437   : > { %5835 = vmatpush1.bf16.msra.mxu1 %v8508_v35  ;;  %5999 = vmatpush1.bf16.msra.mxu0 %v8511_v36  ;;  %v8591_v35 = vld [vmem:[%s9990_s11 + $0x954] ss:$36 sps:$4 sm:$0xff]   ;;  %v8586_v36 = vld [vmem:[%s9990_s11 + $0x948] ss:$36 sps:$4 sm:$0xff]  }
 0x438   : > { %5836 = vmatprep.subr.bf16.mxu1 %v8516_v37  ;;  %6000 = vmatprep.subr.bf16.mxu0 %v8519_v38  ;;  %v8589_v37 = vld [vmem:[%s9990_s11 + $0x950] ss:$36 sps:$4 sm:$0xff]  }
 0x439   : > { %v8594_v38 = vld [vmem:[%s9990_s11 + $0x994] ss:$36 sps:$4 sm:$0xff]  }
 0x43b   : > { %5837 = vmatpush1.bf16.msra.mxu1 %v8514_v40  ;;  %6001 = vmatpush1.bf16.msra.mxu0 %v8517_v41  ;;  %v8597_v40 = vld [vmem:[%s9990_s11 + $0x99c] ss:$36 sps:$4 sm:$0xff]   ;;  %v8592_v41 = vld [vmem:[%s9990_s11 + $0x990] ss:$36 sps:$4 sm:$0xff]  }
 0x43c   : > { %5838 = vmatprep.subr.bf16.mxu1 %v8522_v42  ;;  %6002 = vmatprep.subr.bf16.mxu0 %v8525_v43  ;;  %v8595_v42 = vld [vmem:[%s9990_s11 + $0x998] ss:$36 sps:$4 sm:$0xff]  }
 0x43d   : > { %v8600_v43 = vld [vmem:[%s9990_s11 + $0x9dc] ss:$36 sps:$4 sm:$0xff]  }
 0x43f   : > { %5839 = vmatpush1.bf16.msra.mxu1 %v8520_v44  ;;  %6003 = vmatpush1.bf16.msra.mxu0 %v8523_v45  ;;  %v8603_v44 = vld [vmem:[%s9990_s11 + $0x9e4] ss:$36 sps:$4 sm:$0xff]   ;;  %v8598_v45 = vld [vmem:[%s9990_s11 + $0x9d8] ss:$36 sps:$4 sm:$0xff]  }
 0x440   : > { %5840 = vmatprep.subr.bf16.mxu1 %v8528_v46  ;;  %6004 = vmatprep.subr.bf16.mxu0 %v8531_v47  ;;  %v8601_v46 = vld [vmem:[%s9990_s11 + $0x9e0] ss:$36 sps:$4 sm:$0xff]  }
 0x441   : > { %v8606_v47 = vld [vmem:[%s9990_s11 + $0xa24] ss:$36 sps:$4 sm:$0xff]  }
 0x443   : > { %5841 = vmatpush1.bf16.msra.mxu1 %v8526_v49  ;;  %6005 = vmatpush1.bf16.msra.mxu0 %v8529_v50  ;;  %v8609_v49 = vld [vmem:[%s9990_s11 + $0xa2c] ss:$36 sps:$4 sm:$0xff]   ;;  %v8604_v50 = vld [vmem:[%s9990_s11 + $0xa20] ss:$36 sps:$4 sm:$0xff]  }
 0x444   : > { %5842 = vmatprep.subr.bf16.mxu1 %v8534_v51  ;;  %6006 = vmatprep.subr.bf16.mxu0 %v8537_v52  ;;  %v8607_v51 = vld [vmem:[%s9990_s11 + $0xa28] ss:$36 sps:$4 sm:$0xff]  }
 0x445   : > { %v8612_v52 = vld [vmem:[%s9990_s11 + $0xa6c] ss:$36 sps:$4 sm:$0xff]  }
 0x447   : > { %5843 = vmatpush1.bf16.msra.mxu1 %v8532_v54  ;;  %6007 = vmatpush1.bf16.msra.mxu0 %v8535_v55  ;;  %v8615_v54 = vld [vmem:[%s9990_s11 + $0xa74] ss:$36 sps:$4 sm:$0xff]   ;;  %v8610_v55 = vld [vmem:[%s9990_s11 + $0xa68] ss:$36 sps:$4 sm:$0xff]  }
 0x448   : > { %5844 = vmatprep.subr.bf16.mxu1 %v8540_v53  ;;  %6008 = vmatprep.subr.bf16.mxu0 %v8543_v56  ;;  %v8613_v53 = vld [vmem:[%s9990_s11 + $0xa70] ss:$36 sps:$4 sm:$0xff]  }
 0x449   : > { %v8618_v56 = vld [vmem:[%s9990_s11 + $0xab4] ss:$36 sps:$4 sm:$0xff]  }
 0x44b   : > { %5845 = vmatpush1.bf16.msra.mxu1 %v8538_v57  ;;  %6009 = vmatpush1.bf16.msra.mxu0 %v8541_v59  ;;  %v8621_v57 = vld [vmem:[%s9990_s11 + $0xabc] ss:$36 sps:$4 sm:$0xff]   ;;  %v8616_v59 = vld [vmem:[%s9990_s11 + $0xab0] ss:$36 sps:$4 sm:$0xff]  }
 0x44c   : > { %5846 = vmatprep.subr.bf16.mxu1 %v8546_v60  ;;  %6010 = vmatprep.subr.bf16.mxu0 %v8549_v61  ;;  %v8619_v60 = vld [vmem:[%s9990_s11 + $0xab8] ss:$36 sps:$4 sm:$0xff]  }
 0x44d   : > { %v8624_v61 = vld [vmem:[%s9990_s11 + $0xafc] ss:$36 sps:$4 sm:$0xff]  }
 0x44f   : > { %5847 = vmatpush1.bf16.msra.mxu1 %v8544_v62  ;;  %6011 = vmatpush1.bf16.msra.mxu0 %v8547_v63  ;;  %v8627_v62 = vld [vmem:[%s9990_s11 + $0xb04] ss:$36 sps:$4 sm:$0xff]   ;;  %v8622_v63 = vld [vmem:[%s9990_s11 + $0xaf8] ss:$36 sps:$4 sm:$0xff]  }
 0x450   : > { %5848 = vmatprep.subr.bf16.mxu1 %v8552_v1  ;;  %6012 = vmatprep.subr.bf16.mxu0 %v8555_v2  ;;  %v8625_v1 = vld [vmem:[%s9990_s11 + $0xb00] ss:$36 sps:$4 sm:$0xff]  }
 0x451   : > { %v8630_v2 = vld [vmem:[%s9990_s11 + $0xb44] ss:$36 sps:$4 sm:$0xff]  }
 0x453   : > { %5849 = vmatpush1.bf16.msra.mxu1 %v8550_v4  ;;  %6013 = vmatpush1.bf16.msra.mxu0 %v8553_v5  ;;  %v8633_v4 = vld [vmem:[%s9990_s11 + $0xb4c] ss:$36 sps:$4 sm:$0xff]   ;;  %v8628_v5 = vld [vmem:[%s9990_s11 + $0xb40] ss:$36 sps:$4 sm:$0xff]  }
 0x454   : > { %5850 = vmatprep.subr.bf16.mxu1 %v8558_v6  ;;  %6014 = vmatprep.subr.bf16.mxu0 %v8561_v7  ;;  %v8631_v6 = vld [vmem:[%s9990_s11 + $0xb48] ss:$36 sps:$4 sm:$0xff]  }
 0x455   : > { %v8636_v7 = vld [vmem:[%s9990_s11 + $0xb8c] ss:$36 sps:$4 sm:$0xff]  }
 0x457   : > { %5851 = vmatpush1.bf16.msra.mxu1 %v8556_v8  ;;  %6015 = vmatpush1.bf16.msra.mxu0 %v8559_v9  ;;  %v8639_v8 = vld [vmem:[%s9990_s11 + $0xb94] ss:$36 sps:$4 sm:$0xff]   ;;  %v8634_v9 = vld [vmem:[%s9990_s11 + $0xb88] ss:$36 sps:$4 sm:$0xff]  }
 0x458   : > { %5852 = vmatprep.subr.bf16.mxu1 %v8564_v10  ;;  %6016 = vmatprep.subr.bf16.mxu0 %v8567_v11  ;;  %v8637_v10 = vld [vmem:[%s9990_s11 + $0xb90] ss:$36 sps:$4 sm:$0xff]  }
 0x459   : > { %v8642_v11 = vld [vmem:[%s9990_s11 + $0xbd4] ss:$36 sps:$4 sm:$0xff]  }
 0x45b   : > { %5853 = vmatpush1.bf16.msra.mxu1 %v8562_v12  ;;  %6017 = vmatpush1.bf16.msra.mxu0 %v8565_v58  ;;  %v8645_v12 = vld [vmem:[%s9990_s11 + $0xbdc] ss:$36 sps:$4 sm:$0xff]   ;;  %v8640_v58 = vld [vmem:[%s9990_s11 + $0xbd0] ss:$36 sps:$4 sm:$0xff]  }
 0x45c   : > { %5854 = vmatprep.subr.bf16.mxu1 %v8570_v14  ;;  %6018 = vmatprep.subr.bf16.mxu0 %v8573_v16  ;;  %v8648_v14 = vld [vmem:[%s9990_s11 + $0xc1c] ss:$36 sps:$4 sm:$0xff]   ;;  %v8651_v16 = vld [vmem:[%s9990_s11 + $0xc24] ss:$36 sps:$4 sm:$0xff]  }
 0x45f   : > { %5855 = vmatpush1.bf16.msra.mxu1 %v8568_v17  ;;  %6019 = vmatpush1.bf16.msra.mxu0 %v8571_v3  ;;  %v8646_v17 = vld [vmem:[%s9990_s11 + $0xc18] ss:$36 sps:$4 sm:$0xff]   ;;  %v8649_v3 = vld [vmem:[%s9990_s11 + $0xc20] ss:$36 sps:$4 sm:$0xff]  }
 0x460   : > { %5856 = vmatprep.subr.bf16.mxu1 %v8576_v20  ;;  %6020 = vmatprep.subr.bf16.mxu0 %v8579_v22  ;;  %v8657_v20 = vld [vmem:[%s9990_s11 + $0xc6c] ss:$36 sps:$4 sm:$0xff]   ;;  %v8652_v22 = vld [vmem:[%s9990_s11 + $0xc60] ss:$36 sps:$4 sm:$0xff]  }
 0x463   : > { %5857 = vmatpush1.bf16.msra.mxu1 %v8574_v39  ;;  %6021 = vmatpush1.bf16.msra.mxu0 %v8577_v26  ;;  %v8655_v39 = vld [vmem:[%s9990_s11 + $0xc68] ss:$36 sps:$4 sm:$0xff]  }
 0x464   : > { %5867 = vmatprep.subr.bf16.mxu1 %v8582_v28  ;;  %6031 = vmatprep.subr.bf16.mxu0 %v8585_v29  ;;  %v8660_v26 = vld [vmem:[%s9990_s11 + $0xcac] ss:$36 sps:$4 sm:$0xff]   ;;  %v1546_v28 = vsub.s32 4, %v9996_v21 }
 0x465   : > { %v8658_v29 = vld [vmem:[%s9990_s11 + $0xca8] ss:$36 sps:$4 sm:$0xff]  }
 0x466   : > { %5859 = vmatmul.mubr.bf16.vlgmr.msra.gmra.mrb[8].mxu1 %v10214_v31  ;;  %6023 = vmatmul.mubr.bf16.vlgmr.msra.gmra.mrb[8].mxu0 %v10214_v31 }
 0x467   : > { %5868 = vmatpush1.bf16.msra.mxu1 %v8580_v25  ;;  %6032 = vmatpush1.bf16.msra.mxu0 %v8583_v30  ;;  %v8661_v25 = vld [vmem:[%s9990_s11 + $0xcb0] ss:$36 sps:$4 sm:$0xff]   ;;  %v1550_v30 = vsub.s32 5, %v9996_v21 }
 0x468   : > { %5869 = vmatprep.subr.bf16.mxu1 %v8588_v32  ;;  %6033 = vmatprep.subr.bf16.mxu0 %v8591_v35  ;;  %v8666_v32 = vld [vmem:[%s9990_s11 + $0xcf4] ss:$36 sps:$4 sm:$0xff]   ;;  %v8669_v35 = vld [vmem:[%s9990_s11 + $0xcfc] ss:$36 sps:$4 sm:$0xff]  }
 0x46b   : > { %5870 = vmatpush1.bf16.msra.mxu1 %v8586_v36  ;;  %6034 = vmatpush1.bf16.msra.mxu0 %v8589_v37  ;;  %v1558_v36 = vsub.s32 7, %v9996_v21  ;;  %v1547_v37 = vrot.slane %v10123_v0, %v1546_v28 }
 0x46c   : > { %5871 = vmatprep.subr.bf16.mxu1 %v8594_v38  ;;  %6035 = vmatprep.subr.bf16.mxu0 %v8597_v40  ;;  %v8664_v38 = vld [vmem:[%s9990_s11 + $0xcf0] ss:$36 sps:$4 sm:$0xff]   ;;  %v8667_v40 = vld [vmem:[%s9990_s11 + $0xcf8] ss:$36 sps:$4 sm:$0xff]  }
 0x46f   : > { %5872 = vmatpush1.bf16.msra.mxu1 %v8592_v41  ;;  %6036 = vmatpush1.bf16.msra.mxu0 %v8595_v42  ;;  %v1551_v41 = vrot.slane %v10123_v0, %v1550_v30  ;;  %v1559_v42 = vrot.slane %v10123_v0, %v1558_v36 }
 0x470   : > { %5873 = vmatprep.subr.bf16.mxu1 %v8600_v43  ;;  %6037 = vmatprep.subr.bf16.mxu0 %v8603_v44  ;;  %v8672_v43 = vld [vmem:[%s9990_s11 + $0xd3c] ss:$36 sps:$4 sm:$0xff]   ;;  %v8675_v44 = vld [vmem:[%s9990_s11 + $0xd44] ss:$36 sps:$4 sm:$0xff]  }
 0x473   : > { %5874 = vmatpush1.bf16.msra.mxu1 %v8598_v45  ;;  %6038 = vmatpush1.bf16.msra.mxu0 %v8601_v46 }
 0x474   : > { %5875 = vmatprep.subr.bf16.mxu1 %v8606_v47  ;;  %6039 = vmatprep.subr.bf16.mxu0 %v8609_v49 }
 0x477   : > { %5876 = vmatpush1.bf16.msra.mxu1 %v8604_v50  ;;  %6040 = vmatpush1.bf16.msra.mxu0 %v8607_v51 }
 0x478   : > { %5877 = vmatprep.subr.bf16.mxu1 %v8612_v52  ;;  %6041 = vmatprep.subr.bf16.mxu0 %v8615_v54  ;;  %v8670_v52 = vld [vmem:[%s9990_s11 + $0xd38] ss:$36 sps:$4 sm:$0xff]   ;;  %v8673_v54 = vld [vmem:[%s9990_s11 + $0xd40] ss:$36 sps:$4 sm:$0xff]  }
 0x47b   : > { %5878 = vmatpush1.bf16.msra.mxu1 %v8610_v55  ;;  %6042 = vmatpush1.bf16.msra.mxu0 %v8613_v53 }
 0x47c   : > { %5879 = vmatprep.subr.bf16.mxu1 %v8618_v56  ;;  %6043 = vmatprep.subr.bf16.mxu0 %v8621_v57  ;;  %v8678_v56 = vld [vmem:[%s9990_s11 + $0xd84] ss:$36 sps:$4 sm:$0xff]   ;;  %v8681_v57 = vld [vmem:[%s9990_s11 + $0xd8c] ss:$36 sps:$4 sm:$0xff]  }
 0x47f   : > { %5880 = vmatpush1.bf16.msra.mxu1 %v8616_v59  ;;  %6044 = vmatpush1.bf16.msra.mxu0 %v8619_v60 }
 0x480   : > { %5881 = vmatprep.subr.bf16.mxu1 %v8624_v61  ;;  %6045 = vmatprep.subr.bf16.mxu0 %v8627_v62  ;;  %v8676_v62 = vld [vmem:[%s9990_s11 + $0xd80] ss:$36 sps:$4 sm:$0xff]  }
 0x483   : > { %5882 = vmatpush1.bf16.msra.mxu1 %v8622_v63  ;;  %6046 = vmatpush1.bf16.msra.mxu0 %v8625_v1  ;;  %v8679_v63 = vld [vmem:[%s9990_s11 + $0xd88] ss:$36 sps:$4 sm:$0xff]  }
 0x484   : > { %5883 = vmatprep.subr.bf16.mxu1 %v8630_v2  ;;  %6047 = vmatprep.subr.bf16.mxu0 %v8633_v4  ;;  %v8684_v2 = vld [vmem:[%s9990_s11 + $0xdcc] ss:$36 sps:$4 sm:$0xff]   ;;  %v8687_v4 = vld [vmem:[%s9990_s11 + $0xdd4] ss:$36 sps:$4 sm:$0xff]  }
 0x487   : > { %5884 = vmatpush1.bf16.msra.mxu1 %v8628_v5  ;;  %6048 = vmatpush1.bf16.msra.mxu0 %v8631_v6  ;;  %v8682_v6 = vld [vmem:[%s9990_s11 + $0xdc8] ss:$36 sps:$4 sm:$0xff]  }
 0x488   : > { %5885 = vmatprep.subr.bf16.mxu1 %v8636_v7  ;;  %6049 = vmatprep.subr.bf16.mxu0 %v8639_v8  ;;  %v8685_v7 = vld [vmem:[%s9990_s11 + $0xdd0] ss:$36 sps:$4 sm:$0xff]  }
 0x489   : > { %v8690_v8 = vld [vmem:[%s9990_s11 + $0xe14] ss:$36 sps:$4 sm:$0xff]  }
 0x48b   : > { %5886 = vmatpush1.bf16.msra.mxu1 %v8634_v9  ;;  %6050 = vmatpush1.bf16.msra.mxu0 %v8637_v10  ;;  %v8693_v9 = vld [vmem:[%s9990_s11 + $0xe1c] ss:$36 sps:$4 sm:$0xff]   ;;  %v8688_v10 = vld [vmem:[%s9990_s11 + $0xe10] ss:$36 sps:$4 sm:$0xff]  }
 0x48c   : > { %5887 = vmatprep.subr.bf16.mxu1 %v8642_v11  ;;  %6051 = vmatprep.subr.bf16.mxu0 %v8645_v12  ;;  %v8691_v11 = vld [vmem:[%s9990_s11 + $0xe18] ss:$36 sps:$4 sm:$0xff]  }
 0x48d   : > { %v8696_v12 = vld [vmem:[%s9990_s11 + $0xe5c] ss:$36 sps:$4 sm:$0xff]  }
 0x48f   : > { %5888 = vmatpush1.bf16.msra.mxu1 %v8640_v58  ;;  %6052 = vmatpush1.bf16.msra.mxu0 %v8643_v13  ;;  %v8699_v58 = vld [vmem:[%s9990_s11 + $0xe64] ss:$36 sps:$4 sm:$0xff]   ;;  %v8694_v13 = vld [vmem:[%s9990_s11 + $0xe58] ss:$36 sps:$4 sm:$0xff]  }
 0x490   : > { %5889 = vmatprep.subr.bf16.mxu1 %v8648_v14  ;;  %6053 = vmatprep.subr.bf16.mxu0 %v8651_v16  ;;  %v8697_v14 = vld [vmem:[%s9990_s11 + $0xe60] ss:$36 sps:$4 sm:$0xff]  }
 0x491   : > { %v8702_v16 = vld [vmem:[%s9990_s11 + $0xea4] ss:$36 sps:$4 sm:$0xff]  }
 0x493   : > { %5890 = vmatpush1.bf16.msra.mxu1 %v8646_v17  ;;  %6054 = vmatpush1.bf16.msra.mxu0 %v8649_v3  ;;  %v8705_v17 = vld [vmem:[%s9990_s11 + $0xeac] ss:$36 sps:$4 sm:$0xff]   ;;  %v8700_v3 = vld [vmem:[%s9990_s11 + $0xea0] ss:$36 sps:$4 sm:$0xff]  }
 0x494   : > { %5891 = vmatprep.subr.bf16.mxu1 %v8654_v19  ;;  %6055 = vmatprep.subr.bf16.mxu0 %v8657_v20  ;;  %v8703_v19 = vld [vmem:[%s9990_s11 + $0xea8] ss:$36 sps:$4 sm:$0xff]  }
 0x495   : > { %v8708_v20 = vld [vmem:[%s9990_s11 + $0xeec] ss:$36 sps:$4 sm:$0xff]  }
 0x497   : > { %5892 = vmatpush1.bf16.msra.mxu1 %v8652_v22  ;;  %6056 = vmatpush1.bf16.msra.mxu0 %v8655_v39  ;;  %v8711_v22 = vld [vmem:[%s9990_s11 + $0xef4] ss:$36 sps:$4 sm:$0xff]   ;;  %v8706_v39 = vld [vmem:[%s9990_s11 + $0xee8] ss:$36 sps:$4 sm:$0xff]  }
 0x498   : > { %5893 = vmatprep.subr.bf16.mxu1 %v8660_v26  ;;  %6057 = vmatprep.subr.bf16.mxu0 %v8663_v27  ;;  %v8709_v26 = vld [vmem:[%s9990_s11 + $0xef0] ss:$36 sps:$4 sm:$0xff]  }
 0x499   : > { %v8714_v27 = vld [vmem:[%s9990_s11 + $0xf34] ss:$36 sps:$4 sm:$0xff]  }
 0x49b   : > { %5894 = vmatpush1.bf16.msra.mxu1 %v8658_v29  ;;  %6058 = vmatpush1.bf16.msra.mxu0 %v8661_v25  ;;  %v8717_v29 = vld [vmem:[%s9990_s11 + $0xf3c] ss:$36 sps:$4 sm:$0xff]   ;;  %v8712_v25 = vld [vmem:[%s9990_s11 + $0xf30] ss:$36 sps:$4 sm:$0xff]  }
 0x49c   : > { %5895 = vmatprep.subr.bf16.mxu1 %v8666_v32  ;;  %6059 = vmatprep.subr.bf16.mxu0 %v8669_v35  ;;  %v8715_v32 = vld [vmem:[%s9990_s11 + $0xf38] ss:$36 sps:$4 sm:$0xff]  }
 0x49d   : > { %v1989_v45 = vpop.f32.mrb[4].mxu1  ;;  %v8720_v35 = vld [vmem:[%s9990_s11 + $0xf7c] ss:$36 sps:$4 sm:$0xff]  }
 0x49e   : > { %v8177_v46 = vadd.f32 %v1989_v45, %v1547_v37  ;;  %v10288_v47 = vpop.f32.mrb[6].mxu0  ;;  %v1991_v49 = vpop.f32.mrb[5].mxu1  ;;  %v8723_v37 = vld [vmem:[%s9990_s11 + $0xf84] ss:$36 sps:$4 sm:$0xff]   ;;  %v8732_v45 = vld [vmem:[%s9990_s11 + $0x100c] ss:$36 sps:$4 sm:$0xff]  }
 0x49f   : > { %v8178_v50 = vadd.f32 %v1991_v49, %v1551_v41  ;;  %v2133_v51 = vpop.f32.mrb[7].mxu0  ;;  %5896 = vmatpush1.bf16.msra.mxu1 %v8664_v38  ;;  %6060 = vmatpush1.bf16.msra.mxu0 %v8667_v40  ;;  %v8718_v38 = vld [vmem:[%s9990_s11 + $0xf78] ss:$36 sps:$4 sm:$0xff]   ;;  %v8721_v40 = vld [vmem:[%s9990_s11 + $0xf80] ss:$36 sps:$4 sm:$0xff]  }
 0x4a0   : > { %v2140_v55 = vmax.f32 %v8177_v46, 0.0  ;;  %v8180_v53 = vadd.f32 %v2133_v51, %v1559_v42  ;;  %5897 = vmatprep.subr.bf16.mxu1 %v8672_v43  ;;  %6061 = vmatprep.subr.bf16.mxu0 %v8675_v44  ;;  %v8726_v41 = vld [vmem:[%s9990_s11 + $0xfc4] ss:$36 sps:$4 sm:$0xff]   ;;  %v8729_v42 = vld [vmem:[%s9990_s11 + $0xfcc] ss:$36 sps:$4 sm:$0xff]  }
 0x4a1   : > { %v2141_v59 = vmax.f32 %v8178_v50, 0.0  ;;  %v8724_v43 = vld [vmem:[%s9990_s11 + $0xfc0] ss:$36 sps:$4 sm:$0xff]   ;;  %v8727_v44 = vld [vmem:[%s9990_s11 + $0xfc8] ss:$36 sps:$4 sm:$0xff]  }
 0x4a2   : > { %v2143_v60 = vmax.f32 %v8180_v53, 0.0  ;;  %v10298_v1 = vpack.c.bf16 %v2140_v55, %v2140_v55  ;;  %v8735_v46 = vld [vmem:[%s9990_s11 + $0x1014] ss:$36 sps:$4 sm:$0xff]   ;;  %v8730_v49 = vld [vmem:[%s9990_s11 + $0x1008] ss:$36 sps:$4 sm:$0xff]  }
 0x4a3   : > { %v10294_v61 = vpack.c.bf16 %v2141_v59, %v2141_v59  ;;  %5898 = vmatpush1.bf16.msra.mxu1 %v8670_v52  ;;  %6062 = vmatpush1.bf16.msra.mxu0 %v8673_v54  ;;  %v8733_v50 = vld [vmem:[%s9990_s11 + $0x1010] ss:$36 sps:$4 sm:$0xff]   ;;  %v8741_v52 = vld [vmem:[%s9990_s11 + $0x105c] ss:$36 sps:$4 sm:$0xff]  }
 0x4a4   : > { %5908 = vmatprep.subr.bf16.mxu1 %v8678_v56  ;;  %6072 = vmatprep.subr.bf16.mxu0 %v8681_v57  ;;  %v10304_v5 = vpack.c.bf16 %v2143_v60, %v2143_v60  ;;  %v8738_v51 = vld [vmem:[%s9990_s11 + $0x1054] ss:$36 sps:$4 sm:$0xff]   ;;  %v8744_v53 = vld [vmem:[%s9990_s11 + $0x109c] ss:$36 sps:$4 sm:$0xff]   ;;  %v8747_v56 = vld [vmem:[%s9990_s11 + $0x10a4] ss:$36 sps:$4 sm:$0xff]  }
 0x4a5   : > { %5899 = vmatprep.mubr.bf16.mxu1 %v10294_v61  ;;  %6063 = vmatprep.mubr.bf16.mxu0 %v10294_v61  ;;  %v8736_v54 = vld [vmem:[%s9990_s11 + $0x1050] ss:$36 sps:$4 sm:$0xff]   ;;  %v8739_v55 = vld [vmem:[%s9990_s11 + $0x1058] ss:$36 sps:$4 sm:$0xff]   ;;  %v8745_v59 = vld [vmem:[%s9990_s11 + $0x10a0] ss:$36 sps:$4 sm:$0xff]  }
 0x4a6   : > { %5900 = vmatmul.mubr.bf16.vlgmr.msra.gmra.mrb[8].mxu1 %v10298_v1  ;;  %6064 = vmatmul.mubr.bf16.vlgmr.msra.gmra.mrb[8].mxu0 %v10298_v1  ;;  %v8742_v57 = vld [vmem:[%s9990_s11 + $0x1098] ss:$36 sps:$4 sm:$0xff]   ;;  %v8750_v60 = vld [vmem:[%s9990_s11 + $0x10e4] ss:$36 sps:$4 sm:$0xff]  }
 0x4a7   : > { %5909 = vmatpush1.bf16.msra.mxu1 %v8676_v62  ;;  %6073 = vmatpush1.bf16.msra.mxu0 %v8679_v63  ;;  %v8753_v62 = vld [vmem:[%s9990_s11 + $0x10ec] ss:$36 sps:$4 sm:$0xff]   ;;  %v8748_v63 = vld [vmem:[%s9990_s11 + $0x10e0] ss:$36 sps:$4 sm:$0xff]  }
 0x4a8   : > { %5940 = vmatprep.mubr.bf16.mxu1 %v10304_v5  ;;  %6104 = vmatprep.mubr.bf16.mxu0 %v10304_v5 }
 0x4a9   : > { %5910 = vmatprep.subr.bf16.mxu1 %v8684_v2  ;;  %6074 = vmatprep.subr.bf16.mxu0 %v8687_v4  ;;  %v8751_v2 = vld [vmem:[%s9990_s11 + $0x10e8] ss:$36 sps:$4 sm:$0xff]   ;;  %v1554_v4 = vsub.s32 6, %v9996_v21 }
 0x4ab   : > { %5911 = vmatpush1.bf16.msra.mxu1 %v8682_v6  ;;  %6075 = vmatpush1.bf16.msra.mxu0 %v8685_v7  ;;  %v8756_v6 = vld [vmem:[%s9990_s11 + $0x112c] ss:$36 sps:$4 sm:$0xff]   ;;  %v8759_v7 = vld [vmem:[%s9990_s11 + $0x1134] ss:$36 sps:$4 sm:$0xff]  }
 0x4ac   : > { %5912 = vmatprep.subr.bf16.mxu1 %v8690_v8  ;;  %6076 = vmatprep.subr.bf16.mxu0 %v8693_v9  ;;  %v8754_v8 = vld [vmem:[%s9990_s11 + $0x1128] ss:$36 sps:$4 sm:$0xff]   ;;  %v8757_v9 = vld [vmem:[%s9990_s11 + $0x1130] ss:$36 sps:$4 sm:$0xff]  }
 0x4af   : > { %5913 = vmatpush1.bf16.msra.mxu1 %v8688_v10  ;;  %6077 = vmatpush1.bf16.msra.mxu0 %v8691_v11  ;;  %v1555_v10 = vrot.slane %v10123_v0, %v1554_v4  ;;  %v8762_v11 = vld [vmem:[%s9990_s11 + $0x1174] ss:$36 sps:$4 sm:$0xff]   ;;  %v8771_v0 = vld [vmem:[%s9990_s11 + $0x11c4] ss:$36 sps:$4 sm:$0xff]  }
 0x4b0   : > { %5914 = vmatprep.subr.bf16.mxu1 %v8696_v12  ;;  %6078 = vmatprep.subr.bf16.mxu0 %v8699_v58  ;;  %v8765_v12 = vld [vmem:[%s9990_s11 + $0x117c] ss:$36 sps:$4 sm:$0xff]   ;;  %v8760_v58 = vld [vmem:[%s9990_s11 + $0x1170] ss:$36 sps:$4 sm:$0xff]  }
 0x4b3   : > { %5915 = vmatpush1.bf16.msra.mxu1 %v8694_v13  ;;  %6079 = vmatpush1.bf16.msra.mxu0 %v8697_v14  ;;  %v8763_v13 = vld [vmem:[%s9990_s11 + $0x1178] ss:$36 sps:$4 sm:$0xff]   ;;  %v8179_v14 = vadd.f32 %v10288_v47, %v1555_v10  ;;  %v8772_v47 = vld [vmem:[%s9990_s11 + $0x10] ss:$36 sps:$4 sm:$0xff]  }
 0x4b4   : > { %5916 = vmatprep.subr.bf16.mxu1 %v8702_v16  ;;  %6080 = vmatprep.subr.bf16.mxu0 %v8705_v17  ;;  %v8768_v16 = vld [vmem:[%s9990_s11 + $0x11bc] ss:$36 sps:$4 sm:$0xff]  }
 0x4b5   : > { %v8766_v17 = vld [vmem:[%s9990_s11 + $0x11b8] ss:$36 sps:$4 sm:$0xff]  }
 0x4b6   : > { %v8828_v10 = vld [vmem:[%s9990_s11 + $0x29c] ss:$36 sps:$4 sm:$0xff]  }
 0x4b7   : > { %5917 = vmatpush1.bf16.msra.mxu1 %v8700_v3  ;;  %6081 = vmatpush1.bf16.msra.mxu0 %v8703_v19  ;;  %v8769_v3 = vld [vmem:[%s9990_s11 + $0x11c0] ss:$36 sps:$4 sm:$0xff]   ;;  %v2142_v19 = vmax.f32 %v8179_v14, 0.0  ;;  %v8837_v14 = vld [vmem:[%s9990_s11 + $0x2ec] ss:$36 sps:$4 sm:$0xff]  }
 0x4b8   : > { %5918 = vmatprep.subr.bf16.mxu1 %v8708_v20  ;;  %6082 = vmatprep.subr.bf16.mxu0 %v8711_v22  ;;  %v8774_v20 = vld [vmem:[%s9990_s11 + $0x14] ss:$36 sps:$4 sm:$0xff]   ;;  %v8777_v22 = vld [vmem:[%s9990_s11 + $0x1c] ss:$36 sps:$4 sm:$0xff]  }
 0x4bb   : > { %5919 = vmatpush1.bf16.msra.mxu1 %v8706_v39  ;;  %6083 = vmatpush1.bf16.msra.mxu0 %v8709_v26  ;;  %v10376_v39 = vpack.c.bf16 %v2142_v19, %v2142_v19  ;;  %v8775_v26 = vld [vmem:[%s9990_s11 + $0x18] ss:$36 sps:$4 sm:$0xff]   ;;  %v8838_v19 = vld [vmem:[%s9990_s11 + $0x328] ss:$36 sps:$4 sm:$0xff]  }
 0x4bc   : > { %5920 = vmatprep.subr.bf16.mxu1 %v8714_v27  ;;  %6084 = vmatprep.subr.bf16.mxu0 %v8717_v29  ;;  %v8780_v27 = vld [vmem:[%s9990_s11 + $0x5c] ss:$36 sps:$4 sm:$0xff]   ;;  %v8783_v29 = vld [vmem:[%s9990_s11 + $0x64] ss:$36 sps:$4 sm:$0xff]  }
 0x4bf   : > { %5921 = vmatpush1.bf16.msra.mxu1 %v8712_v25  ;;  %6085 = vmatpush1.bf16.msra.mxu0 %v8715_v32  ;;  %v8778_v25 = vld [vmem:[%s9990_s11 + $0x58] ss:$36 sps:$4 sm:$0xff]   ;;  %v8781_v32 = vld [vmem:[%s9990_s11 + $0x60] ss:$36 sps:$4 sm:$0xff]  }
 0x4c0   : > { %5922 = vmatprep.subr.bf16.mxu1 %v8720_v35  ;;  %6086 = vmatprep.subr.bf16.mxu0 %v8723_v37  ;;  %v8786_v35 = vld [vmem:[%s9990_s11 + $0xa4] ss:$36 sps:$4 sm:$0xff]   ;;  %v8789_v37 = vld [vmem:[%s9990_s11 + $0xac] ss:$36 sps:$4 sm:$0xff]  }
 0x4c3   : > { %5923 = vmatpush1.bf16.msra.mxu1 %v8718_v38  ;;  %6087 = vmatpush1.bf16.msra.mxu0 %v8721_v40  ;;  %v8784_v38 = vld [vmem:[%s9990_s11 + $0xa0] ss:$36 sps:$4 sm:$0xff]   ;;  %v8787_v40 = vld [vmem:[%s9990_s11 + $0xa8] ss:$36 sps:$4 sm:$0xff]  }
 0x4c4   : > { %5924 = vmatprep.subr.bf16.mxu1 %v8726_v41  ;;  %6088 = vmatprep.subr.bf16.mxu0 %v8729_v42  ;;  %v8792_v41 = vld [vmem:[%s9990_s11 + $0xec] ss:$36 sps:$4 sm:$0xff]   ;;  %v8795_v42 = vld [vmem:[%s9990_s11 + $0xf4] ss:$36 sps:$4 sm:$0xff]  }
 0x4c7   : > { %5925 = vmatpush1.bf16.msra.mxu1 %v8724_v43  ;;  %6089 = vmatpush1.bf16.msra.mxu0 %v8727_v44  ;;  %v8790_v43 = vld [vmem:[%s9990_s11 + $0xe8] ss:$36 sps:$4 sm:$0xff]   ;;  %v8793_v44 = vld [vmem:[%s9990_s11 + $0xf0] ss:$36 sps:$4 sm:$0xff]  }
 0x4c8   : > { %5926 = vmatprep.subr.bf16.mxu1 %v8732_v45  ;;  %6090 = vmatprep.subr.bf16.mxu0 %v8735_v46  ;;  %v8798_v45 = vld [vmem:[%s9990_s11 + $0x134] ss:$36 sps:$4 sm:$0xff]   ;;  %v8801_v46 = vld [vmem:[%s9990_s11 + $0x13c] ss:$36 sps:$4 sm:$0xff]  }
 0x4cb   : > { %5927 = vmatpush1.bf16.msra.mxu1 %v8730_v49  ;;  %6091 = vmatpush1.bf16.msra.mxu0 %v8733_v50  ;;  %v8796_v49 = vld [vmem:[%s9990_s11 + $0x130] ss:$36 sps:$4 sm:$0xff]   ;;  %v8799_v50 = vld [vmem:[%s9990_s11 + $0x138] ss:$36 sps:$4 sm:$0xff]  }
 0x4cc   : > { %5928 = vmatprep.subr.bf16.mxu1 %v8738_v51  ;;  %6092 = vmatprep.subr.bf16.mxu0 %v8741_v52  ;;  %v8804_v51 = vld [vmem:[%s9990_s11 + $0x17c] ss:$36 sps:$4 sm:$0xff]   ;;  %v8807_v52 = vld [vmem:[%s9990_s11 + $0x184] ss:$36 sps:$4 sm:$0xff]  }
 0x4cf   : > { %5929 = vmatpush1.bf16.msra.mxu1 %v8736_v54  ;;  %6093 = vmatpush1.bf16.msra.mxu0 %v8739_v55  ;;  %v8802_v54 = vld [vmem:[%s9990_s11 + $0x178] ss:$36 sps:$4 sm:$0xff]   ;;  %v8805_v55 = vld [vmem:[%s9990_s11 + $0x180] ss:$36 sps:$4 sm:$0xff]  }
 0x4d0   : > { %5930 = vmatprep.subr.bf16.mxu1 %v8744_v53  ;;  %6094 = vmatprep.subr.bf16.mxu0 %v8747_v56  ;;  %v8810_v53 = vld [vmem:[%s9990_s11 + $0x1c4] ss:$36 sps:$4 sm:$0xff]   ;;  %v8813_v56 = vld [vmem:[%s9990_s11 + $0x1cc] ss:$36 sps:$4 sm:$0xff]  }
 0x4d3   : > { %5931 = vmatpush1.bf16.msra.mxu1 %v8742_v57  ;;  %6095 = vmatpush1.bf16.msra.mxu0 %v8745_v59  ;;  %v8808_v57 = vld [vmem:[%s9990_s11 + $0x1c0] ss:$36 sps:$4 sm:$0xff]   ;;  %v8811_v59 = vld [vmem:[%s9990_s11 + $0x1c8] ss:$36 sps:$4 sm:$0xff]  }
 0x4d4   : > { %5932 = vmatprep.subr.bf16.mxu1 %v8750_v60  ;;  %6096 = vmatprep.subr.bf16.mxu0 %v8753_v62  ;;  %v8816_v60 = vld [vmem:[%s9990_s11 + $0x20c] ss:$36 sps:$4 sm:$0xff]   ;;  %v8819_v62 = vld [vmem:[%s9990_s11 + $0x214] ss:$36 sps:$4 sm:$0xff]  }
 0x4d7   : > { %5933 = vmatpush1.bf16.msra.mxu1 %v8748_v63  ;;  %6097 = vmatpush1.bf16.msra.mxu0 %v8751_v2  ;;  %v8814_v63 = vld [vmem:[%s9990_s11 + $0x208] ss:$36 sps:$4 sm:$0xff]   ;;  %v8817_v2 = vld [vmem:[%s9990_s11 + $0x210] ss:$36 sps:$4 sm:$0xff]  }
 0x4d8   : > { %5934 = vmatprep.subr.bf16.mxu1 %v8756_v6  ;;  %6098 = vmatprep.subr.bf16.mxu0 %v8759_v7  ;;  %v8822_v6 = vld [vmem:[%s9990_s11 + $0x254] ss:$36 sps:$4 sm:$0xff]   ;;  %v8825_v7 = vld [vmem:[%s9990_s11 + $0x25c] ss:$36 sps:$4 sm:$0xff]  }
 0x4db   : > { %5935 = vmatpush1.bf16.msra.mxu1 %v8754_v8  ;;  %6099 = vmatpush1.bf16.msra.mxu0 %v8757_v9  ;;  %v8820_v8 = vld [vmem:[%s9990_s11 + $0x250] ss:$36 sps:$4 sm:$0xff]   ;;  %v8823_v9 = vld [vmem:[%s9990_s11 + $0x258] ss:$36 sps:$4 sm:$0xff]  }
 0x4dc   : > { %5936 = vmatprep.subr.bf16.mxu1 %v8762_v11  ;;  %6100 = vmatprep.subr.bf16.mxu0 %v8765_v12  ;;  %v8831_v11 = vld [vmem:[%s9990_s11 + $0x2a4] ss:$36 sps:$4 sm:$0xff]   ;;  %v8826_v12 = vld [vmem:[%s9990_s11 + $0x298] ss:$36 sps:$4 sm:$0xff]  }
 0x4df   : > { %5937 = vmatpush1.bf16.msra.mxu1 %v8760_v58  ;;  %6101 = vmatpush1.bf16.msra.mxu0 %v8763_v13  ;;  %v8829_v58 = vld [vmem:[%s9990_s11 + $0x2a0] ss:$36 sps:$4 sm:$0xff]  }
 0x4e0   : > { %5938 = vmatprep.subr.bf16.mxu1 %v8768_v16  ;;  %6102 = vmatprep.subr.bf16.mxu0 %v8771_v0  ;;  %v8834_v13 = vld [vmem:[%s9990_s11 + $0x2e4] ss:$36 sps:$4 sm:$0xff]  }
 0x4e1   : > { %v8832_v16 = vld [vmem:[%s9990_s11 + $0x2e0] ss:$36 sps:$4 sm:$0xff]   ;;  %v8835_v0 = vld [vmem:[%s9990_s11 + $0x2e8] ss:$36 sps:$4 sm:$0xff]  }
 0x4e3   : > { %5939 = vmatpush1.bf16.msra.mxu1 %v8766_v17  ;;  %6103 = vmatpush1.bf16.msra.mxu0 %v8769_v3  ;;  %v8840_v17 = vld [vmem:[%s9990_s11 + $0x32c] ss:$36 sps:$4 sm:$0xff]   ;;  %v8843_v3 = vld [vmem:[%s9990_s11 + $0x334] ss:$36 sps:$4 sm:$0xff]  }
 0x4e4   : > { %6113 = vmatprep.subr.bf16.mxu1 %v8774_v20  ;;  %6277 = vmatprep.subr.bf16.mxu0 %v8777_v22  ;;  %v8841_v20 = vld [vmem:[%s9990_s11 + $0x330] ss:$36 sps:$4 sm:$0xff]  }
 0x4e5   : > { %v8846_v22 = vld [vmem:[%s9990_s11 + $0x374] ss:$36 sps:$4 sm:$0xff]  }
 0x4e6   : > { %5941 = vmatmul.mubr.bf16.vlgmr.msra.gmra.mrb[8].mxu1 %v10376_v39  ;;  %6105 = vmatmul.mubr.bf16.vlgmr.msra.gmra.mrb[8].mxu0 %v10376_v39 }
 0x4e7   : > { %6114 = vmatpush1.bf16.msra.mxu1 %v8772_v47  ;;  %6145 = vmatprep.mubr.bf16.mxu1 %v10133_v33  ;;  %v8849_v47 = vld [vmem:[%s9990_s11 + $0x37c] ss:$36 sps:$4 sm:$0xff]  }
 0x4e8   : > { %6278 = vmatpush1.bf16.msra.mxu0 %v8775_v26  ;;  %6309 = vmatprep.mubr.bf16.mxu0 %v10133_v33  ;;  %v8844_v26 = vld [vmem:[%s9990_s11 + $0x370] ss:$36 sps:$4 sm:$0xff]  }
 0x4e9   : > { %6115 = vmatprep.subr.bf16.mxu1 %v8780_v27  ;;  %6279 = vmatprep.subr.bf16.mxu0 %v8783_v29  ;;  %v8847_v27 = vld [vmem:[%s9990_s11 + $0x378] ss:$36 sps:$4 sm:$0xff]  }
 0x4ea   : > { %v8852_v29 = vld [vmem:[%s9990_s11 + $0x3bc] ss:$36 sps:$4 sm:$0xff]  }
 0x4eb   : > { %6116 = vmatpush1.bf16.msra.mxu1 %v8778_v25  ;;  %v8855_v25 = vld [vmem:[%s9990_s11 + $0x3c4] ss:$36 sps:$4 sm:$0xff]  }
 0x4ec   : > { %6280 = vmatpush1.bf16.msra.mxu0 %v8781_v32  ;;  %6117 = vmatprep.subr.bf16.mxu1 %v8786_v35  ;;  %v8850_v32 = vld [vmem:[%s9990_s11 + $0x3b8] ss:$36 sps:$4 sm:$0xff]   ;;  %v8853_v35 = vld [vmem:[%s9990_s11 + $0x3c0] ss:$36 sps:$4 sm:$0xff]  }
 0x4ed   : > { %6281 = vmatprep.subr.bf16.mxu0 %v8789_v37  ;;  %v8858_v37 = vld [vmem:[%s9990_s11 + $0x404] ss:$36 sps:$4 sm:$0xff]  }
 0x4ef   : > { %6118 = vmatpush1.bf16.msra.mxu1 %v8784_v38  ;;  %v8861_v38 = vld [vmem:[%s9990_s11 + $0x40c] ss:$36 sps:$4 sm:$0xff]  }
 0x4f0   : > { %6282 = vmatpush1.bf16.msra.mxu0 %v8787_v40  ;;  %6119 = vmatprep.subr.bf16.mxu1 %v8792_v41  ;;  %v8856_v40 = vld [vmem:[%s9990_s11 + $0x400] ss:$36 sps:$4 sm:$0xff]   ;;  %v8859_v41 = vld [vmem:[%s9990_s11 + $0x408] ss:$36 sps:$4 sm:$0xff]  }
 0x4f1   : > { %6283 = vmatprep.subr.bf16.mxu0 %v8795_v42  ;;  %v8864_v42 = vld [vmem:[%s9990_s11 + $0x44c] ss:$36 sps:$4 sm:$0xff]  }
 0x4f3   : > { %6120 = vmatpush1.bf16.msra.mxu1 %v8790_v43  ;;  %v8867_v43 = vld [vmem:[%s9990_s11 + $0x454] ss:$36 sps:$4 sm:$0xff]  }
 0x4f4   : > { %6284 = vmatpush1.bf16.msra.mxu0 %v8793_v44  ;;  %6121 = vmatprep.subr.bf16.mxu1 %v8798_v45  ;;  %v8862_v44 = vld [vmem:[%s9990_s11 + $0x448] ss:$36 sps:$4 sm:$0xff]   ;;  %v8865_v45 = vld [vmem:[%s9990_s11 + $0x450] ss:$36 sps:$4 sm:$0xff]  }
 0x4f5   : > { %6285 = vmatprep.subr.bf16.mxu0 %v8801_v46  ;;  %v8870_v46 = vld [vmem:[%s9990_s11 + $0x494] ss:$36 sps:$4 sm:$0xff]  }
 0x4f7   : > { %6122 = vmatpush1.bf16.msra.mxu1 %v8796_v49  ;;  %v8873_v49 = vld [vmem:[%s9990_s11 + $0x49c] ss:$36 sps:$4 sm:$0xff]  }
 0x4f8   : > { %6286 = vmatpush1.bf16.msra.mxu0 %v8799_v50  ;;  %6123 = vmatprep.subr.bf16.mxu1 %v8804_v51  ;;  %v8868_v50 = vld [vmem:[%s9990_s11 + $0x490] ss:$36 sps:$4 sm:$0xff]   ;;  %v8871_v51 = vld [vmem:[%s9990_s11 + $0x498] ss:$36 sps:$4 sm:$0xff]  }
 0x4f9   : > { %6287 = vmatprep.subr.bf16.mxu0 %v8807_v52  ;;  %v8876_v52 = vld [vmem:[%s9990_s11 + $0x4dc] ss:$36 sps:$4 sm:$0xff]  }
 0x4fb   : > { %6124 = vmatpush1.bf16.msra.mxu1 %v8802_v54  ;;  %v8879_v54 = vld [vmem:[%s9990_s11 + $0x4e4] ss:$36 sps:$4 sm:$0xff]  }
 0x4fc   : > { %6288 = vmatpush1.bf16.msra.mxu0 %v8805_v55  ;;  %6125 = vmatprep.subr.bf16.mxu1 %v8810_v53  ;;  %v8874_v55 = vld [vmem:[%s9990_s11 + $0x4d8] ss:$36 sps:$4 sm:$0xff]   ;;  %v8877_v53 = vld [vmem:[%s9990_s11 + $0x4e0] ss:$36 sps:$4 sm:$0xff]  }
 0x4fd   : > { %6289 = vmatprep.subr.bf16.mxu0 %v8813_v56  ;;  %v8882_v56 = vld [vmem:[%s9990_s11 + $0x524] ss:$36 sps:$4 sm:$0xff]  }
 0x4ff   : > { %6126 = vmatpush1.bf16.msra.mxu1 %v8808_v57  ;;  %v8885_v57 = vld [vmem:[%s9990_s11 + $0x52c] ss:$36 sps:$4 sm:$0xff]  }
 0x500   : > { %6290 = vmatpush1.bf16.msra.mxu0 %v8811_v59  ;;  %6127 = vmatprep.subr.bf16.mxu1 %v8816_v60  ;;  %v8880_v59 = vld [vmem:[%s9990_s11 + $0x520] ss:$36 sps:$4 sm:$0xff]   ;;  %v8883_v60 = vld [vmem:[%s9990_s11 + $0x528] ss:$36 sps:$4 sm:$0xff]  }
 0x501   : > { %6291 = vmatprep.subr.bf16.mxu0 %v8819_v62  ;;  %v8888_v62 = vld [vmem:[%s9990_s11 + $0x56c] ss:$36 sps:$4 sm:$0xff]  }
 0x503   : > { %6128 = vmatpush1.bf16.msra.mxu1 %v8814_v63  ;;  %v8891_v63 = vld [vmem:[%s9990_s11 + $0x574] ss:$36 sps:$4 sm:$0xff]  }
 0x504   : > { %6292 = vmatpush1.bf16.msra.mxu0 %v8817_v2  ;;  %6129 = vmatprep.subr.bf16.mxu1 %v8822_v6  ;;  %v8886_v2 = vld [vmem:[%s9990_s11 + $0x568] ss:$36 sps:$4 sm:$0xff]   ;;  %v8889_v6 = vld [vmem:[%s9990_s11 + $0x570] ss:$36 sps:$4 sm:$0xff]  }
 0x505   : > { %6293 = vmatprep.subr.bf16.mxu0 %v8825_v7  ;;  %v8894_v7 = vld [vmem:[%s9990_s11 + $0x5b4] ss:$36 sps:$4 sm:$0xff]  }
 0x507   : > { %6130 = vmatpush1.bf16.msra.mxu1 %v8820_v8  ;;  %v8897_v8 = vld [vmem:[%s9990_s11 + $0x5bc] ss:$36 sps:$4 sm:$0xff]  }
 0x508   : > { %6294 = vmatpush1.bf16.msra.mxu0 %v8823_v9  ;;  %6131 = vmatprep.subr.bf16.mxu1 %v8828_v10  ;;  %v8892_v9 = vld [vmem:[%s9990_s11 + $0x5b0] ss:$36 sps:$4 sm:$0xff]   ;;  %v8895_v10 = vld [vmem:[%s9990_s11 + $0x5b8] ss:$36 sps:$4 sm:$0xff]  }
 0x509   : > { %6295 = vmatprep.subr.bf16.mxu0 %v8831_v11  ;;  %v8900_v11 = vld [vmem:[%s9990_s11 + $0x5fc] ss:$36 sps:$4 sm:$0xff]  }
 0x50b   : > { %6132 = vmatpush1.bf16.msra.mxu1 %v8826_v12  ;;  %v8903_v12 = vld [vmem:[%s9990_s11 + $0x604] ss:$36 sps:$4 sm:$0xff]  }
 0x50c   : > { %6296 = vmatpush1.bf16.msra.mxu0 %v8829_v58  ;;  %6133 = vmatprep.subr.bf16.mxu1 %v8834_v13  ;;  %v8898_v58 = vld [vmem:[%s9990_s11 + $0x5f8] ss:$36 sps:$4 sm:$0xff]   ;;  %v8901_v13 = vld [vmem:[%s9990_s11 + $0x600] ss:$36 sps:$4 sm:$0xff]  }
 0x50d   : > { %6297 = vmatprep.subr.bf16.mxu0 %v8837_v14  ;;  %v8906_v14 = vld [vmem:[%s9990_s11 + $0x644] ss:$36 sps:$4 sm:$0xff]  }
 0x50f   : > { %6134 = vmatpush1.bf16.msra.mxu1 %v8832_v16  ;;  %v8909_v16 = vld [vmem:[%s9990_s11 + $0x64c] ss:$36 sps:$4 sm:$0xff]  }
 0x510   : > { %6298 = vmatpush1.bf16.msra.mxu0 %v8835_v0  ;;  %6135 = vmatprep.subr.bf16.mxu1 %v8840_v17  ;;  %v8904_v0 = vld [vmem:[%s9990_s11 + $0x640] ss:$36 sps:$4 sm:$0xff]   ;;  %v8907_v17 = vld [vmem:[%s9990_s11 + $0x648] ss:$36 sps:$4 sm:$0xff]  }
 0x511   : > { %6299 = vmatprep.subr.bf16.mxu0 %v8843_v3  ;;  %v8912_v3 = vld [vmem:[%s9990_s11 + $0x68c] ss:$36 sps:$4 sm:$0xff]  }
 0x513   : > { %6136 = vmatpush1.bf16.msra.mxu1 %v8838_v19  ;;  %v8915_v19 = vld [vmem:[%s9990_s11 + $0x694] ss:$36 sps:$4 sm:$0xff]  }
 0x514   : > { %6300 = vmatpush1.bf16.msra.mxu0 %v8841_v20  ;;  %6137 = vmatprep.subr.bf16.mxu1 %v8846_v22  ;;  %v8910_v20 = vld [vmem:[%s9990_s11 + $0x688] ss:$36 sps:$4 sm:$0xff]   ;;  %v8913_v22 = vld [vmem:[%s9990_s11 + $0x690] ss:$36 sps:$4 sm:$0xff]  }
 0x515   : > { %6301 = vmatprep.subr.bf16.mxu0 %v8849_v47  ;;  %v8918_v47 = vld [vmem:[%s9990_s11 + $0x6d4] ss:$36 sps:$4 sm:$0xff]  }
 0x517   : > { %6138 = vmatpush1.bf16.msra.mxu1 %v8844_v26  ;;  %v8921_v26 = vld [vmem:[%s9990_s11 + $0x6dc] ss:$36 sps:$4 sm:$0xff]  }
 0x518   : > { %6302 = vmatpush1.bf16.msra.mxu0 %v8847_v27  ;;  %6139 = vmatprep.subr.bf16.mxu1 %v8852_v29  ;;  %v8916_v27 = vld [vmem:[%s9990_s11 + $0x6d0] ss:$36 sps:$4 sm:$0xff]   ;;  %v8919_v29 = vld [vmem:[%s9990_s11 + $0x6d8] ss:$36 sps:$4 sm:$0xff]  }
 0x519   : > { %6303 = vmatprep.subr.bf16.mxu0 %v8855_v25  ;;  %v8924_v25 = vld [vmem:[%s9990_s11 + $0x71c] ss:$36 sps:$4 sm:$0xff]  }
 0x51b   : > { %6140 = vmatpush1.bf16.msra.mxu1 %v8850_v32  ;;  %v8927_v32 = vld [vmem:[%s9990_s11 + $0x724] ss:$36 sps:$4 sm:$0xff]  }
 0x51c   : > { %6304 = vmatpush1.bf16.msra.mxu0 %v8853_v35  ;;  %6141 = vmatprep.subr.bf16.mxu1 %v8858_v37  ;;  %v8922_v35 = vld [vmem:[%s9990_s11 + $0x718] ss:$36 sps:$4 sm:$0xff]   ;;  %v8925_v37 = vld [vmem:[%s9990_s11 + $0x720] ss:$36 sps:$4 sm:$0xff]  }
 0x51d   : > { %6305 = vmatprep.subr.bf16.mxu0 %v8861_v38  ;;  %v8930_v38 = vld [vmem:[%s9990_s11 + $0x764] ss:$36 sps:$4 sm:$0xff]  }
 0x51f   : > { %6142 = vmatpush1.bf16.msra.mxu1 %v8856_v40  ;;  %v8933_v40 = vld [vmem:[%s9990_s11 + $0x76c] ss:$36 sps:$4 sm:$0xff]  }
 0x520   : > { %6306 = vmatpush1.bf16.msra.mxu0 %v8859_v41  ;;  %6143 = vmatprep.subr.bf16.mxu1 %v8864_v42  ;;  %v8928_v41 = vld [vmem:[%s9990_s11 + $0x760] ss:$36 sps:$4 sm:$0xff]   ;;  %v8931_v42 = vld [vmem:[%s9990_s11 + $0x768] ss:$36 sps:$4 sm:$0xff]  }
 0x521   : > { %6307 = vmatprep.subr.bf16.mxu0 %v8867_v43  ;;  %v8936_v43 = vld [vmem:[%s9990_s11 + $0x7ac] ss:$36 sps:$4 sm:$0xff]  }
 0x523   : > { %6144 = vmatpush1.bf16.msra.mxu1 %v8862_v44  ;;  %v8939_v44 = vld [vmem:[%s9990_s11 + $0x7b4] ss:$36 sps:$4 sm:$0xff]  }
 0x524   : > { %6308 = vmatpush1.bf16.msra.mxu0 %v8865_v45  ;;  %6154 = vmatprep.subr.bf16.mxu1 %v8870_v46  ;;  %v8934_v45 = vld [vmem:[%s9990_s11 + $0x7a8] ss:$36 sps:$4 sm:$0xff]   ;;  %v8937_v46 = vld [vmem:[%s9990_s11 + $0x7b0] ss:$36 sps:$4 sm:$0xff]  }
 0x525   : > { %6318 = vmatprep.subr.bf16.mxu0 %v8873_v49  ;;  %v8942_v49 = vld [vmem:[%s9990_s11 + $0x7f4] ss:$36 sps:$4 sm:$0xff]  }
 0x526   : > { %6146 = vmatmul.mubr.bf16.vlgmr.msra.gmra.mrb[12].mxu1 %v10137_v15 }
 0x527   : > { %6310 = vmatmul.mubr.bf16.vlgmr.msra.gmra.mrb[12].mxu0 %v10137_v15  ;;  %6155 = vmatpush1.bf16.msra.mxu1 %v8868_v50  ;;  %v8945_v50 = vld [vmem:[%s9990_s11 + $0x7fc] ss:$36 sps:$4 sm:$0xff]  }
 0x528   : > { %6186 = vmatprep.mubr.bf16.mxu1 %v10143_v18  ;;  %6319 = vmatpush1.bf16.msra.mxu0 %v8871_v51  ;;  %v8940_v51 = vld [vmem:[%s9990_s11 + $0x7f0] ss:$36 sps:$4 sm:$0xff]  }
 0x529   : > { %6350 = vmatprep.mubr.bf16.mxu0 %v10143_v18  ;;  %6156 = vmatprep.subr.bf16.mxu1 %v8876_v52  ;;  %v8943_v52 = vld [vmem:[%s9990_s11 + $0x7f8] ss:$36 sps:$4 sm:$0xff]  }
 0x52a   : > { %6320 = vmatprep.subr.bf16.mxu0 %v8879_v54  ;;  %v8948_v54 = vld [vmem:[%s9990_s11 + $0x83c] ss:$36 sps:$4 sm:$0xff]  }
 0x52b   : > { %6157 = vmatpush1.bf16.msra.mxu1 %v8874_v55  ;;  %v8951_v55 = vld [vmem:[%s9990_s11 + $0x844] ss:$36 sps:$4 sm:$0xff]  }
 0x52c   : > { %6321 = vmatpush1.bf16.msra.mxu0 %v8877_v53  ;;  %6158 = vmatprep.subr.bf16.mxu1 %v8882_v56  ;;  %v8946_v53 = vld [vmem:[%s9990_s11 + $0x838] ss:$36 sps:$4 sm:$0xff]   ;;  %v8949_v56 = vld [vmem:[%s9990_s11 + $0x840] ss:$36 sps:$4 sm:$0xff]  }
 0x52d   : > { %6322 = vmatprep.subr.bf16.mxu0 %v8885_v57  ;;  %v8954_v57 = vld [vmem:[%s9990_s11 + $0x884] ss:$36 sps:$4 sm:$0xff]  }
 0x52f   : > { %6159 = vmatpush1.bf16.msra.mxu1 %v8880_v59  ;;  %v8957_v59 = vld [vmem:[%s9990_s11 + $0x88c] ss:$36 sps:$4 sm:$0xff]  }
 0x530   : > { %6323 = vmatpush1.bf16.msra.mxu0 %v8883_v60  ;;  %6160 = vmatprep.subr.bf16.mxu1 %v8888_v62  ;;  %v8952_v60 = vld [vmem:[%s9990_s11 + $0x880] ss:$36 sps:$4 sm:$0xff]   ;;  %v8955_v62 = vld [vmem:[%s9990_s11 + $0x888] ss:$36 sps:$4 sm:$0xff]  }
 0x531   : > { %6324 = vmatprep.subr.bf16.mxu0 %v8891_v63  ;;  %v8960_v63 = vld [vmem:[%s9990_s11 + $0x8cc] ss:$36 sps:$4 sm:$0xff]  }
 0x533   : > { %6161 = vmatpush1.bf16.msra.mxu1 %v8886_v2  ;;  %v8963_v2 = vld [vmem:[%s9990_s11 + $0x8d4] ss:$36 sps:$4 sm:$0xff]  }
 0x534   : > { %6325 = vmatpush1.bf16.msra.mxu0 %v8889_v6  ;;  %6162 = vmatprep.subr.bf16.mxu1 %v8894_v7  ;;  %v8958_v6 = vld [vmem:[%s9990_s11 + $0x8c8] ss:$36 sps:$4 sm:$0xff]   ;;  %v8961_v7 = vld [vmem:[%s9990_s11 + $0x8d0] ss:$36 sps:$4 sm:$0xff]  }
 0x535   : > { %6326 = vmatprep.subr.bf16.mxu0 %v8897_v8  ;;  %v8966_v8 = vld [vmem:[%s9990_s11 + $0x914] ss:$36 sps:$4 sm:$0xff]  }
 0x537   : > { %6163 = vmatpush1.bf16.msra.mxu1 %v8892_v9  ;;  %v8969_v9 = vld [vmem:[%s9990_s11 + $0x91c] ss:$36 sps:$4 sm:$0xff]  }
 0x538   : > { %6327 = vmatpush1.bf16.msra.mxu0 %v8895_v10  ;;  %6164 = vmatprep.subr.bf16.mxu1 %v8900_v11  ;;  %v8964_v10 = vld [vmem:[%s9990_s11 + $0x910] ss:$36 sps:$4 sm:$0xff]   ;;  %v8967_v11 = vld [vmem:[%s9990_s11 + $0x918] ss:$36 sps:$4 sm:$0xff]  }
 0x539   : > { %6328 = vmatprep.subr.bf16.mxu0 %v8903_v12  ;;  %v8972_v12 = vld [vmem:[%s9990_s11 + $0x95c] ss:$36 sps:$4 sm:$0xff]  }
 0x53b   : > { %6165 = vmatpush1.bf16.msra.mxu1 %v8898_v58  ;;  %v8975_v58 = vld [vmem:[%s9990_s11 + $0x964] ss:$36 sps:$4 sm:$0xff]  }
 0x53c   : > { %6329 = vmatpush1.bf16.msra.mxu0 %v8901_v13  ;;  %6166 = vmatprep.subr.bf16.mxu1 %v8906_v14  ;;  %v8970_v13 = vld [vmem:[%s9990_s11 + $0x958] ss:$36 sps:$4 sm:$0xff]   ;;  %v8973_v14 = vld [vmem:[%s9990_s11 + $0x960] ss:$36 sps:$4 sm:$0xff]  }
 0x53d   : > { %6330 = vmatprep.subr.bf16.mxu0 %v8909_v16  ;;  %v8978_v16 = vld [vmem:[%s9990_s11 + $0x9a4] ss:$36 sps:$4 sm:$0xff]  }
 0x53f   : > { %6167 = vmatpush1.bf16.msra.mxu1 %v8904_v0  ;;  %v8981_v0 = vld [vmem:[%s9990_s11 + $0x9ac] ss:$36 sps:$4 sm:$0xff]  }
 0x540   : > { %6331 = vmatpush1.bf16.msra.mxu0 %v8907_v17  ;;  %6168 = vmatprep.subr.bf16.mxu1 %v8912_v3  ;;  %v8976_v17 = vld [vmem:[%s9990_s11 + $0x9a0] ss:$36 sps:$4 sm:$0xff]   ;;  %v8979_v3 = vld [vmem:[%s9990_s11 + $0x9a8] ss:$36 sps:$4 sm:$0xff]  }
 0x541   : > { %6332 = vmatprep.subr.bf16.mxu0 %v8915_v19  ;;  %v8984_v19 = vld [vmem:[%s9990_s11 + $0x9ec] ss:$36 sps:$4 sm:$0xff]  }
 0x543   : > { %6169 = vmatpush1.bf16.msra.mxu1 %v8910_v20  ;;  %v8987_v20 = vld [vmem:[%s9990_s11 + $0x9f4] ss:$36 sps:$4 sm:$0xff]  }
 0x544   : > { %6333 = vmatpush1.bf16.msra.mxu0 %v8913_v22  ;;  %6170 = vmatprep.subr.bf16.mxu1 %v8918_v47  ;;  %v8982_v22 = vld [vmem:[%s9990_s11 + $0x9e8] ss:$36 sps:$4 sm:$0xff]   ;;  %v8985_v47 = vld [vmem:[%s9990_s11 + $0x9f0] ss:$36 sps:$4 sm:$0xff]  }
 0x545   : > { %6334 = vmatprep.subr.bf16.mxu0 %v8921_v26  ;;  %v8990_v26 = vld [vmem:[%s9990_s11 + $0xa34] ss:$36 sps:$4 sm:$0xff]  }
 0x547   : > { %6171 = vmatpush1.bf16.msra.mxu1 %v8916_v27  ;;  %v8993_v27 = vld [vmem:[%s9990_s11 + $0xa3c] ss:$36 sps:$4 sm:$0xff]  }
 0x548   : > { %6335 = vmatpush1.bf16.msra.mxu0 %v8919_v29  ;;  %6172 = vmatprep.subr.bf16.mxu1 %v8924_v25  ;;  %v8988_v29 = vld [vmem:[%s9990_s11 + $0xa30] ss:$36 sps:$4 sm:$0xff]   ;;  %v8991_v25 = vld [vmem:[%s9990_s11 + $0xa38] ss:$36 sps:$4 sm:$0xff]  }
 0x549   : > { %6336 = vmatprep.subr.bf16.mxu0 %v8927_v32  ;;  %v8996_v32 = vld [vmem:[%s9990_s11 + $0xa7c] ss:$36 sps:$4 sm:$0xff]  }
 0x54b   : > { %6173 = vmatpush1.bf16.msra.mxu1 %v8922_v35  ;;  %v8999_v35 = vld [vmem:[%s9990_s11 + $0xa84] ss:$36 sps:$4 sm:$0xff]  }
 0x54c   : > { %6337 = vmatpush1.bf16.msra.mxu0 %v8925_v37  ;;  %6174 = vmatprep.subr.bf16.mxu1 %v8930_v38  ;;  %v8994_v37 = vld [vmem:[%s9990_s11 + $0xa78] ss:$36 sps:$4 sm:$0xff]   ;;  %v8997_v38 = vld [vmem:[%s9990_s11 + $0xa80] ss:$36 sps:$4 sm:$0xff]  }
 0x54d   : > { %6338 = vmatprep.subr.bf16.mxu0 %v8933_v40  ;;  %v9002_v40 = vld [vmem:[%s9990_s11 + $0xac4] ss:$36 sps:$4 sm:$0xff]  }
 0x54f   : > { %6175 = vmatpush1.bf16.msra.mxu1 %v8928_v41  ;;  %v9005_v41 = vld [vmem:[%s9990_s11 + $0xacc] ss:$36 sps:$4 sm:$0xff]  }
 0x550   : > { %6339 = vmatpush1.bf16.msra.mxu0 %v8931_v42  ;;  %6176 = vmatprep.subr.bf16.mxu1 %v8936_v43  ;;  %v9000_v42 = vld [vmem:[%s9990_s11 + $0xac0] ss:$36 sps:$4 sm:$0xff]   ;;  %v9003_v43 = vld [vmem:[%s9990_s11 + $0xac8] ss:$36 sps:$4 sm:$0xff]  }
 0x551   : > { %6340 = vmatprep.subr.bf16.mxu0 %v8939_v44  ;;  %v9008_v44 = vld [vmem:[%s9990_s11 + $0xb0c] ss:$36 sps:$4 sm:$0xff]  }
 0x553   : > { %6177 = vmatpush1.bf16.msra.mxu1 %v8934_v45  ;;  %v9011_v45 = vld [vmem:[%s9990_s11 + $0xb14] ss:$36 sps:$4 sm:$0xff]  }
 0x554   : > { %6341 = vmatpush1.bf16.msra.mxu0 %v8937_v46  ;;  %6178 = vmatprep.subr.bf16.mxu1 %v8942_v49  ;;  %v9006_v46 = vld [vmem:[%s9990_s11 + $0xb08] ss:$36 sps:$4 sm:$0xff]   ;;  %v9009_v49 = vld [vmem:[%s9990_s11 + $0xb10] ss:$36 sps:$4 sm:$0xff]  }
 0x555   : > { %6342 = vmatprep.subr.bf16.mxu0 %v8945_v50  ;;  %v9014_v50 = vld [vmem:[%s9990_s11 + $0xb54] ss:$36 sps:$4 sm:$0xff]  }
 0x557   : > { %6179 = vmatpush1.bf16.msra.mxu1 %v8940_v51  ;;  %v9017_v51 = vld [vmem:[%s9990_s11 + $0xb5c] ss:$36 sps:$4 sm:$0xff]  }
 0x558   : > { %6343 = vmatpush1.bf16.msra.mxu0 %v8943_v52  ;;  %6180 = vmatprep.subr.bf16.mxu1 %v8948_v54  ;;  %v9012_v52 = vld [vmem:[%s9990_s11 + $0xb50] ss:$36 sps:$4 sm:$0xff]   ;;  %v9015_v54 = vld [vmem:[%s9990_s11 + $0xb58] ss:$36 sps:$4 sm:$0xff]  }
 0x559   : > { %6344 = vmatprep.subr.bf16.mxu0 %v8951_v55  ;;  %v9020_v55 = vld [vmem:[%s9990_s11 + $0xb9c] ss:$36 sps:$4 sm:$0xff]  }
 0x55b   : > { %6181 = vmatpush1.bf16.msra.mxu1 %v8946_v53  ;;  %v9023_v53 = vld [vmem:[%s9990_s11 + $0xba4] ss:$36 sps:$4 sm:$0xff]  }
 0x55c   : > { %6345 = vmatpush1.bf16.msra.mxu0 %v8949_v56  ;;  %6182 = vmatprep.subr.bf16.mxu1 %v8954_v57  ;;  %v9018_v56 = vld [vmem:[%s9990_s11 + $0xb98] ss:$36 sps:$4 sm:$0xff]   ;;  %v9021_v57 = vld [vmem:[%s9990_s11 + $0xba0] ss:$36 sps:$4 sm:$0xff]  }
 0x55d   : > { %6346 = vmatprep.subr.bf16.mxu0 %v8957_v59  ;;  %v9026_v59 = vld [vmem:[%s9990_s11 + $0xbe4] ss:$36 sps:$4 sm:$0xff]  }
 0x55f   : > { %6183 = vmatpush1.bf16.msra.mxu1 %v8952_v60  ;;  %v9029_v60 = vld [vmem:[%s9990_s11 + $0xbec] ss:$36 sps:$4 sm:$0xff]  }
 0x560   : > { %6347 = vmatpush1.bf16.msra.mxu0 %v8955_v62  ;;  %6184 = vmatprep.subr.bf16.mxu1 %v8960_v63  ;;  %v9024_v62 = vld [vmem:[%s9990_s11 + $0xbe0] ss:$36 sps:$4 sm:$0xff]   ;;  %v9027_v63 = vld [vmem:[%s9990_s11 + $0xbe8] ss:$36 sps:$4 sm:$0xff]  }
 0x561   : > { %6348 = vmatprep.subr.bf16.mxu0 %v8963_v2  ;;  %v9032_v2 = vld [vmem:[%s9990_s11 + $0xc2c] ss:$36 sps:$4 sm:$0xff]  }
 0x563   : > { %6185 = vmatpush1.bf16.msra.mxu1 %v8958_v6  ;;  %v9035_v6 = vld [vmem:[%s9990_s11 + $0xc34] ss:$36 sps:$4 sm:$0xff]  }
 0x564   : > { %6349 = vmatpush1.bf16.msra.mxu0 %v8961_v7  ;;  %6195 = vmatprep.subr.bf16.mxu1 %v8966_v8  ;;  %v9030_v7 = vld [vmem:[%s9990_s11 + $0xc28] ss:$36 sps:$4 sm:$0xff]   ;;  %v9033_v8 = vld [vmem:[%s9990_s11 + $0xc30] ss:$36 sps:$4 sm:$0xff]  }
 0x565   : > { %6359 = vmatprep.subr.bf16.mxu0 %v8969_v9  ;;  %v9038_v9 = vld [vmem:[%s9990_s11 + $0xc74] ss:$36 sps:$4 sm:$0xff]  }
 0x566   : > { %6187 = vmatmul.mubr.bf16.vlgmr.msra.gmra.mrb[12].mxu1 %v10214_v31 }
 0x567   : > { %6351 = vmatmul.mubr.bf16.vlgmr.msra.gmra.mrb[12].mxu0 %v10214_v31  ;;  %6196 = vmatpush1.bf16.msra.mxu1 %v8964_v10  ;;  %v9041_v10 = vld [vmem:[%s9990_s11 + $0xc7c] ss:$36 sps:$4 sm:$0xff]  }
 0x568   : > { %6227 = vmatprep.mubr.bf16.mxu1 %v10294_v61  ;;  %6360 = vmatpush1.bf16.msra.mxu0 %v8967_v11  ;;  %v9036_v11 = vld [vmem:[%s9990_s11 + $0xc70] ss:$36 sps:$4 sm:$0xff]  }
 0x569   : > { %6391 = vmatprep.mubr.bf16.mxu0 %v10294_v61  ;;  %6197 = vmatprep.subr.bf16.mxu1 %v8972_v12  ;;  %v9039_v12 = vld [vmem:[%s9990_s11 + $0xc78] ss:$36 sps:$4 sm:$0xff]  }
 0x56a   : > { %6361 = vmatprep.subr.bf16.mxu0 %v8975_v58  ;;  %v9044_v58 = vld [vmem:[%s9990_s11 + $0xcbc] ss:$36 sps:$4 sm:$0xff]  }
 0x56b   : > { %6198 = vmatpush1.bf16.msra.mxu1 %v8970_v13  ;;  %v9047_v13 = vld [vmem:[%s9990_s11 + $0xcc4] ss:$36 sps:$4 sm:$0xff]  }
 0x56c   : > { %6362 = vmatpush1.bf16.msra.mxu0 %v8973_v14  ;;  %6199 = vmatprep.subr.bf16.mxu1 %v8978_v16  ;;  %v9042_v14 = vld [vmem:[%s9990_s11 + $0xcb8] ss:$36 sps:$4 sm:$0xff]   ;;  %v9045_v16 = vld [vmem:[%s9990_s11 + $0xcc0] ss:$36 sps:$4 sm:$0xff]  }
 0x56d   : > { %6363 = vmatprep.subr.bf16.mxu0 %v8981_v0  ;;  %v9050_v0 = vld [vmem:[%s9990_s11 + $0xd04] ss:$36 sps:$4 sm:$0xff]  }
 0x56f   : > { %6200 = vmatpush1.bf16.msra.mxu1 %v8976_v17  ;;  %v9053_v17 = vld [vmem:[%s9990_s11 + $0xd0c] ss:$36 sps:$4 sm:$0xff]  }
 0x570   : > { %6364 = vmatpush1.bf16.msra.mxu0 %v8979_v3  ;;  %6201 = vmatprep.subr.bf16.mxu1 %v8984_v19  ;;  %v9048_v3 = vld [vmem:[%s9990_s11 + $0xd00] ss:$36 sps:$4 sm:$0xff]   ;;  %v9051_v19 = vld [vmem:[%s9990_s11 + $0xd08] ss:$36 sps:$4 sm:$0xff]  }
 0x571   : > { %6365 = vmatprep.subr.bf16.mxu0 %v8987_v20  ;;  %v9056_v20 = vld [vmem:[%s9990_s11 + $0xd4c] ss:$36 sps:$4 sm:$0xff]  }
 0x573   : > { %6202 = vmatpush1.bf16.msra.mxu1 %v8982_v22  ;;  %v9059_v22 = vld [vmem:[%s9990_s11 + $0xd54] ss:$36 sps:$4 sm:$0xff]  }
 0x574   : > { %6366 = vmatpush1.bf16.msra.mxu0 %v8985_v47  ;;  %6203 = vmatprep.subr.bf16.mxu1 %v8990_v26  ;;  %v9054_v47 = vld [vmem:[%s9990_s11 + $0xd48] ss:$36 sps:$4 sm:$0xff]   ;;  %v9057_v26 = vld [vmem:[%s9990_s11 + $0xd50] ss:$36 sps:$4 sm:$0xff]  }
 0x575   : > { %6367 = vmatprep.subr.bf16.mxu0 %v8993_v27  ;;  %v9062_v27 = vld [vmem:[%s9990_s11 + $0xd94] ss:$36 sps:$4 sm:$0xff]  }
 0x577   : > { %6204 = vmatpush1.bf16.msra.mxu1 %v8988_v29  ;;  %v9065_v29 = vld [vmem:[%s9990_s11 + $0xd9c] ss:$36 sps:$4 sm:$0xff]  }
 0x578   : > { %6368 = vmatpush1.bf16.msra.mxu0 %v8991_v25  ;;  %6205 = vmatprep.subr.bf16.mxu1 %v8996_v32  ;;  %v9060_v25 = vld [vmem:[%s9990_s11 + $0xd90] ss:$36 sps:$4 sm:$0xff]   ;;  %v9063_v32 = vld [vmem:[%s9990_s11 + $0xd98] ss:$36 sps:$4 sm:$0xff]  }
 0x579   : > { %6369 = vmatprep.subr.bf16.mxu0 %v8999_v35  ;;  %v9068_v35 = vld [vmem:[%s9990_s11 + $0xddc] ss:$36 sps:$4 sm:$0xff]  }
 0x57b   : > { %6206 = vmatpush1.bf16.msra.mxu1 %v8994_v37  ;;  %v9071_v37 = vld [vmem:[%s9990_s11 + $0xde4] ss:$36 sps:$4 sm:$0xff]  }
 0x57c   : > { %6370 = vmatpush1.bf16.msra.mxu0 %v8997_v38  ;;  %6207 = vmatprep.subr.bf16.mxu1 %v9002_v40  ;;  %v9066_v38 = vld [vmem:[%s9990_s11 + $0xdd8] ss:$36 sps:$4 sm:$0xff]   ;;  %v9069_v40 = vld [vmem:[%s9990_s11 + $0xde0] ss:$36 sps:$4 sm:$0xff]  }
 0x57d   : > { %6371 = vmatprep.subr.bf16.mxu0 %v9005_v41  ;;  %v9074_v41 = vld [vmem:[%s9990_s11 + $0xe24] ss:$36 sps:$4 sm:$0xff]  }
 0x57f   : > { %6208 = vmatpush1.bf16.msra.mxu1 %v9000_v42  ;;  %v9077_v42 = vld [vmem:[%s9990_s11 + $0xe2c] ss:$36 sps:$4 sm:$0xff]  }
 0x580   : > { %6372 = vmatpush1.bf16.msra.mxu0 %v9003_v43  ;;  %6209 = vmatprep.subr.bf16.mxu1 %v9008_v44  ;;  %v9072_v43 = vld [vmem:[%s9990_s11 + $0xe20] ss:$36 sps:$4 sm:$0xff]   ;;  %v9075_v44 = vld [vmem:[%s9990_s11 + $0xe28] ss:$36 sps:$4 sm:$0xff]  }
 0x581   : > { %6373 = vmatprep.subr.bf16.mxu0 %v9011_v45  ;;  %v9080_v45 = vld [vmem:[%s9990_s11 + $0xe6c] ss:$36 sps:$4 sm:$0xff]  }
 0x583   : > { %6210 = vmatpush1.bf16.msra.mxu1 %v9006_v46  ;;  %v9083_v46 = vld [vmem:[%s9990_s11 + $0xe74] ss:$36 sps:$4 sm:$0xff]  }
 0x584   : > { %6374 = vmatpush1.bf16.msra.mxu0 %v9009_v49  ;;  %6211 = vmatprep.subr.bf16.mxu1 %v9014_v50  ;;  %v9078_v49 = vld [vmem:[%s9990_s11 + $0xe68] ss:$36 sps:$4 sm:$0xff]   ;;  %v9081_v50 = vld [vmem:[%s9990_s11 + $0xe70] ss:$36 sps:$4 sm:$0xff]  }
 0x585   : > { %6375 = vmatprep.subr.bf16.mxu0 %v9017_v51  ;;  %v9086_v51 = vld [vmem:[%s9990_s11 + $0xeb4] ss:$36 sps:$4 sm:$0xff]  }
 0x587   : > { %6212 = vmatpush1.bf16.msra.mxu1 %v9012_v52  ;;  %v9089_v52 = vld [vmem:[%s9990_s11 + $0xebc] ss:$36 sps:$4 sm:$0xff]  }
 0x588   : > { %6376 = vmatpush1.bf16.msra.mxu0 %v9015_v54  ;;  %6213 = vmatprep.subr.bf16.mxu1 %v9020_v55  ;;  %v9084_v54 = vld [vmem:[%s9990_s11 + $0xeb0] ss:$36 sps:$4 sm:$0xff]  }
 0x589   : > { %6377 = vmatprep.subr.bf16.mxu0 %v9023_v53  ;;  %v10613_v55 = vld [vmem:[%s10608_s23] sm:$0xff]  ;;  %v9087_v53 = vld [vmem:[%s9990_s11 + $0xeb8] ss:$36 sps:$4 sm:$0xff]  }
 0x58b   : > { %6214 = vmatpush1.bf16.msra.mxu1 %v9018_v56  ;;  %v9092_v56 = vld [vmem:[%s9990_s11 + $0xefc] ss:$36 sps:$4 sm:$0xff]  }
 0x58c   : > { %6378 = vmatpush1.bf16.msra.mxu0 %v9021_v57  ;;  %6215 = vmatprep.subr.bf16.mxu1 %v9026_v59  ;;  %v9095_v57 = vld [vmem:[%s9990_s11 + $0xf04] ss:$36 sps:$4 sm:$0xff]   ;;  %v2799_v59 = vrot.slane %v10613_v55, %v9999_v23  ;;  %v9101_v23 = vld [vmem:[%s9990_s11 + $0xf4c] ss:$36 sps:$4 sm:$0xff]  }
 0x58d   : > { %6379 = vmatprep.subr.bf16.mxu0 %v9029_v60  ;;  %v2807_v60 = vrot.slane %v10613_v55, %v10040_v48 }
 0x58f   : > { %6216 = vmatpush1.bf16.msra.mxu1 %v9024_v62  ;;  %v2803_v62 = vrot.slane %v10613_v55, %v10002_v24 }
 0x590   : > { %6380 = vmatpush1.bf16.msra.mxu0 %v9027_v63  ;;  %6217 = vmatprep.subr.bf16.mxu1 %v9032_v2  ;;  %v2811_v63 = vrot.slane %v10613_v55, %v10017_v34  ;;  %v9090_v2 = vld [vmem:[%s9990_s11 + $0xef8] ss:$36 sps:$4 sm:$0xff]  }
 0x591   : > { %6381 = vmatprep.subr.bf16.mxu0 %v9035_v6  ;;  %v9093_v6 = vld [vmem:[%s9990_s11 + $0xf00] ss:$36 sps:$4 sm:$0xff]  }
 0x593   : > { %6218 = vmatpush1.bf16.msra.mxu1 %v9030_v7  ;;  %v9098_v7 = vld [vmem:[%s9990_s11 + $0xf44] ss:$36 sps:$4 sm:$0xff]  }
 0x594   : > { %6382 = vmatpush1.bf16.msra.mxu0 %v9033_v8  ;;  %6219 = vmatprep.subr.bf16.mxu1 %v9038_v9 }
 0x595   : > { %6383 = vmatprep.subr.bf16.mxu0 %v9041_v10 }
 0x597   : > { %6220 = vmatpush1.bf16.msra.mxu1 %v9036_v11 }
 0x598   : > { %6384 = vmatpush1.bf16.msra.mxu0 %v9039_v12  ;;  %6221 = vmatprep.subr.bf16.mxu1 %v9044_v58 }
 0x599   : > { %6385 = vmatprep.subr.bf16.mxu0 %v9047_v13 }
 0x59b   : > { %6222 = vmatpush1.bf16.msra.mxu1 %v9042_v14  ;;  %v9096_v14 = vld [vmem:[%s9990_s11 + $0xf40] ss:$36 sps:$4 sm:$0xff]  }
 0x59c   : > { %6386 = vmatpush1.bf16.msra.mxu0 %v9045_v16  ;;  %6223 = vmatprep.subr.bf16.mxu1 %v9050_v0  ;;  %v9099_v16 = vld [vmem:[%s9990_s11 + $0xf48] ss:$36 sps:$4 sm:$0xff]  }
 0x59d   : > { %6387 = vmatprep.subr.bf16.mxu0 %v9053_v17 }
 0x59f   : > { %6224 = vmatpush1.bf16.msra.mxu1 %v9048_v3  ;;  %v9104_v3 = vld [vmem:[%s9990_s11 + $0xf8c] ss:$36 sps:$4 sm:$0xff]  }
 0x5a0   : > { %6388 = vmatpush1.bf16.msra.mxu0 %v9051_v19  ;;  %6225 = vmatprep.subr.bf16.mxu1 %v9056_v20  ;;  %v9107_v19 = vld [vmem:[%s9990_s11 + $0xf94] ss:$36 sps:$4 sm:$0xff]   ;;  %v9600_v20 = vmov 1983009808  }
 0x5a1   : > { %6389 = vmatprep.subr.bf16.mxu0 %v9059_v22  ;;  %v6622_v22 = vunpack.c.l.s4 %v9600_v20  ;;  %v9159_v20 = vld [vmem:[%s9990_s11 + $0x4a0] ss:$36 sps:$4 sm:$0xff]  }
 0x5a3   : > { %6226 = vmatpush1.bf16.msra.mxu1 %v9054_v47  ;;  %v9102_v47 = vld [vmem:[%s9990_s11 + $0xf88] ss:$36 sps:$4 sm:$0xff]  }
 0x5a4   : > { %6390 = vmatpush1.bf16.msra.mxu0 %v9057_v26  ;;  %6236 = vmatprep.subr.bf16.mxu1 %v9062_v27  ;;  %v9105_v26 = vld [vmem:[%s9990_s11 + $0xf90] ss:$36 sps:$4 sm:$0xff]  }
 0x5a5   : > { %6400 = vmatprep.subr.bf16.mxu0 %v9065_v29  ;;  %v9110_v27 = vld [vmem:[%s9990_s11 + $0xfd4] ss:$36 sps:$4 sm:$0xff]   ;;  %v9113_v29 = vld [vmem:[%s9990_s11 + $0xfdc] ss:$36 sps:$4 sm:$0xff]  }
 0x5a6   : > { %6228 = vmatmul.mubr.bf16.vlgmr.msra.gmra.mrb[12].mxu1 %v10298_v1 }
 0x5a7   : > { %6392 = vmatmul.mubr.bf16.vlgmr.msra.gmra.mrb[12].mxu0 %v10298_v1  ;;  %6237 = vmatpush1.bf16.msra.mxu1 %v9060_v25  ;;  %v6623_v25 = vunpack.c.0.s8 %v6622_v22  ;;  %v9160_v22 = vld [vmem:[%s9990_s11 + $0x2a8] ss:$36 sps:$4 sm:$0xff]  }
 0x5a8   : > { %6268 = vmatprep.mubr.bf16.mxu1 %v10304_v5  ;;  %6401 = vmatpush1.bf16.msra.mxu0 %v9063_v32  ;;  %v9108_v32 = vld [vmem:[%s9990_s11 + $0xfd0] ss:$36 sps:$4 sm:$0xff]  }
 0x5a9   : > { %6432 = vmatprep.mubr.bf16.mxu0 %v10304_v5  ;;  %6238 = vmatprep.subr.bf16.mxu1 %v9068_v35  ;;  %v9111_v35 = vld [vmem:[%s9990_s11 + $0xfd8] ss:$36 sps:$4 sm:$0xff]  }
 0x5aa   : > { %6402 = vmatprep.subr.bf16.mxu0 %v9071_v37  ;;  %v9116_v37 = vld [vmem:[%s9990_s11 + $0x101c] ss:$36 sps:$4 sm:$0xff]  }
 0x5ab   : > { %6239 = vmatpush1.bf16.msra.mxu1 %v9066_v38  ;;  %v9119_v38 = vld [vmem:[%s9990_s11 + $0x1024] ss:$36 sps:$4 sm:$0xff]  }
 0x5ac   : > { %6403 = vmatpush1.bf16.msra.mxu0 %v9069_v40  ;;  %6240 = vmatprep.subr.bf16.mxu1 %v9074_v41 }
 0x5ad   : > { %6404 = vmatprep.subr.bf16.mxu0 %v9077_v42  ;;  %v10643_v42 = vsub.s32 %v6623_v25, %v9996_v21  ;;  %v9165_v25 = vld [vmem:[%s9990_s11 + $0x770] ss:$36 sps:$4 sm:$0xff]  }
 0x5af   : > { %6241 = vmatpush1.bf16.msra.mxu1 %v9072_v43  ;;  %v9114_v43 = vld [vmem:[%s9990_s11 + $0x1018] ss:$36 sps:$4 sm:$0xff]  }
 0x5b0   : > { %6405 = vmatpush1.bf16.msra.mxu0 %v9075_v44  ;;  %6242 = vmatprep.subr.bf16.mxu1 %v9080_v45  ;;  %v9117_v45 = vld [vmem:[%s9990_s11 + $0x1020] ss:$36 sps:$4 sm:$0xff]  }
 0x5b1   : > { %6406 = vmatprep.subr.bf16.mxu0 %v9083_v46  ;;  %v9122_v46 = vld [vmem:[%s9990_s11 + $0x1064] ss:$36 sps:$4 sm:$0xff]  }
 0x5b3   : > { %6243 = vmatpush1.bf16.msra.mxu1 %v9078_v49 }
 0x5b4   : > { %6407 = vmatpush1.bf16.msra.mxu0 %v9081_v50  ;;  %6244 = vmatprep.subr.bf16.mxu1 %v9086_v51  ;;  %v9125_v51 = vld [vmem:[%s9990_s11 + $0x106c] ss:$36 sps:$4 sm:$0xff]  }
 0x5b5   : > { %6408 = vmatprep.subr.bf16.mxu0 %v9089_v52 }
 0x5b7   : > { %6245 = vmatpush1.bf16.msra.mxu1 %v9084_v54 }
 0x5b8   : > { %6409 = vmatpush1.bf16.msra.mxu0 %v9087_v53  ;;  %6246 = vmatprep.subr.bf16.mxu1 %v9092_v56  ;;  %v9120_v53 = vld [vmem:[%s9990_s11 + $0x1060] ss:$36 sps:$4 sm:$0xff]  }
 0x5b9   : > { %v5942_v8 = vpop.f32.mrb[8].mxu1  ;;  %v6106_v9 = vpop.f32.mrb[8].mxu0  ;;  %6410 = vmatprep.subr.bf16.mxu0 %v9095_v57  ;;  %v9123_v57 = vld [vmem:[%s9990_s11 + $0x1068] ss:$36 sps:$4 sm:$0xff]  }
 0x5ba   : > { %v8181_v10 = vadd.f32 %v5942_v8, %v2799_v59  ;;  %v8183_v48 = vadd.f32 %v6106_v9, %v2807_v60  ;;  %v5944_v11 = vpop.f32.mrb[9].mxu1  ;;  %v6108_v12 = vpop.f32.mrb[9].mxu0  ;;  %v9128_v59 = vld [vmem:[%s9990_s11 + $0x10ac] ss:$36 sps:$4 sm:$0xff]   ;;  %v9131_v60 = vld [vmem:[%s9990_s11 + $0x10b4] ss:$36 sps:$4 sm:$0xff]  }
 0x5bb   : > { %v8182_v24 = vadd.f32 %v5944_v11, %v2803_v62  ;;  %v8184_v58 = vadd.f32 %v6108_v12, %v2811_v63  ;;  %v5946_v34 = vpop.f32.mrb[10].mxu1  ;;  %v6110_v13 = vpop.f32.mrb[10].mxu0  ;;  %6247 = vmatpush1.bf16.msra.mxu1 %v9090_v2  ;;  %v9126_v63 = vld [vmem:[%s9990_s11 + $0x10a8] ss:$36 sps:$4 sm:$0xff]   ;;  %v9129_v2 = vld [vmem:[%s9990_s11 + $0x10b0] ss:$36 sps:$4 sm:$0xff]  }
 0x5bc   : > { %9224 = vtanh.f32 %v8181_v10  ;;  %6411 = vmatpush1.bf16.msra.mxu0 %v9093_v6  ;;  %v5947_v0 = vpop.f32.mrb[11].mxu1  ;;  %v6111_v17 = vpop.f32.mrb[11].mxu0  ;;  %6248 = vmatprep.subr.bf16.mxu1 %v9098_v7  ;;  %v9134_v6 = vld [vmem:[%s9990_s11 + $0x10f4] ss:$36 sps:$4 sm:$0xff]   ;;  %v9137_v7 = vld [vmem:[%s9990_s11 + $0x10fc] ss:$36 sps:$4 sm:$0xff]  }
 0x5bd   : > { %9226 = vtanh.f32 %v8183_v48  ;;  %6412 = vmatprep.subr.bf16.mxu0 %v9101_v23  ;;  %v9132_v8 = vld [vmem:[%s9990_s11 + $0x10f0] ss:$36 sps:$4 sm:$0xff]   ;;  %v9135_v9 = vld [vmem:[%s9990_s11 + $0x10f8] ss:$36 sps:$4 sm:$0xff]   ;;  %v9143_v10 = vld [vmem:[%s9990_s11 + $0x1144] ss:$36 sps:$4 sm:$0xff]  }
 0x5be   : > { %9228 = vtanh.f32 %v8182_v24  ;;  %v9140_v23 = vld [vmem:[%s9990_s11 + $0x113c] ss:$36 sps:$4 sm:$0xff]   ;;  %v9146_v12 = vld [vmem:[%s9990_s11 + $0x1184] ss:$36 sps:$4 sm:$0xff]   ;;  %v9149_v24 = vld [vmem:[%s9990_s11 + $0x118c] ss:$36 sps:$4 sm:$0xff]  }
 0x5bf   : > { %9230 = vtanh.f32 %v8184_v58  ;;  %6249 = vmatpush1.bf16.msra.mxu1 %v9096_v14  ;;  %v9138_v48 = vld [vmem:[%s9990_s11 + $0x1138] ss:$36 sps:$4 sm:$0xff]   ;;  %v9141_v11 = vld [vmem:[%s9990_s11 + $0x1140] ss:$36 sps:$4 sm:$0xff]   ;;  %v9147_v34 = vld [vmem:[%s9990_s11 + $0x1188] ss:$36 sps:$4 sm:$0xff]  }
 0x5c0   : > { %6413 = vmatpush1.bf16.msra.mxu0 %v9099_v16  ;;  %6250 = vmatprep.subr.bf16.mxu1 %v9104_v3  ;;  %v9144_v58 = vld [vmem:[%s9990_s11 + $0x1180] ss:$36 sps:$4 sm:$0xff]   ;;  %v9152_v13 = vld [vmem:[%s9990_s11 + $0x11cc] ss:$36 sps:$4 sm:$0xff]   ;;  %v9155_v14 = vld [vmem:[%s9990_s11 + $0x11d4] ss:$36 sps:$4 sm:$0xff]  }
 0x5c1   : > { %6414 = vmatprep.subr.bf16.mxu0 %v9107_v19  ;;  %v9150_v16 = vld [vmem:[%s9990_s11 + $0x11c8] ss:$36 sps:$4 sm:$0xff]   ;;  %v9153_v0 = vld [vmem:[%s9990_s11 + $0x11d0] ss:$36 sps:$4 sm:$0xff]   ;;  %v9156_v17 = vld [vmem:[%s9990_s11 + $0x260] ss:$36 sps:$4 sm:$0xff]  }
 0x5c2   : > { %v9157_v3 = vld [vmem:[%s9990_s11 + $0x6e0] ss:$36 sps:$4 sm:$0xff]  }
 0x5c3   : > { %6251 = vmatpush1.bf16.msra.mxu1 %v9102_v47  ;;  %v9158_v19 = vld [vmem:[%s9990_s11 + $0x20] ss:$36 sps:$4 sm:$0xff]   ;;  %v9161_v47 = vld [vmem:[%s9990_s11 + $0x728] ss:$36 sps:$4 sm:$0xff]  }
 0x5c4   : > { %6415 = vmatpush1.bf16.msra.mxu0 %v9105_v26  ;;  %6252 = vmatprep.subr.bf16.mxu1 %v9110_v27  ;;  %v9162_v26 = vld [vmem:[%s9990_s11 + $0x68] ss:$36 sps:$4 sm:$0xff]  }
 0x5c5   : > { %6416 = vmatprep.subr.bf16.mxu0 %v9113_v29  ;;  %v9163_v27 = vld [vmem:[%s9990_s11 + $0x4e8] ss:$36 sps:$4 sm:$0xff]   ;;  %v9164_v29 = vld [vmem:[%s9990_s11 + $0x2f0] ss:$36 sps:$4 sm:$0xff]  }
 0x5c6   : > { %v9225_v40 = vpop.eup %9224 }
 0x5c7   : > { %v9227_v41 = vpop.eup %9226  ;;  %6253 = vmatpush1.bf16.msra.mxu1 %v9108_v32  ;;  %v9166_v32 = vld [vmem:[%s9990_s11 + $0xb0] ss:$36 sps:$4 sm:$0xff]  }
 0x5c8   : > { %v9229_v44 = vpop.eup %9228  ;;  %6417 = vmatpush1.bf16.msra.mxu0 %v9111_v35  ;;  %6254 = vmatprep.subr.bf16.mxu1 %v9116_v37  ;;  %v9167_v35 = vld [vmem:[%s9990_s11 + $0x530] ss:$36 sps:$4 sm:$0xff]   ;;  %v9169_v37 = vld [vmem:[%s9990_s11 + $0x7b8] ss:$36 sps:$4 sm:$0xff]  }
 0x5c9   : > { %v9231_v49 = vpop.eup %9230  ;;  %v6619_v50 = vcombine.low %v9225_v40, %v9229_v44  ;;  %6418 = vmatprep.subr.bf16.mxu0 %v9119_v38  ;;  %v9171_v38 = vld [vmem:[%s9990_s11 + $0x578] ss:$36 sps:$4 sm:$0xff]   ;;  %v9172_v40 = vld [vmem:[%s9990_s11 + $0x380] ss:$36 sps:$4 sm:$0xff]  }
 0x5ca   : > { %v6620_v52 = vcombine.low %v9227_v41, %v9231_v49  ;;  %v9173_v41 = vld [vmem:[%s9990_s11 + $0x800] ss:$36 sps:$4 sm:$0xff]   ;;  %v9178_v49 = vld [vmem:[%s9990_s11 + $0x188] ss:$36 sps:$4 sm:$0xff]  }
 0x5cb   : > { %v6627_v54 = vrot.slane %v6619_v50, %v10643_v42  ;;  %6255 = vmatpush1.bf16.msra.mxu1 %v9114_v43  ;;  %v9174_v43 = vld [vmem:[%s9990_s11 + $0x140] ss:$36 sps:$4 sm:$0xff]   ;;  %v9179_v50 = vld [vmem:[%s9990_s11 + $0x608] ss:$36 sps:$4 sm:$0xff]  }
 0x5cc   : > { %v6634_v56 = vrot.slane %v6620_v52, %v10643_v42  ;;  %6419 = vmatpush1.bf16.msra.mxu0 %v9117_v45  ;;  %6256 = vmatprep.subr.bf16.mxu1 %v9122_v46  ;;  %v9175_v44 = vld [vmem:[%s9990_s11 + $0x5c0] ss:$36 sps:$4 sm:$0xff]   ;;  %v9176_v45 = vld [vmem:[%s9990_s11 + $0x3c8] ss:$36 sps:$4 sm:$0xff]   ;;  %v9181_v52 = vld [vmem:[%s9990_s11 + $0x890] ss:$36 sps:$4 sm:$0xff]  }
 0x5cd   : > { %6420 = vmatprep.subr.bf16.mxu0 %v9125_v51  ;;  %v9177_v46 = vld [vmem:[%s9990_s11 + $0x848] ss:$36 sps:$4 sm:$0xff]   ;;  %v9180_v51 = vld [vmem:[%s9990_s11 + $0x410] ss:$36 sps:$4 sm:$0xff]  }
 0x5ce   : > { %v6635_v62 = vcombine.low %v6627_v54, %v6634_v56  ;;  %v9182_v54 = vld [vmem:[%s9990_s11 + $0x1d0] ss:$36 sps:$4 sm:$0xff]   ;;  %v9184_v56 = vld [vmem:[%s9990_s11 + $0x458] ss:$36 sps:$4 sm:$0xff]  }
 0x5cf   : > { %6257 = vmatpush1.bf16.msra.mxu1 %v9120_v53  ;;  %v9183_v53 = vld [vmem:[%s9990_s11 + $0x650] ss:$36 sps:$4 sm:$0xff]  }
 0x5d0   : > { %6663 = vst [vmem:[%s10658_s12] sm:$0xff] %v6635_v62  ;;  %6421 = vmatpush1.bf16.msra.mxu0 %v9123_v57  ;;  %6258 = vmatprep.subr.bf16.mxu1 %v9128_v59  ;;  %v9185_v57 = vld [vmem:[%s9990_s11 + $0x8d8] ss:$36 sps:$4 sm:$0xff]   ;;  %v9188_v62 = vld [vmem:[%s9990_s11 + $0xb60] ss:$36 sps:$4 sm:$0xff]  }
 0x5d1   : > { %6422 = vmatprep.subr.bf16.mxu0 %v9131_v60  ;;  %v9186_v59 = vld [vmem:[%s9990_s11 + $0x218] ss:$36 sps:$4 sm:$0xff]  }
 0x5d2   : > { %v9187_v60 = vld [vmem:[%s9990_s11 + $0x698] ss:$36 sps:$4 sm:$0xff]  }
 0x5d3   : > { %6259 = vmatpush1.bf16.msra.mxu1 %v9126_v63  ;;  %v9189_v63 = vld [vmem:[%s9990_s11 + $0xfe0] ss:$36 sps:$4 sm:$0xff]  }
 0x5d4   : > { %6423 = vmatpush1.bf16.msra.mxu0 %v9129_v2  ;;  %6260 = vmatprep.subr.bf16.mxu1 %v9134_v6  ;;  %v9190_v2 = vld [vmem:[%s9990_s11 + $0x920] ss:$36 sps:$4 sm:$0xff]  }
 0x5d5   : > { %6424 = vmatprep.subr.bf16.mxu0 %v9137_v7  ;;  %v9191_v6 = vld [vmem:[%s9990_s11 + $0xda0] ss:$36 sps:$4 sm:$0xff]   ;;  %v9192_v7 = vld [vmem:[%s9990_s11 + $0xba8] ss:$36 sps:$4 sm:$0xff]  }
 0x5d7   : > { %6261 = vmatpush1.bf16.msra.mxu1 %v9132_v8  ;;  %v9193_v8 = vld [vmem:[%s9990_s11 + $0x1028] ss:$36 sps:$4 sm:$0xff]  }
 0x5d8   : > { %6425 = vmatpush1.bf16.msra.mxu0 %v9135_v9  ;;  %6262 = vmatprep.subr.bf16.mxu1 %v9140_v23  ;;  %v9194_v9 = vld [vmem:[%s9990_s11 + $0x968] ss:$36 sps:$4 sm:$0xff]  }
 0x5d9   : > { %6426 = vmatprep.subr.bf16.mxu0 %v9143_v10  ;;  %v9195_v23 = vld [vmem:[%s9990_s11 + $0xde8] ss:$36 sps:$4 sm:$0xff]   ;;  %v9196_v10 = vld [vmem:[%s9990_s11 + $0xbf0] ss:$36 sps:$4 sm:$0xff]  }
 0x5db   : > { %6263 = vmatpush1.bf16.msra.mxu1 %v9138_v48  ;;  %v9199_v48 = vld [vmem:[%s9990_s11 + $0xe30] ss:$36 sps:$4 sm:$0xff]  }
 0x5dc   : > { %6427 = vmatpush1.bf16.msra.mxu0 %v9141_v11  ;;  %6264 = vmatprep.subr.bf16.mxu1 %v9146_v12  ;;  %v9201_v11 = vld [vmem:[%s9990_s11 + $0x10b8] ss:$36 sps:$4 sm:$0xff]  }
 0x5dd   : > { %6428 = vmatprep.subr.bf16.mxu0 %v9149_v24  ;;  %v9203_v12 = vld [vmem:[%s9990_s11 + $0xe78] ss:$36 sps:$4 sm:$0xff]   ;;  %v9204_v24 = vld [vmem:[%s9990_s11 + $0xc80] ss:$36 sps:$4 sm:$0xff]  }
 0x5df   : > { %6265 = vmatpush1.bf16.msra.mxu1 %v9144_v58  ;;  %v9205_v58 = vld [vmem:[%s9990_s11 + $0x1100] ss:$36 sps:$4 sm:$0xff]  }
 0x5e0   : > { %6429 = vmatpush1.bf16.msra.mxu0 %v9147_v34  ;;  %6266 = vmatprep.subr.bf16.mxu1 %v9152_v13  ;;  %v9206_v34 = vld [vmem:[%s9990_s11 + $0xa40] ss:$36 sps:$4 sm:$0xff]  }
 0x5e1   : > { %6430 = vmatprep.subr.bf16.mxu0 %v9155_v14  ;;  %v9207_v13 = vld [vmem:[%s9990_s11 + $0xec0] ss:$36 sps:$4 sm:$0xff]   ;;  %v9208_v14 = vld [vmem:[%s9990_s11 + $0xcc8] ss:$36 sps:$4 sm:$0xff]  }
 0x5e3   : > { %6267 = vmatpush1.bf16.msra.mxu1 %v9150_v16  ;;  %v9209_v16 = vld [vmem:[%s9990_s11 + $0x1148] ss:$36 sps:$4 sm:$0xff]  }
 0x5e4   : > { %6431 = vmatpush1.bf16.msra.mxu0 %v9153_v0  ;;  %7437 = vmatprep.subr.bf16.mxu1 %v9156_v17  ;;  %v9210_v0 = vld [vmem:[%s9990_s11 + $0xa88] ss:$36 sps:$4 sm:$0xff]  }
 0x5e5   : > { %7459 = vmatprep.subr.bf16.mxu0 %v9157_v3  ;;  %v9211_v17 = vld [vmem:[%s9990_s11 + $0xf08] ss:$36 sps:$4 sm:$0xff]   ;;  %v9212_v3 = vld [vmem:[%s9990_s11 + $0xd10] ss:$36 sps:$4 sm:$0xff]  }
 0x5e6   : > { %6269 = vmatmul.mubr.bf16.vlgmr.msra.gmra.mrb[12].mxu1 %v10376_v39 }
 0x5e7   : > { %6433 = vmatmul.mubr.bf16.vlgmr.msra.gmra.mrb[12].mxu0 %v10376_v39  ;;  %7438 = vmatpush3.bf16.msra.mxu1 %v9158_v19  ;;  %v9213_v19 = vld [vmem:[%s9990_s11 + $0x1190] ss:$36 sps:$4 sm:$0xff]  }
 0x5e8   : > { %6473 = vmatprep.mubr.bf16.mxu1 %v10133_v33  ;;  %7460 = vmatpush3.bf16.msra.mxu0 %v9159_v20  ;;  %v9168_v33 = vld [vmem:[%s9990_s11 + $0x338] ss:$36 sps:$4 sm:$0xff]   ;;  %v9214_v20 = vld [vmem:[%s9990_s11 + $0xad0] ss:$36 sps:$4 sm:$0xff]  }
 0x5e9   : > { %6513 = vmatprep.mubr.bf16.mxu0 %v10143_v18  ;;  %7439 = vmatprep.subr.bf16.mxu1 %v9160_v22  ;;  %v9170_v18 = vld [vmem:[%s9990_s11 + $0xf8] ss:$36 sps:$4 sm:$0xff]   ;;  %v9215_v22 = vld [vmem:[%s9990_s11 + $0xf50] ss:$36 sps:$4 sm:$0xff]  }
 0x5ea   : > { %7461 = vmatprep.subr.bf16.mxu0 %v9161_v47  ;;  %v9216_v47 = vld [vmem:[%s9990_s11 + $0xd58] ss:$36 sps:$4 sm:$0xff]  }
 0x5eb   : > { %7440 = vmatpush3.bf16.msra.mxu1 %v9162_v26  ;;  %v9217_v26 = vld [vmem:[%s9990_s11 + $0x11d8] ss:$36 sps:$4 sm:$0xff]  }
 0x5ec   : > { %7462 = vmatpush3.bf16.msra.mxu0 %v9163_v27  ;;  %7441 = vmatprep.subr.bf16.mxu1 %v9164_v29  ;;  %v9218_v27 = vld [vmem:[%s9990_s11 + $0xb18] ss:$36 sps:$4 sm:$0xff]  }
 0x5ed   : > { %7463 = vmatprep.subr.bf16.mxu0 %v9165_v25  ;;  %v9219_v29 = vld [vmem:[%s9990_s11 + $0xf98] ss:$36 sps:$4 sm:$0xff]   ;;  %v2815_v25 = vrot.slane %v10613_v55, %v1546_v28 }
 0x5ef   : > { %7442 = vmatpush3.bf16.msra.mxu1 %v9166_v32  ;;  %v2823_v32 = vrot.slane %v10613_v55, %v1554_v4 }
 0x5f0   : > { %7464 = vmatpush3.bf16.msra.mxu0 %v9167_v35  ;;  %7443 = vmatprep.subr.bf16.mxu1 %v9168_v33  ;;  %v2819_v35 = vrot.slane %v10613_v55, %v1550_v30  ;;  %v2827_v33 = vrot.slane %v10613_v55, %v1558_v36 }
 0x5f1   : > { %7465 = vmatprep.subr.bf16.mxu0 %v9169_v37 }
 0x5f3   : > { %7444 = vmatpush3.bf16.msra.mxu1 %v9170_v18 }
 0x5f4   : > { %7466 = vmatpush3.bf16.msra.mxu0 %v9171_v38  ;;  %7445 = vmatprep.subr.bf16.mxu1 %v9172_v40 }
 0x5f5   : > { %7467 = vmatprep.subr.bf16.mxu0 %v9173_v41 }
 0x5f7   : > { %7446 = vmatpush3.bf16.msra.mxu1 %v9174_v43 }
 0x5f8   : > { %7468 = vmatpush3.bf16.msra.mxu0 %v9175_v44  ;;  %7447 = vmatprep.subr.bf16.mxu1 %v9176_v45 }
 0x5f9   : > { %7469 = vmatprep.subr.bf16.mxu0 %v9177_v46 }
 0x5fb   : > { %7448 = vmatpush3.bf16.msra.mxu1 %v9178_v49 }
 0x5fc   : > { %7470 = vmatpush3.bf16.msra.mxu0 %v9179_v50  ;;  %7449 = vmatprep.subr.bf16.mxu1 %v9180_v51 }
 0x5fd   : > { %7471 = vmatprep.subr.bf16.mxu0 %v9181_v52 }
 0x5ff   : > { %7450 = vmatpush3.bf16.msra.mxu1 %v9182_v54 }
 0x600   : > { %7472 = vmatpush3.bf16.msra.mxu0 %v9183_v53  ;;  %7451 = vmatprep.subr.bf16.mxu1 %v9184_v56  ;;  %v6856_v56 = vld [vmem:[%s10608_s23 + $0x8] ss:$0 sm:$0xff] }
 0x601   : > { %7473 = vmatprep.subr.bf16.mxu0 %v9185_v57 }
 0x603   : > { %7452 = vmatpush3.bf16.msra.mxu1 %v9186_v59 }
 0x604   : > { %7474 = vmatpush3.bf16.msra.mxu0 %v9187_v60  ;;  %7481 = vmatprep.subr.bf16.mxu1 %v9188_v62 }
 0x605   : > { %7503 = vmatprep.subr.bf16.mxu0 %v9189_v63 }
 0x606   : > { %6474 = vmatmul.mubr.bf16.vlgmr.msra.gmra.mrb[16].mxu1 %v10137_v15  ;;  %v9197_v15 = vld [vmem:[%s9990_s11 + $0x1070] ss:$36 sps:$4 sm:$0xff]  }
 0x607   : > { %6514 = vmatmul.mubr.bf16.vlgmr.msra.gmra.mrb[16].mxu0 %v10214_v31  ;;  %7482 = vmatpush3.bf16.msra.mxu1 %v9190_v2  ;;  %v9198_v31 = vld [vmem:[%s9990_s11 + $0x9b0] ss:$36 sps:$4 sm:$0xff]  }
 0x608   : > { %6553 = vmatprep.mubr.bf16.mxu1 %v10294_v61  ;;  %7504 = vmatpush3.bf16.msra.mxu0 %v9191_v6  ;;  %v9200_v61 = vld [vmem:[%s9990_s11 + $0xc38] ss:$36 sps:$4 sm:$0xff]  }
 0x609   : > { %6593 = vmatprep.mubr.bf16.mxu0 %v10304_v5  ;;  %7483 = vmatprep.subr.bf16.mxu1 %v9192_v7  ;;  %v9202_v5 = vld [vmem:[%s9990_s11 + $0x9f8] ss:$36 sps:$4 sm:$0xff]  }
 0x60a   : > { %7505 = vmatprep.subr.bf16.mxu0 %v9193_v8 }
 0x60b   : > { %7484 = vmatpush3.bf16.msra.mxu1 %v9194_v9 }
 0x60c   : > { %7506 = vmatpush3.bf16.msra.mxu0 %v9195_v23  ;;  %7485 = vmatprep.subr.bf16.mxu1 %v9196_v10 }
 0x60d   : > { %7507 = vmatprep.subr.bf16.mxu0 %v9197_v15 }
 0x60f   : > { %7486 = vmatpush3.bf16.msra.mxu1 %v9198_v31 }
 0x610   : > { %7508 = vmatpush3.bf16.msra.mxu0 %v9199_v48  ;;  %7487 = vmatprep.subr.bf16.mxu1 %v9200_v61 }
 0x611   : > { %7509 = vmatprep.subr.bf16.mxu0 %v9201_v11 }
 0x613   : > { %7488 = vmatpush3.bf16.msra.mxu1 %v9202_v5 }
 0x614   : > { %7510 = vmatpush3.bf16.msra.mxu0 %v9203_v12  ;;  %7489 = vmatprep.subr.bf16.mxu1 %v9204_v24 }
 0x615   : > { %7511 = vmatprep.subr.bf16.mxu0 %v9205_v58 }
 0x617   : > { %7490 = vmatpush3.bf16.msra.mxu1 %v9206_v34 }
 0x618   : > { %7512 = vmatpush3.bf16.msra.mxu0 %v9207_v13  ;;  %7491 = vmatprep.subr.bf16.mxu1 %v9208_v14 }
 0x619   : > { %7513 = vmatprep.subr.bf16.mxu0 %v9209_v16 }
 0x61b   : > { %7492 = vmatpush3.bf16.msra.mxu1 %v9210_v0 }
 0x61c   : > { %7514 = vmatpush3.bf16.msra.mxu0 %v9211_v17  ;;  %7493 = vmatprep.subr.bf16.mxu1 %v9212_v3 }
 0x61d   : > { %7515 = vmatprep.subr.bf16.mxu0 %v9213_v19 }
 0x61f   : > { %7494 = vmatpush3.bf16.msra.mxu1 %v9214_v20 }
 0x620   : > { %7516 = vmatpush3.bf16.msra.mxu0 %v9215_v22  ;;  %7495 = vmatprep.subr.bf16.mxu1 %v9216_v47 }
 0x621   : > { %7517 = vmatprep.subr.bf16.mxu0 %v9217_v26 }
 0x623   : > { %7496 = vmatpush3.bf16.msra.mxu1 %v9218_v27 }
 0x624   : > { %7518 = vmatpush3.bf16.msra.mxu0 %v9219_v29 }
 0x626   : > { %6554 = vmatmul.mubr.bf16.vlgmr.msra.gmra.mrb[20].mxu1 %v10298_v1 }
 0x627   : > { %6594 = vmatmul.mubr.bf16.vlgmr.msra.gmra.mrb[20].mxu0 %v10376_v39 }
 0x6b9   : > { %v6270_v37 = vpop.f32.mrb[12].mxu1 }
 0x6ba   : > { %v8185_v1 = vadd.f32 %v6270_v37, %v2815_v25  ;;  %v6434_v18 = vpop.f32.mrb[12].mxu0  ;;  %v6272_v39 = vpop.f32.mrb[13].mxu1 }
 0x6bb   : > { %v8187_v38 = vadd.f32 %v6434_v18, %v2823_v32  ;;  %v8186_v40 = vadd.f32 %v6272_v39, %v2819_v35  ;;  %v6436_v41 = vpop.f32.mrb[13].mxu0  ;;  %v6274_v28 = vpop.f32.mrb[14].mxu1 }
 0x6bc   : > { %9232 = vtanh.f32 %v8185_v1  ;;  %v8188_v43 = vadd.f32 %v6436_v41, %v2827_v33  ;;  %v6438_v4 = vpop.f32.mrb[14].mxu0  ;;  %v6275_v44 = vpop.f32.mrb[15].mxu1 }
 0x6bd   : > { %9234 = vtanh.f32 %v8187_v38  ;;  %v6439_v30 = vpop.f32.mrb[15].mxu0 }
 0x6be   : > { %9236 = vtanh.f32 %v8186_v40 }
 0x6bf   : > { %9238 = vtanh.f32 %v8188_v43 }
 0x6c6   : > { %v9233_v21 = vpop.eup %9232 }
 0x6c7   : > { %v9235_v36 = vpop.eup %9234 }
 0x6c8   : > { %v9237_v55 = vpop.eup %9236 }
 0x6c9   : > { %v9239_v45 = vpop.eup %9238  ;;  %v6636_v46 = vcombine.low %v9233_v21, %v9237_v55 }
 0x6ca   : > { %v6637_v49 = vcombine.low %v9235_v36, %v9239_v45 }
 0x6cb   : > { %v6644_v50 = vrot.slane %v6636_v46, %v10643_v42 }
 0x6cc   : > { %v6651_v51 = vrot.slane %v6637_v49, %v10643_v42 }
 0x6ce   : > { %v6652_v52 = vcombine.low %v6644_v50, %v6651_v51 }
 0x6d0   : > { %6664 = vst [vmem:[%s10658_s12 + $0x8] sm:$0xff] %v6652_v52 }
 0x6d9   : > { %v7453_v54 = vpop.f32.mrb[16].mxu1 }
 0x6da   : > { %v7475_v53 = vpop.f32.mrb[16].mxu0  ;;  %v7454_v57 = vpop.f32.mrb[17].mxu1 }
 0x6db   : > { %v7455_v59 = vadd.f32 %v7454_v57, %v7453_v54  ;;  %v7476_v60 = vpop.f32.mrb[17].mxu0  ;;  %v7456_v62 = vpop.f32.mrb[18].mxu1 }
 0x6dc   : > { %v7477_v63 = vadd.f32 %v7476_v60, %v7475_v53  ;;  %v7478_v2 = vpop.f32.mrb[18].mxu0  ;;  %v7457_v6 = vpop.f32.mrb[19].mxu1 }
 0x6dd   : > { %v6476_v7 = vadd.f32 %v7455_v59, %v6856_v56  ;;  %v7479_v8 = vpop.f32.mrb[19].mxu0 }
 0x6df   : > { %v6516_v9 = vadd.f32 %v7477_v63, %v6476_v7 }
 0x6f9   : > { %v7497_v23 = vpop.f32.mrb[20].mxu1 }
 0x6fa   : > { %v7519_v10 = vpop.f32.mrb[20].mxu0  ;;  %v7498_v15 = vpop.f32.mrb[21].mxu1 }
 0x6fb   : > { %v7499_v42 = vadd.f32 %v7498_v15, %v7497_v23  ;;  %v7520_v31 = vpop.f32.mrb[21].mxu0  ;;  %v7500_v48 = vpop.f32.mrb[22].mxu1 }
 0x6fc   : > { %v7521_v61 = vadd.f32 %v7520_v31, %v7519_v10  ;;  %v7522_v11 = vpop.f32.mrb[22].mxu0  ;;  %v7501_v5 = vpop.f32.mrb[23].mxu1 }
 0x6fd   : > { %v6556_v12 = vadd.f32 %v7499_v42, %v6516_v9  ;;  %v7523_v24 = vpop.f32.mrb[23].mxu0 }
 0x6ff   : > { %v6596_v58 = vadd.f32 %v7521_v61, %v6556_v12 }
 0x701   : > { %9240 = vtanh.f32 %v6596_v58 }
 0x70b   : > { %v9241_v34 = vpop.eup %9240 }
 0x70c   : > { %7433 = vst.sshfl [vmem:[%s10658_s12 + $0x10] sm:$0x3 pattern:$0x76325410] %v9241_v34 }
 0x70d PF: > { %p26_p5 = scmp.ge.s32.totalorder %s9906_s21, 8   ;;  %s10817_s17 = smov %s9570_s18 }
 0x70e   : > { %s10818_s18 = smov %s9574_s19  ;;  %s10819_s19 = smov %s9917_s14 }
 0x70f   : > { %s10820_s20 = smov %s9906_s21  ;;  %28 = sbr.rel (!%p26_p5) target bundleno = 11 (0xb), region = 144 }
 0x716   :  { %6688 = vsyncpa [#allocation3], 1 }
 0x717   :  { %6690 = vsyncpa [#allocation3 + $0x1], 1 }
 0x718   :  { %6691 = vsyncpa [#allocation5], 1 }
 0x719   :  { %6692 = vsyncpa [#allocation8], 1 }
 0x71a   :  { %6693 = vsyncpa [#allocation11], 1 }
 0x71b   :  { %6694 = vsyncpa [#allocation14], 1 }
 0x71c   :  { %6695 = vsyncpa [#allocation17], 1 }
 0x71d   :  { %6697 = vsyncpa [#allocation17 + $0x1], 1 }

</bundles_post_ra>
